<compile_context>
chip_gen: v7x
topology: tpu7x:2x2x1
jax: 0.10.0
libtpu: 0.0.40
codegen_flags: <defaults>
</compile_context>

<pallas_src>
import functools

import jax
import jax.numpy as jnp
from jax.experimental import pallas as pl
from jax.experimental.pallas import tpu as pltpu


def _silu(z):
    # Plain VPU/EUP form.  Swap the divide for pl.reciprocal(..., approx=True)
    # only if a bundle dump shows the VALU slot is binding.
    return z * jax.nn.sigmoid(z)


# ----------------------------------------------------------------------------
# Pallas kernel: whole CSPLayer forward for one block of images.
# ----------------------------------------------------------------------------
def csp_kernel(x_ref,
               w12_ref, b12_ref,        # fused CSP conv1|conv2 (1x1, folded BN)
               wb1_ref, bb1_ref,        # Bottleneck conv1 (1x1, folded BN)
               wb2_ref, bb2_ref,        # Bottleneck conv2 weight (9, h, h), folded BN
               w3a_ref, w3b_ref, b3_ref,  # CSP conv3 split weights + bias
               o_ref, *, H, W, hidden, mxu_dtype):
    HW = H * W
    rows = x_ref.shape[0]                       # images_per_step * H * W

    x = x_ref[...].astype(mxu_dtype)

    # ---- fused CSP conv1 / conv2: one MXU pass, split by lane slice --------
    x12 = _silu(jnp.dot(x, w12_ref[...], preferred_element_type=jnp.float32)
                + b12_ref[...])                  # (rows, 2*hidden), f32
    x1 = x12[:, :hidden]
    x2 = x12[:, hidden:]

    # ---- Bottleneck conv1 (1x1) --------------------------------------------
    y1 = _silu(jnp.dot(x1.astype(mxu_dtype), wb1_ref[...],
                       preferred_element_type=jnp.float32) + bb1_ref[...])

    # ---- Bottleneck conv2: 3x3 / stride 1 / SAME as tap-wise accumulation --
    # Cast once BEFORE the tap loop so rolls / masks / dot operands are cheap.
    y1m = y1.astype(mxu_dtype)

    # Boundary masks hoisted out of the tap loop (computed once per block).
    ridx = jax.lax.broadcasted_iota(jnp.int32, (rows, 1), 0)
    col = ridx % W                               # x coordinate of each row
    rimg = ridx % HW                             # flattened position within its image
    mask_l = col >= 1                            # kx = 0 needs x-1 >= 0
    mask_r = col <= W - 2                        # kx = 2 needs x+1 <= W-1
    mask_t = rimg >= W                           # ky = 0 needs y-1 >= 0
    mask_b = rimg < HW - W                       # ky = 2 needs y+1 <= H-1
    row_masks = (mask_t, None, mask_b)
    col_masks = (mask_l, None, mask_r)

    # Center tap (no roll, no mask) seeds the single f32 accumulator.
    acc = jnp.dot(y1m, wb2_ref[4], preferred_element_type=jnp.float32)
    for k in range(9):
        if k == 4:
            continue
        ky, kx = divmod(k, 3)
        off = (ky - 1) * W + (kx - 1)
        # tap[r] = y1[r + off]; the circular wrap of roll only ever lands on
        # rows zeroed by the masks below (SAME zero-padding, BN folded).
        t = pltpu.roll(y1m, (-off) % rows, axis=0)
        rm, cm = row_masks[ky], col_masks[kx]
        m = rm if cm is None else (cm if rm is None else jnp.logical_and(rm, cm))
        t = jnp.where(m, t, 0.0)
        acc = acc + jnp.dot(t, wb2_ref[k], preferred_element_type=jnp.float32)
    y2 = _silu(acc + bb2_ref[...])

    # ---- CSP conv3 on [y2 | x2]: two accumulated dots (no concat copy) -----
    out = jnp.dot(y2.astype(mxu_dtype), w3a_ref[...],
                  preferred_element_type=jnp.float32)
    out = out + jnp.dot(x2.astype(mxu_dtype), w3b_ref[...],
                        preferred_element_type=jnp.float32)
    out = _silu(out + b3_ref[...])

    o_ref[...] = out.astype(o_ref.dtype)


# ----------------------------------------------------------------------------
# Wrapper: layout conversion, parameter fusion, pallas_call plumbing.
# ----------------------------------------------------------------------------
def csp_layer_pallas(x_nchw, p, *, images_per_step=1, mxu_dtype=jnp.bfloat16):
    N, Cin, H, W = x_nchw.shape
    HW = H * W
    hidden = p["wb1"].shape[1]
    Cout = p["w3"].shape[1]

    nb = images_per_step
    assert N % nb == 0, "images_per_step must divide the batch"
    rows = nb * HW

    # TODO(synk): in a real pipeline keep activations NHWC end-to-end; these
    # per-call transposes are each a separate HBM-bandwidth XLA pass.
    x = jnp.transpose(x_nchw, (0, 2, 3, 1)).reshape(N * HW, Cin)

    # Parameter glue: fuse conv1|conv2, split conv3, cast MXU operands once;
    # biases stay f32 for the VPU/EUP path.
    w12 = jnp.concatenate([p["w1"], p["w2"]], axis=1).astype(mxu_dtype)
    b12 = jnp.concatenate([p["b1"], p["b2"]], axis=1)
    wb1 = p["wb1"].astype(mxu_dtype)
    wb2 = p["wb2"].astype(mxu_dtype)             # (9, hidden, hidden)
    w3a = p["w3"][:hidden].astype(mxu_dtype)     # conv3 weight for y2 half
    w3b = p["w3"][hidden:].astype(mxu_dtype)     # conv3 weight for x2 half
    args = [w12, b12, wb1, p["bb1"], wb2, p["bb2"], w3a, w3b, p["b3"]]

    def full_spec(a):
        # Constant-index weight blocks.
        # TODO(synk): on v7x, pipeline_mode=pl.Buffered(1) here reclaims one
        # copy of each weight from the default double buffer.
        nd = a.ndim
        return pl.BlockSpec(a.shape, lambda g, _nd=nd: (0,) * _nd)

    # Explicit scoped-VMEM budget from the chosen block sizes (with headroom).
    weight_bytes = sum(int(a.size) * a.dtype.itemsize for a in args)
    bpe = jnp.dtype(mxu_dtype).itemsize
    interm_bytes = rows * 4 * (2 * hidden + hidden + hidden + Cout)   # f32 x12/y1/acc/out
    interm_bytes += rows * bpe * (Cin + 2 * hidden)                   # mxu-dtype x, y1m, tap
    io_bytes = 2 * rows * 4 * (Cin + Cout)                            # double-buffered x/out
    vmem_bytes = int(2 * (io_bytes + 2 * weight_bytes + interm_bytes))
    vmem_bytes = min(max(vmem_bytes, 16 << 20), 64 << 20)

    # Advisory cost estimate for XLA's scheduler.
    rows_total = N * HW
    flops = 2 * rows_total * (Cin * 2 * hidden + hidden * hidden
                              + 9 * hidden * hidden + 2 * hidden * Cout)
    transcendentals = rows_total * (2 * hidden + hidden + hidden + Cout)
    bytes_accessed = (int(x.size) * 4 + rows_total * Cout * 4 + weight_bytes)
    ce = pl.CostEstimate(flops=flops, transcendentals=transcendentals,
                         bytes_accessed=bytes_accessed)

    out = pl.pallas_call(
        functools.partial(csp_kernel, H=H, W=W, hidden=hidden, mxu_dtype=mxu_dtype),
        out_shape=jax.ShapeDtypeStruct((N * HW, Cout), jnp.float32),
        grid=(N // nb,),
        in_specs=[pl.BlockSpec((rows, Cin), lambda g: (g, 0))]
                 + [full_spec(a) for a in args],
        out_specs=pl.BlockSpec((rows, Cout), lambda g: (g, 0)),
        compiler_params=pltpu.CompilerParams(
            dimension_semantics=("parallel",),
            vmem_limit_bytes=vmem_bytes),
        cost_estimate=ce,
    )(x, *args)

    return jnp.transpose(out.reshape(N, H, W, Cout), (0, 3, 1, 2))


# ----------------------------------------------------------------------------
# Deterministic synthetic parameters (Conv bias=False + folded BatchNorm).
# ----------------------------------------------------------------------------
def make_params(key, in_channels, out_channels, expansion=0.5):
    hidden = int(out_channels * expansion)
    keys = iter(jax.random.split(key, 64))

    def conv_bn(cin, cout, k):
        # conv weight in (k*k, cin, cout) layout, no conv bias (matches BaseConv)
        w = jax.random.normal(next(keys), (k * k, cin, cout), jnp.float32) / jnp.sqrt(cin * k * k)
        gamma = 1.0 + 0.1 * jax.random.normal(next(keys), (cout,), jnp.float32)
        beta = 0.1 * jax.random.normal(next(keys), (cout,), jnp.float32)
        mean = 0.1 * jax.random.normal(next(keys), (cout,), jnp.float32)
        var = jax.random.uniform(next(keys), (cout,), jnp.float32, minval=0.5, maxval=1.5)
        scale = gamma / jnp.sqrt(var + 1e-5)
        return w * scale, (beta - mean * scale).reshape(1, cout)

    w1, b1 = conv_bn(in_channels, hidden, 1)
    w2, b2 = conv_bn(in_channels, hidden, 1)
    wb1, bb1 = conv_bn(hidden, hidden, 1)            # Bottleneck expansion = 1.0
    wb2, bb2 = conv_bn(hidden, hidden, 3)
    w3, b3 = conv_bn(2 * hidden, out_channels, 1)

    return {
        "w1": w1[0], "b1": b1,
        "w2": w2[0], "b2": b2,
        "wb1": wb1[0], "bb1": bb1,
        "wb2": wb2, "bb2": bb2,                      # wb2: (9, hidden, hidden)
        "w3": w3[0], "b3": b3,                       # w3: (2*hidden, Cout)
    }


# ----------------------------------------------------------------------------
# Pure-JAX reference (matches the PyTorch module semantics) for verification.
# ----------------------------------------------------------------------------
def ref_forward(x_nchw, p):
    x = jnp.transpose(x_nchw, (0, 2, 3, 1))  # NHWC

    def c1x1(z, w, b):
        return _silu(jnp.einsum("nhwc,cd->nhwd", z, w) + b.reshape(-1))

    x1 = c1x1(x, p["w1"], p["b1"])
    x2 = c1x1(x, p["w2"], p["b2"])
    y1 = c1x1(x1, p["wb1"], p["bb1"])
    ch = y1.shape[-1]
    w3x3 = p["wb2"].reshape(3, 3, ch, ch)
    y2 = jax.lax.conv_general_dilated(
        y1, w3x3, window_strides=(1, 1), padding="SAME",
        dimension_numbers=("NHWC", "HWIO", "NHWC"))
    y2 = _silu(y2 + p["bb2"].reshape(-1))
    cat = jnp.concatenate([y2, x2], axis=-1)         # torch.cat((x_1, x_2), dim=1)
    out = c1x1(cat, p["w3"], p["b3"])
    return jnp.transpose(out, (0, 3, 1, 2))          # back to NCHW


if __name__ == "__main__":
    key = jax.random.PRNGKey(0)
    k_x, k_p = jax.random.split(key)

    N, C, H, W = 2, 16, 16, 16        # in_channels = out_channels = 16, hidden = 8, n = 1
    x = jax.random.normal(k_x, (N, C, H, W), jnp.float32)
    params = make_params(k_p, in_channels=C, out_channels=C, expansion=0.5)

    ref = jax.block_until_ready(ref_forward(x, params))

    # Full-f32 MXU path: tight correctness check (grid=(2,), one image/step).
    out_f32 = jax.block_until_ready(
        csp_layer_pallas(x, params, images_per_step=1, mxu_dtype=jnp.float32))
    err_f32 = float(jnp.max(jnp.abs(out_f32 - ref)))
    if out_f32.shape != ref.shape or err_f32 > 2e-2:
        raise SystemExit(f"f32 mismatch: shape={out_f32.shape} max_abs_err={err_f32}")

    # bf16 MXU operands (f32 accumulation + f32 elementwise): default path.
    out_bf16 = jax.block_until_ready(
        csp_layer_pallas(x, params, images_per_step=1, mxu_dtype=jnp.bfloat16))
    err_bf16 = float(jnp.max(jnp.abs(out_bf16 - ref)))
    if out_bf16.shape != ref.shape or err_bf16 > 2.5e-1:
        raise SystemExit(f"bf16 mismatch: shape={out_bf16.shape} max_abs_err={err_bf16}")

    print("KERNEL_OK")
</pallas_src>

<mosaic_0001>
module attributes {stable_mosaic.version = 11 : i64} {
  func.func @csp_kernel(%arg0: i32, %arg1: memref<256x16xf32, #tpu.memory_space<vmem>>, %arg2: memref<16x16xf32, #tpu.memory_space<vmem>>, %arg3: memref<1x16xf32, #tpu.memory_space<vmem>>, %arg4: memref<8x8xf32, #tpu.memory_space<vmem>>, %arg5: memref<1x8xf32, #tpu.memory_space<vmem>>, %arg6: memref<9x8x8xf32, #tpu.memory_space<vmem>>, %arg7: memref<1x8xf32, #tpu.memory_space<vmem>>, %arg8: memref<8x16xf32, #tpu.memory_space<vmem>>, %arg9: memref<8x16xf32, #tpu.memory_space<vmem>>, %arg10: memref<1x16xf32, #tpu.memory_space<vmem>>, %arg11: memref<256x16xf32, #tpu.memory_space<vmem>>) attributes {dimension_semantics = [#tpu.dimension_semantics<parallel>], iteration_bounds = array<i64: 2>, scalar_prefetch = 0 : i64, scratch_operands = 0 : i64, tpu.core_type = #tpu.core_type<tc>, window_params = [{transform_indices = @transform_0, window_bounds = array<i64: 256, 16>}, {pipeline_mode = #tpu.pipeline_mode<synchronous>, transform_indices = @transform_1, window_bounds = array<i64: 16, 16>}, {pipeline_mode = #tpu.pipeline_mode<synchronous>, transform_indices = @transform_2, window_bounds = array<i64: 1, 16>}, {pipeline_mode = #tpu.pipeline_mode<synchronous>, transform_indices = @transform_3, window_bounds = array<i64: 8, 8>}, {pipeline_mode = #tpu.pipeline_mode<synchronous>, transform_indices = @transform_4, window_bounds = array<i64: 1, 8>}, {pipeline_mode = #tpu.pipeline_mode<synchronous>, transform_indices = @transform_5, window_bounds = array<i64: 9, 8, 8>}, {pipeline_mode = #tpu.pipeline_mode<synchronous>, transform_indices = @transform_6, window_bounds = array<i64: 1, 8>}, {pipeline_mode = #tpu.pipeline_mode<synchronous>, transform_indices = @transform_7, window_bounds = array<i64: 8, 16>}, {pipeline_mode = #tpu.pipeline_mode<synchronous>, transform_indices = @transform_8, window_bounds = array<i64: 8, 16>}, {pipeline_mode = #tpu.pipeline_mode<synchronous>, transform_indices = @transform_9, window_bounds = array<i64: 1, 16>}, {transform_indices = @transform_10, window_bounds = array<i64: 256, 16>}]} {
    %c0 = arith.constant 0 : index
    %c0_0 = arith.constant 0 : index
    %0 = vector.load %arg1[%c0, %c0_0] : memref<256x16xf32, #tpu.memory_space<vmem>>, vector<256x16xf32>
    %c0_1 = arith.constant 0 : index
    %c0_2 = arith.constant 0 : index
    %1 = vector.load %arg2[%c0_1, %c0_2] : memref<16x16xf32, #tpu.memory_space<vmem>>, vector<16x16xf32>
    %cst = arith.constant dense<0.000000e+00> : vector<256x16xf32>
    %2 = tpu.matmul %0, %1, %cst {dimension_numbers = #tpu.dot_dimension_numbers<[1], [0], [0], [1], [0, 0, 1, 1], [], []>} : vector<256x16xf32>, vector<16x16xf32>, vector<256x16xf32> -> vector<256x16xf32>
    %c0_3 = arith.constant 0 : index
    %c0_4 = arith.constant 0 : index
    %3 = vector.load %arg3[%c0_3, %c0_4] : memref<1x16xf32, #tpu.memory_space<vmem>>, vector<1x16xf32>
    %4 = vector.broadcast %3 : vector<1x16xf32> to vector<256x16xf32>
    %5 = arith.addf %2, %4 : vector<256x16xf32>
    %6 = arith.negf %5 : vector<256x16xf32>
    %7 = math.exp %6 : vector<256x16xf32>
    %cst_5 = arith.constant 1.000000e+00 : f32
    %8 = vector.broadcast %cst_5 : f32 to vector<256x16xf32>
    %9 = arith.addf %8, %7 : vector<256x16xf32>
    %10 = arith.divf %8, %9 : vector<256x16xf32>
    %11 = arith.mulf %5, %10 : vector<256x16xf32>
    %12 = vector.extract_strided_slice %11 {offsets = [0, 0], sizes = [256, 8], strides = [1, 1]} : vector<256x16xf32> to vector<256x8xf32>
    %13 = vector.extract_strided_slice %11 {offsets = [0, 8], sizes = [256, 8], strides = [1, 1]} : vector<256x16xf32> to vector<256x8xf32>
    %c0_6 = arith.constant 0 : index
    %c0_7 = arith.constant 0 : index
    %14 = vector.load %arg4[%c0_6, %c0_7] : memref<8x8xf32, #tpu.memory_space<vmem>>, vector<8x8xf32>
    %cst_8 = arith.constant dense<0.000000e+00> : vector<256x8xf32>
    %15 = tpu.matmul %12, %14, %cst_8 {dimension_numbers = #tpu.dot_dimension_numbers<[1], [0], [0], [1], [0, 0, 1, 1], [], []>} : vector<256x8xf32>, vector<8x8xf32>, vector<256x8xf32> -> vector<256x8xf32>
    %c0_9 = arith.constant 0 : index
    %c0_10 = arith.constant 0 : index
    %16 = vector.load %arg5[%c0_9, %c0_10] : memref<1x8xf32, #tpu.memory_space<vmem>>, vector<1x8xf32>
    %17 = vector.broadcast %16 : vector<1x8xf32> to vector<256x8xf32>
    %18 = arith.addf %15, %17 : vector<256x8xf32>
    %19 = arith.negf %18 : vector<256x8xf32>
    %20 = math.exp %19 : vector<256x8xf32>
    %cst_11 = arith.constant 1.000000e+00 : f32
    %21 = vector.broadcast %cst_11 : f32 to vector<256x8xf32>
    %22 = arith.addf %21, %20 : vector<256x8xf32>
    %23 = arith.divf %21, %22 : vector<256x8xf32>
    %24 = arith.mulf %18, %23 : vector<256x8xf32>
    %25 = tpu.iota {dimensions = array<i32: 0>} : vector<256x1xi32>
    %c16_i32 = arith.constant 16 : i32
    %c0_i32 = arith.constant 0 : i32
    %26 = arith.cmpi eq, %c16_i32, %c0_i32 : i32
    %c1_i32 = arith.constant 1 : i32
    %27 = arith.select %26, %c1_i32, %c16_i32 : i32
    %28 = vector.broadcast %27 : i32 to vector<256x1xi32>
    %29 = arith.remsi %25, %28 : vector<256x1xi32>
    %c0_i32_12 = arith.constant 0 : i32
    %30 = vector.broadcast %c0_i32_12 : i32 to vector<256x1xi32>
    %31 = arith.cmpi ne, %29, %30 : vector<256x1xi32>
    %c0_i32_13 = arith.constant 0 : i32
    %32 = vector.broadcast %c0_i32_13 : i32 to vector<256x1xi32>
    %33 = arith.cmpi slt, %29, %32 : vector<256x1xi32>
    %c0_i32_14 = arith.constant 0 : i32
    %34 = arith.cmpi slt, %27, %c0_i32_14 : i32
    %35 = vector.broadcast %34 : i1 to vector<256x1xi1>
    %36 = vector.broadcast %35 : vector<256x1xi1> to vector<256x1xi1>
    %37 = arith.xori %33, %36 : vector<256x1xi1>
    %38 = arith.andi %37, %31 : vector<256x1xi1>
    %39 = vector.broadcast %27 : i32 to vector<256x1xi32>
    %40 = arith.addi %29, %39 : vector<256x1xi32>
    %41 = arith.select %38, %40, %29 : vector<256x1xi1>, vector<256x1xi32>
    %c256_i32 = arith.constant 256 : i32
    %c0_i32_15 = arith.constant 0 : i32
    %42 = arith.cmpi eq, %c256_i32, %c0_i32_15 : i32
    %c1_i32_16 = arith.constant 1 : i32
    %43 = arith.select %42, %c1_i32_16, %c256_i32 : i32
    %44 = vector.broadcast %43 : i32 to vector<256x1xi32>
    %45 = arith.remsi %25, %44 : vector<256x1xi32>
    %c0_i32_17 = arith.constant 0 : i32
    %46 = vector.broadcast %c0_i32_17 : i32 to vector<256x1xi32>
    %47 = arith.cmpi ne, %45, %46 : vector<256x1xi32>
    %c0_i32_18 = arith.constant 0 : i32
    %48 = vector.broadcast %c0_i32_18 : i32 to vector<256x1xi32>
    %49 = arith.cmpi slt, %45, %48 : vector<256x1xi32>
    %c0_i32_19 = arith.constant 0 : i32
    %50 = arith.cmpi slt, %43, %c0_i32_19 : i32
    %51 = vector.broadcast %50 : i1 to vector<256x1xi1>
    %52 = vector.broadcast %51 : vector<256x1xi1> to vector<256x1xi1>
    %53 = arith.xori %49, %52 : vector<256x1xi1>
    %54 = arith.andi %53, %47 : vector<256x1xi1>
    %55 = vector.broadcast %43 : i32 to vector<256x1xi32>
    %56 = arith.addi %45, %55 : vector<256x1xi32>
    %57 = arith.select %54, %56, %45 : vector<256x1xi1>, vector<256x1xi32>
    %c1_i32_20 = arith.constant 1 : i32
    %58 = vector.broadcast %c1_i32_20 : i32 to vector<256x1xi32>
    %59 = arith.cmpi sge, %41, %58 : vector<256x1xi32>
    %c14_i32 = arith.constant 14 : i32
    %60 = vector.broadcast %c14_i32 : i32 to vector<256x1xi32>
    %61 = arith.cmpi sle, %41, %60 : vector<256x1xi32>
    %c16_i32_21 = arith.constant 16 : i32
    %62 = vector.broadcast %c16_i32_21 : i32 to vector<256x1xi32>
    %63 = arith.cmpi sge, %57, %62 : vector<256x1xi32>
    %c240_i32 = arith.constant 240 : i32
    %64 = vector.broadcast %c240_i32 : i32 to vector<256x1xi32>
    %65 = arith.cmpi slt, %57, %64 : vector<256x1xi32>
    %c4 = arith.constant 4 : index
    %c0_22 = arith.constant 0 : index
    %c0_23 = arith.constant 0 : index
    %66 = vector.load %arg6[%c4, %c0_22, %c0_23] : memref<9x8x8xf32, #tpu.memory_space<vmem>>, vector<1x8x8xf32>
    %67 = vector.shape_cast %66 : vector<1x8x8xf32> to vector<8x8xf32>
    %cst_24 = arith.constant dense<0.000000e+00> : vector<256x8xf32>
    %68 = tpu.matmul %24, %67, %cst_24 {dimension_numbers = #tpu.dot_dimension_numbers<[1], [0], [0], [1], [0, 0, 1, 1], [], []>} : vector<256x8xf32>, vector<8x8xf32>, vector<256x8xf32> -> vector<256x8xf32>
    %c17_i32 = arith.constant 17 : i32
    %69 = tpu.dynamic_rotate %24 by %c17_i32 dim 0 : vector<256x8xf32>, i32 -> vector<256x8xf32>
    %70 = arith.andi %63, %59 : vector<256x1xi1>
    %cst_25 = arith.constant 0.000000e+00 : f32
    %71 = vector.shape_cast %70 : vector<256x1xi1> to vector<256x1xi1>
    %72 = vector.broadcast %71 : vector<256x1xi1> to vector<256x8xi1>
    %73 = vector.broadcast %cst_25 : f32 to vector<256x8xf32>
    %74 = arith.select %72, %69, %73 : vector<256x8xi1>, vector<256x8xf32>
    %c0_26 = arith.constant 0 : index
    %c0_27 = arith.constant 0 : index
    %c0_28 = arith.constant 0 : index
    %75 = vector.load %arg6[%c0_26, %c0_27, %c0_28] : memref<9x8x8xf32, #tpu.memory_space<vmem>>, vector<1x8x8xf32>
    %76 = vector.shape_cast %75 : vector<1x8x8xf32> to vector<8x8xf32>
    %cst_29 = arith.constant dense<0.000000e+00> : vector<256x8xf32>
    %77 = tpu.matmul %74, %76, %cst_29 {dimension_numbers = #tpu.dot_dimension_numbers<[1], [0], [0], [1], [0, 0, 1, 1], [], []>} : vector<256x8xf32>, vector<8x8xf32>, vector<256x8xf32> -> vector<256x8xf32>
    %78 = arith.addf %68, %77 : vector<256x8xf32>
    %c16_i32_30 = arith.constant 16 : i32
    %79 = tpu.dynamic_rotate %24 by %c16_i32_30 dim 0 : vector<256x8xf32>, i32 -> vector<256x8xf32>
    %cst_31 = arith.constant 0.000000e+00 : f32
    %80 = vector.shape_cast %63 : vector<256x1xi1> to vector<256x1xi1>
    %81 = vector.broadcast %80 : vector<256x1xi1> to vector<256x8xi1>
    %82 = vector.broadcast %cst_31 : f32 to vector<256x8xf32>
    %83 = arith.select %81, %79, %82 : vector<256x8xi1>, vector<256x8xf32>
    %c1 = arith.constant 1 : index
    %c0_32 = arith.constant 0 : index
    %c0_33 = arith.constant 0 : index
    %84 = vector.load %arg6[%c1, %c0_32, %c0_33] : memref<9x8x8xf32, #tpu.memory_space<vmem>>, vector<1x8x8xf32>
    %85 = vector.shape_cast %84 : vector<1x8x8xf32> to vector<8x8xf32>
    %cst_34 = arith.constant dense<0.000000e+00> : vector<256x8xf32>
    %86 = tpu.matmul %83, %85, %cst_34 {dimension_numbers = #tpu.dot_dimension_numbers<[1], [0], [0], [1], [0, 0, 1, 1], [], []>} : vector<256x8xf32>, vector<8x8xf32>, vector<256x8xf32> -> vector<256x8xf32>
    %87 = arith.addf %78, %86 : vector<256x8xf32>
    %c15_i32 = arith.constant 15 : i32
    %88 = tpu.dynamic_rotate %24 by %c15_i32 dim 0 : vector<256x8xf32>, i32 -> vector<256x8xf32>
    %89 = arith.andi %63, %61 : vector<256x1xi1>
    %cst_35 = arith.constant 0.000000e+00 : f32
    %90 = vector.shape_cast %89 : vector<256x1xi1> to vector<256x1xi1>
    %91 = vector.broadcast %90 : vector<256x1xi1> to vector<256x8xi1>
    %92 = vector.broadcast %cst_35 : f32 to vector<256x8xf32>
    %93 = arith.select %91, %88, %92 : vector<256x8xi1>, vector<256x8xf32>
    %c2 = arith.constant 2 : index
    %c0_36 = arith.constant 0 : index
    %c0_37 = arith.constant 0 : index
    %94 = vector.load %arg6[%c2, %c0_36, %c0_37] : memref<9x8x8xf32, #tpu.memory_space<vmem>>, vector<1x8x8xf32>
    %95 = vector.shape_cast %94 : vector<1x8x8xf32> to vector<8x8xf32>
    %cst_38 = arith.constant dense<0.000000e+00> : vector<256x8xf32>
    %96 = tpu.matmul %93, %95, %cst_38 {dimension_numbers = #tpu.dot_dimension_numbers<[1], [0], [0], [1], [0, 0, 1, 1], [], []>} : vector<256x8xf32>, vector<8x8xf32>, vector<256x8xf32> -> vector<256x8xf32>
    %97 = arith.addf %87, %96 : vector<256x8xf32>
    %c1_i32_39 = arith.constant 1 : i32
    %98 = tpu.dynamic_rotate %24 by %c1_i32_39 dim 0 : vector<256x8xf32>, i32 -> vector<256x8xf32>
    %cst_40 = arith.constant 0.000000e+00 : f32
    %99 = vector.shape_cast %59 : vector<256x1xi1> to vector<256x1xi1>
    %100 = vector.broadcast %99 : vector<256x1xi1> to vector<256x8xi1>
    %101 = vector.broadcast %cst_40 : f32 to vector<256x8xf32>
    %102 = arith.select %100, %98, %101 : vector<256x8xi1>, vector<256x8xf32>
    %c3 = arith.constant 3 : index
    %c0_41 = arith.constant 0 : index
    %c0_42 = arith.constant 0 : index
    %103 = vector.load %arg6[%c3, %c0_41, %c0_42] : memref<9x8x8xf32, #tpu.memory_space<vmem>>, vector<1x8x8xf32>
    %104 = vector.shape_cast %103 : vector<1x8x8xf32> to vector<8x8xf32>
    %cst_43 = arith.constant dense<0.000000e+00> : vector<256x8xf32>
    %105 = tpu.matmul %102, %104, %cst_43 {dimension_numbers = #tpu.dot_dimension_numbers<[1], [0], [0], [1], [0, 0, 1, 1], [], []>} : vector<256x8xf32>, vector<8x8xf32>, vector<256x8xf32> -> vector<256x8xf32>
    %106 = arith.addf %97, %105 : vector<256x8xf32>
    %c255_i32 = arith.constant 255 : i32
    %107 = tpu.dynamic_rotate %24 by %c255_i32 dim 0 : vector<256x8xf32>, i32 -> vector<256x8xf32>
    %cst_44 = arith.constant 0.000000e+00 : f32
    %108 = vector.shape_cast %61 : vector<256x1xi1> to vector<256x1xi1>
    %109 = vector.broadcast %108 : vector<256x1xi1> to vector<256x8xi1>
    %110 = vector.broadcast %cst_44 : f32 to vector<256x8xf32>
    %111 = arith.select %109, %107, %110 : vector<256x8xi1>, vector<256x8xf32>
    %c5 = arith.constant 5 : index
    %c0_45 = arith.constant 0 : index
    %c0_46 = arith.constant 0 : index
    %112 = vector.load %arg6[%c5, %c0_45, %c0_46] : memref<9x8x8xf32, #tpu.memory_space<vmem>>, vector<1x8x8xf32>
    %113 = vector.shape_cast %112 : vector<1x8x8xf32> to vector<8x8xf32>
    %cst_47 = arith.constant dense<0.000000e+00> : vector<256x8xf32>
    %114 = tpu.matmul %111, %113, %cst_47 {dimension_numbers = #tpu.dot_dimension_numbers<[1], [0], [0], [1], [0, 0, 1, 1], [], []>} : vector<256x8xf32>, vector<8x8xf32>, vector<256x8xf32> -> vector<256x8xf32>
    %115 = arith.addf %106, %114 : vector<256x8xf32>
    %c241_i32 = arith.constant 241 : i32
    %116 = tpu.dynamic_rotate %24 by %c241_i32 dim 0 : vector<256x8xf32>, i32 -> vector<256x8xf32>
    %117 = arith.andi %65, %59 : vector<256x1xi1>
    %cst_48 = arith.constant 0.000000e+00 : f32
    %118 = vector.shape_cast %117 : vector<256x1xi1> to vector<256x1xi1>
    %119 = vector.broadcast %118 : vector<256x1xi1> to vector<256x8xi1>
    %120 = vector.broadcast %cst_48 : f32 to vector<256x8xf32>
    %121 = arith.select %119, %116, %120 : vector<256x8xi1>, vector<256x8xf32>
    %c6 = arith.constant 6 : index
    %c0_49 = arith.constant 0 : index
    %c0_50 = arith.constant 0 : index
    %122 = vector.load %arg6[%c6, %c0_49, %c0_50] : memref<9x8x8xf32, #tpu.memory_space<vmem>>, vector<1x8x8xf32>
    %123 = vector.shape_cast %122 : vector<1x8x8xf32> to vector<8x8xf32>
    %cst_51 = arith.constant dense<0.000000e+00> : vector<256x8xf32>
    %124 = tpu.matmul %121, %123, %cst_51 {dimension_numbers = #tpu.dot_dimension_numbers<[1], [0], [0], [1], [0, 0, 1, 1], [], []>} : vector<256x8xf32>, vector<8x8xf32>, vector<256x8xf32> -> vector<256x8xf32>
    %125 = arith.addf %115, %124 : vector<256x8xf32>
    %c240_i32_52 = arith.constant 240 : i32
    %126 = tpu.dynamic_rotate %24 by %c240_i32_52 dim 0 : vector<256x8xf32>, i32 -> vector<256x8xf32>
    %cst_53 = arith.constant 0.000000e+00 : f32
    %127 = vector.shape_cast %65 : vector<256x1xi1> to vector<256x1xi1>
    %128 = vector.broadcast %127 : vector<256x1xi1> to vector<256x8xi1>
    %129 = vector.broadcast %cst_53 : f32 to vector<256x8xf32>
    %130 = arith.select %128, %126, %129 : vector<256x8xi1>, vector<256x8xf32>
    %c7 = arith.constant 7 : index
    %c0_54 = arith.constant 0 : index
    %c0_55 = arith.constant 0 : index
    %131 = vector.load %arg6[%c7, %c0_54, %c0_55] : memref<9x8x8xf32, #tpu.memory_space<vmem>>, vector<1x8x8xf32>
    %132 = vector.shape_cast %131 : vector<1x8x8xf32> to vector<8x8xf32>
    %cst_56 = arith.constant dense<0.000000e+00> : vector<256x8xf32>
    %133 = tpu.matmul %130, %132, %cst_56 {dimension_numbers = #tpu.dot_dimension_numbers<[1], [0], [0], [1], [0, 0, 1, 1], [], []>} : vector<256x8xf32>, vector<8x8xf32>, vector<256x8xf32> -> vector<256x8xf32>
    %134 = arith.addf %125, %133 : vector<256x8xf32>
    %c239_i32 = arith.constant 239 : i32
    %135 = tpu.dynamic_rotate %24 by %c239_i32 dim 0 : vector<256x8xf32>, i32 -> vector<256x8xf32>
    %136 = arith.andi %65, %61 : vector<256x1xi1>
    %cst_57 = arith.constant 0.000000e+00 : f32
    %137 = vector.shape_cast %136 : vector<256x1xi1> to vector<256x1xi1>
    %138 = vector.broadcast %137 : vector<256x1xi1> to vector<256x8xi1>
    %139 = vector.broadcast %cst_57 : f32 to vector<256x8xf32>
    %140 = arith.select %138, %135, %139 : vector<256x8xi1>, vector<256x8xf32>
    %c8 = arith.constant 8 : index
    %c0_58 = arith.constant 0 : index
    %c0_59 = arith.constant 0 : index
    %141 = vector.load %arg6[%c8, %c0_58, %c0_59] : memref<9x8x8xf32, #tpu.memory_space<vmem>>, vector<1x8x8xf32>
    %142 = vector.shape_cast %141 : vector<1x8x8xf32> to vector<8x8xf32>
    %cst_60 = arith.constant dense<0.000000e+00> : vector<256x8xf32>
    %143 = tpu.matmul %140, %142, %cst_60 {dimension_numbers = #tpu.dot_dimension_numbers<[1], [0], [0], [1], [0, 0, 1, 1], [], []>} : vector<256x8xf32>, vector<8x8xf32>, vector<256x8xf32> -> vector<256x8xf32>
    %144 = arith.addf %134, %143 : vector<256x8xf32>
    %c0_61 = arith.constant 0 : index
    %c0_62 = arith.constant 0 : index
    %145 = vector.load %arg7[%c0_61, %c0_62] : memref<1x8xf32, #tpu.memory_space<vmem>>, vector<1x8xf32>
    %146 = vector.broadcast %145 : vector<1x8xf32> to vector<256x8xf32>
    %147 = arith.addf %144, %146 : vector<256x8xf32>
    %148 = arith.negf %147 : vector<256x8xf32>
    %149 = math.exp %148 : vector<256x8xf32>
    %cst_63 = arith.constant 1.000000e+00 : f32
    %150 = vector.broadcast %cst_63 : f32 to vector<256x8xf32>
    %151 = arith.addf %150, %149 : vector<256x8xf32>
    %152 = arith.divf %150, %151 : vector<256x8xf32>
    %153 = arith.mulf %147, %152 : vector<256x8xf32>
    %c0_64 = arith.constant 0 : index
    %c0_65 = arith.constant 0 : index
    %154 = vector.load %arg8[%c0_64, %c0_65] : memref<8x16xf32, #tpu.memory_space<vmem>>, vector<8x16xf32>
    %cst_66 = arith.constant dense<0.000000e+00> : vector<256x16xf32>
    %155 = tpu.matmul %153, %154, %cst_66 {dimension_numbers = #tpu.dot_dimension_numbers<[1], [0], [0], [1], [0, 0, 1, 1], [], []>} : vector<256x8xf32>, vector<8x16xf32>, vector<256x16xf32> -> vector<256x16xf32>
    %c0_67 = arith.constant 0 : index
    %c0_68 = arith.constant 0 : index
    %156 = vector.load %arg9[%c0_67, %c0_68] : memref<8x16xf32, #tpu.memory_space<vmem>>, vector<8x16xf32>
    %cst_69 = arith.constant dense<0.000000e+00> : vector<256x16xf32>
    %157 = tpu.matmul %13, %156, %cst_69 {dimension_numbers = #tpu.dot_dimension_numbers<[1], [0], [0], [1], [0, 0, 1, 1], [], []>} : vector<256x8xf32>, vector<8x16xf32>, vector<256x16xf32> -> vector<256x16xf32>
    %158 = arith.addf %155, %157 : vector<256x16xf32>
    %c0_70 = arith.constant 0 : index
    %c0_71 = arith.constant 0 : index
    %159 = vector.load %arg10[%c0_70, %c0_71] : memref<1x16xf32, #tpu.memory_space<vmem>>, vector<1x16xf32>
    %160 = vector.broadcast %159 : vector<1x16xf32> to vector<256x16xf32>
    %161 = arith.addf %158, %160 : vector<256x16xf32>
    %162 = arith.negf %161 : vector<256x16xf32>
    %163 = math.exp %162 : vector<256x16xf32>
    %cst_72 = arith.constant 1.000000e+00 : f32
    %164 = vector.broadcast %cst_72 : f32 to vector<256x16xf32>
    %165 = arith.addf %164, %163 : vector<256x16xf32>
    %166 = arith.divf %164, %165 : vector<256x16xf32>
    %167 = arith.mulf %161, %166 : vector<256x16xf32>
    %c0_73 = arith.constant 0 : index
    %c0_74 = arith.constant 0 : index
    %168 = vector.load %arg11[%c0_73, %c0_74] : memref<256x16xf32, #tpu.memory_space<vmem>>, vector<256x16xf32>
    tpu.vector_store %arg11[%c0_73, %c0_74], %167 {strides = array<i32>} : memref<256x16xf32, #tpu.memory_space<vmem>>, vector<256x16xf32>,
    return
  }
  func.func @transform_0(%arg0: i32) -> (i32, i32) {
    %c0_i32 = arith.constant 0 : i32
    %c0_i32_0 = arith.constant 0 : i32
    return %arg0, %c0_i32 : i32, i32
  }
  func.func @transform_1(%arg0: i32) -> (i32, i32) {
    %c0_i32 = arith.constant 0 : i32
    %c0_i32_0 = arith.constant 0 : i32
    %c0_i32_1 = arith.constant 0 : i32
    return %c0_i32, %c0_i32_0 : i32, i32
  }
  func.func @transform_2(%arg0: i32) -> (i32, i32) {
    %c0_i32 = arith.constant 0 : i32
    %c0_i32_0 = arith.constant 0 : i32
    %c0_i32_1 = arith.constant 0 : i32
    return %c0_i32, %c0_i32_0 : i32, i32
  }
  func.func @transform_3(%arg0: i32) -> (i32, i32) {
    %c0_i32 = arith.constant 0 : i32
    %c0_i32_0 = arith.constant 0 : i32
    %c0_i32_1 = arith.constant 0 : i32
    return %c0_i32, %c0_i32_0 : i32, i32
  }
  func.func @transform_4(%arg0: i32) -> (i32, i32) {
    %c0_i32 = arith.constant 0 : i32
    %c0_i32_0 = arith.constant 0 : i32
    %c0_i32_1 = arith.constant 0 : i32
    return %c0_i32, %c0_i32_0 : i32, i32
  }
  func.func @transform_5(%arg0: i32) -> (i32, i32, i32) {
    %c0_i32 = arith.constant 0 : i32
    %c0_i32_0 = arith.constant 0 : i32
    %c0_i32_1 = arith.constant 0 : i32
    %c0_i32_2 = arith.constant 0 : i32
    return %c0_i32, %c0_i32_0, %c0_i32_1 : i32, i32, i32
  }
  func.func @transform_6(%arg0: i32) -> (i32, i32) {
    %c0_i32 = arith.constant 0 : i32
    %c0_i32_0 = arith.constant 0 : i32
    %c0_i32_1 = arith.constant 0 : i32
    return %c0_i32, %c0_i32_0 : i32, i32
  }
  func.func @transform_7(%arg0: i32) -> (i32, i32) {
    %c0_i32 = arith.constant 0 : i32
    %c0_i32_0 = arith.constant 0 : i32
    %c0_i32_1 = arith.constant 0 : i32
    return %c0_i32, %c0_i32_0 : i32, i32
  }
  func.func @transform_8(%arg0: i32) -> (i32, i32) {
    %c0_i32 = arith.constant 0 : i32
    %c0_i32_0 = arith.constant 0 : i32
    %c0_i32_1 = arith.constant 0 : i32
    return %c0_i32, %c0_i32_0 : i32, i32
  }
  func.func @transform_9(%arg0: i32) -> (i32, i32) {
    %c0_i32 = arith.constant 0 : i32
    %c0_i32_0 = arith.constant 0 : i32
    %c0_i32_1 = arith.constant 0 : i32
    return %c0_i32, %c0_i32_0 : i32, i32
  }
  func.func @transform_10(%arg0: i32) -> (i32, i32) {
    %c0_i32 = arith.constant 0 : i32
    %c0_i32_0 = arith.constant 0 : i32
    return %arg0, %c0_i32 : i32, i32
  }
}

</mosaic_0001>

<bundles_post_ra>
// kernel: tpu_custom_call.1
= control target key start
LH: loop header
LB: loop body
LE: loop exit
PB: predicated region body
PF: predicated region fallthrough
CT: control target
= control target key end

     0   :  { %s10398_s13 = smov 0   ;;  %s13339_s0 = inlined_call_operand.vmem [shape: f32[512,16], index: 0, kind: input, shape index: {}]   ;;  %s13340_s1 = inlined_call_operand.vmem [shape: f32[16,16], index: 1, kind: input, shape index: {}]   ;;  %s13341_s2 = inlined_call_operand.vmem [shape: f32[1,16], index: 2, kind: input, shape index: {}]   ;;  %s13342_s3 = inlined_call_operand.vmem [shape: f32[8,8], index: 3, kind: input, shape index: {}]   ;;  %s13343_s4 = inlined_call_operand.vmem [shape: f32[1,8], index: 4, kind: input, shape index: {}]   ;;  %s13344_s5 = inlined_call_operand.vmem [shape: f32[9,8,8], index: 5, kind: input, shape index: {}]   ;;  %s13345_s6 = inlined_call_operand.vmem [shape: f32[1,8], index: 6, kind: input, shape index: {}]   ;;  %s13346_s7 = inlined_call_operand.vmem [shape: f32[8,16], index: 7, kind: input, shape index: {}]   ;;  %s13347_s8 = inlined_call_operand.vmem [shape: f32[8,16], index: 8, kind: input, shape index: {}]   ;;  %s13348_s9 = inlined_call_operand.vmem [shape: f32[1,16], index: 9, kind: input, shape index: {}]   ;;  %s13349_s10 = inlined_call_operand.vmem [shape: f32[512,16], index: 10, kind: output, shape index: {}]  }
   0x1 LB: > { %s7879_s14 = sadd.s32 4294967295, %s10339_s13   ;;  %p7883_p0 = scmp.ge.s32.totalorder %s10339_s13, 1  ;;  %s10339_s13 = sphi %s10398_s13, %s20_s13  }
   0x2   : > { %p313_p1 = scmp.lt.s32.totalorder %s10339_s13, 3 }
   0x4   : > { %p314_p2 = pnand %p7883_p0, %p313_p1 }
   0x6   : > { %317 = sbr.rel (%p314_p2) target bundleno = 1479 (0x5c7), region = 60 }
   0xd   : > { %v395_v0 = vld [vmem:[%s13340_s1] sm:$0xff]  ;;  %v396_v1 = vld [vmem:[%s13340_s1 + $0x8] sm:$0xff]  ;;  %s7884_s19 = sshll.u32 %s7879_s14, 5  ;;  %vm13423_vm0 = vcmask 130048   ;;  %vm13437_vm1 = vcmask 64512   ;;  %s10341_s28 = smov 120  }
   0xe   : > { %v9516_v2 = vpack.c.bf16 %v396_v1, %v395_v0  ;;  %p352_p3 = scmp.lt.s32.totalorder %s7884_s19, 63  ;;  %v950_v3 = vld [vmem:[%s13342_s3] sm:$0xff] }
   0xf   : > { %v10492_v36 = vld [vmem:[%s13341_s2] ss:$0 sm:$0xff] }
  0x10   : > { %9517 = vmatprep.subr.bf16.mxu0 %v9516_v2  ;;  %s14597_s19 = smov (!%p352_p3, %s7884_s19), 63 }
  0x11   : > { %9519 = vmatpush3.bf16.msra.mxu0 %v9516_v2  ;;  %s7885_s22 = sshll.u32 %s14597_s19, 3 }
  0x12   : > { %8916 = vmatprep.subr.mxu0 %v950_v3  ;;  %s10423_s25 = scalar_lea.vmem %s13339_s0, %s7885_s22  ;;  %s13161_s27 = scalar_lea.vmem %s13349_s10, %s7885_s22 }
  0x13   : > { %v363_v4 = vld [vmem:[%s10423_s25] sm:$0xff]  ;;  %v364_v5 = vld [vmem:[%s10423_s25 + $0x8] sm:$0xff]  ;;  %v365_v6 = vld [vmem:[%s10423_s25 + $0x10] sm:$0xff] }
  0x14   : > { %8868 = vmatprep.mubr.msk.f32.mxu0 %vm13423_vm0, %v363_v4  ;;  %v366_v7 = vld [vmem:[%s10423_s25 + $0x18] sm:$0xff]  ;;  %v367_v8 = vld [vmem:[%s10423_s25 + $0x20] sm:$0xff]  ;;  %v368_v9 = vld [vmem:[%s10423_s25 + $0x28] sm:$0xff] }
  0x15   : > { %8869 = vmatmul.mubr.msk.f32.vlgmr.msra.gmra.mrb[0].mxu0 %vm13423_vm0, %v364_v5  ;;  %v369_v10 = vld [vmem:[%s10423_s25 + $0x30] sm:$0xff]  ;;  %v370_v11 = vld [vmem:[%s10423_s25 + $0x38] sm:$0xff]  ;;  %v371_v12 = vld [vmem:[%s10423_s25 + $0x40] sm:$0xff] }
  0x16   : > { %8871 = vmatprep.mubr.msk.f32.mxu0 %vm13423_vm0, %v365_v6  ;;  %8917 = vmatpush3.msra.mxu0 %v950_v3  ;;  %v372_v13 = vld [vmem:[%s10423_s25 + $0x48] sm:$0xff]  ;;  %v373_v14 = vld [vmem:[%s10423_s25 + $0x50] sm:$0xff]  ;;  %v374_v15 = vld [vmem:[%s10423_s25 + $0x58] sm:$0xff] }
  0x17   : > { %v375_v16 = vld [vmem:[%s10423_s25 + $0x60] sm:$0xff]  ;;  %v376_v17 = vld [vmem:[%s10423_s25 + $0x68] sm:$0xff]  ;;  %v377_v18 = vld [vmem:[%s10423_s25 + $0x70] sm:$0xff] }
  0x18   : > { %v378_v19 = vld [vmem:[%s10423_s25 + $0x78] sm:$0xff]  ;;  %v379_v20 = vld [vmem:[%s10423_s25 + $0x80] sm:$0xff]  ;;  %v380_v21 = vld [vmem:[%s10423_s25 + $0x88] sm:$0xff] }
  0x19   : > { %8872 = vmatmul.mubr.msk.f32.gmra.mrb[2].mxu0 %vm13423_vm0, %v366_v7  ;;  %v381_v22 = vld [vmem:[%s10423_s25 + $0x90] sm:$0xff]  ;;  %v382_v23 = vld [vmem:[%s10423_s25 + $0x98] sm:$0xff]  ;;  %v383_v24 = vld [vmem:[%s10423_s25 + $0xa0] sm:$0xff] }
  0x1a   : > { %8874 = vmatprep.mubr.msk.f32.mxu0 %vm13423_vm0, %v367_v8  ;;  %v384_v25 = vld [vmem:[%s10423_s25 + $0xa8] sm:$0xff]  ;;  %v385_v26 = vld [vmem:[%s10423_s25 + $0xb0] sm:$0xff]  ;;  %v386_v27 = vld [vmem:[%s10423_s25 + $0xb8] sm:$0xff] }
  0x1b   : > { %v387_v28 = vld [vmem:[%s10423_s25 + $0xc0] sm:$0xff]  ;;  %v388_v29 = vld [vmem:[%s10423_s25 + $0xc8] sm:$0xff]  ;;  %v389_v30 = vld [vmem:[%s10423_s25 + $0xd0] sm:$0xff] }
  0x1c   : > { %v390_v31 = vld [vmem:[%s10423_s25 + $0xd8] sm:$0xff]  ;;  %v391_v32 = vld [vmem:[%s10423_s25 + $0xe0] sm:$0xff]  ;;  %v392_v33 = vld [vmem:[%s10423_s25 + $0xe8] sm:$0xff] }
  0x1d   : > { %8875 = vmatmul.mubr.msk.f32.gmra.mrb[4].mxu0 %vm13423_vm0, %v368_v9  ;;  %v393_v34 = vld [vmem:[%s10423_s25 + $0xf0] sm:$0xff]  ;;  %v394_v35 = vld [vmem:[%s10423_s25 + $0xf8] sm:$0xff] }
  0x1e   : > { %8877 = vmatprep.mubr.msk.f32.mxu0 %vm13423_vm0, %v369_v10 }
  0x21   : > { %8878 = vmatmul.mubr.msk.f32.gmra.mrb[6].mxu0 %vm13423_vm0, %v370_v11 }
  0x22   : > { %8880 = vmatprep.mubr.msk.f32.mxu0 %vm13423_vm0, %v371_v12 }
  0x25   : > { %8881 = vmatmul.mubr.msk.f32.gmra.mrb[8].mxu0 %vm13423_vm0, %v372_v13 }
  0x26   : > { %8883 = vmatprep.mubr.msk.f32.mxu0 %vm13423_vm0, %v373_v14 }
  0x29   : > { %8884 = vmatmul.mubr.msk.f32.gmra.mrb[10].mxu0 %vm13423_vm0, %v374_v15 }
  0x2a   : > { %8886 = vmatprep.mubr.msk.f32.mxu0 %vm13423_vm0, %v375_v16 }
  0x2d   : > { %8887 = vmatmul.mubr.msk.f32.gmra.mrb[12].mxu0 %vm13423_vm0, %v376_v17 }
  0x2e   : > { %8889 = vmatprep.mubr.msk.f32.mxu0 %vm13423_vm0, %v377_v18 }
  0x31   : > { %8890 = vmatmul.mubr.msk.f32.gmra.mrb[14].mxu0 %vm13423_vm0, %v378_v19 }
  0x32   : > { %8892 = vmatprep.mubr.msk.f32.mxu0 %vm13423_vm0, %v379_v20 }
  0x35   : > { %8893 = vmatmul.mubr.msk.f32.gmra.mrb[16].mxu0 %vm13423_vm0, %v380_v21 }
  0x36   : > { %8895 = vmatprep.mubr.msk.f32.mxu0 %vm13423_vm0, %v381_v22 }
  0x39   : > { %8896 = vmatmul.mubr.msk.f32.gmra.mrb[18].mxu0 %vm13423_vm0, %v382_v23 }
  0x3a   : > { %8898 = vmatprep.mubr.msk.f32.mxu0 %vm13423_vm0, %v383_v24 }
  0x3d   : > { %8899 = vmatmul.mubr.msk.f32.gmra.mrb[20].mxu0 %vm13423_vm0, %v384_v25 }
  0x3e   : > { %8901 = vmatprep.mubr.msk.f32.mxu0 %vm13423_vm0, %v385_v26 }
  0x41   : > { %8902 = vmatmul.mubr.msk.f32.gmra.mrb[22].mxu0 %vm13423_vm0, %v386_v27 }
  0x42   : > { %8904 = vmatprep.mubr.msk.f32.mxu0 %vm13423_vm0, %v387_v28 }
  0x45   : > { %8905 = vmatmul.mubr.msk.f32.gmra.mrb[24].mxu0 %vm13423_vm0, %v388_v29 }
  0x46   : > { %8907 = vmatprep.mubr.msk.f32.mxu0 %vm13423_vm0, %v389_v30 }
  0x49   : > { %8908 = vmatmul.mubr.msk.f32.gmra.mrb[26].mxu0 %vm13423_vm0, %v390_v31 }
  0x4a   : > { %8910 = vmatprep.mubr.msk.f32.mxu0 %vm13423_vm0, %v391_v32 }
  0x4d   : > { %8911 = vmatmul.mubr.msk.f32.gmra.mrb[28].mxu0 %vm13423_vm0, %v392_v33 }
  0x4e   : > { %8913 = vmatprep.mubr.msk.f32.mxu0 %vm13423_vm0, %v393_v34 }
  0x51   : > { %8914 = vmatmul.mubr.msk.f32.gmra.mrb[30].mxu0 %vm13423_vm0, %v394_v35 }
  0xe8   : > { %v8870_v37 = vpop.f32.mrb[0].mxu0 }
  0xe9   : > { %v10495_v38 = vadd.f32 %v8870_v37, %v10492_v36  ;;  %v567_v39 = vpop.f32.mrb[1].mxu0 }
  0xea   : > { %v10498_v40 = vadd.f32 %v10492_v36, %v567_v39 }
  0xeb   : > { %v7922_v41 = vmul.f32 -1.442695, %v10495_v38 }
  0xec   : > { %v7921_v42 = vmul.f32 -1.442695, %v10498_v40  ;;  %v8873_v43 = vpop.f32.mrb[2].mxu0 }
  0xed   : > { %9820 = vpow2.f32 %v7922_v41  ;;  %v10503_v44 = vadd.f32 %v8873_v43, %v10492_v36  ;;  %v577_v45 = vpop.f32.mrb[3].mxu0 }
  0xee   : > { %9822 = vpow2.f32 %v7921_v42  ;;  %v10506_v46 = vadd.f32 %v10492_v36, %v577_v45 }
  0xef   : > { %v7924_v47 = vmul.f32 -1.442695, %v10503_v44 }
  0xf0   : > { %v7923_v48 = vmul.f32 -1.442695, %v10506_v46  ;;  %v8876_v49 = vpop.f32.mrb[4].mxu0 }
  0xf1   : > { %9824 = vpow2.f32 %v7924_v47  ;;  %v10511_v50 = vadd.f32 %v8876_v49, %v10492_v36  ;;  %v587_v51 = vpop.f32.mrb[5].mxu0 }
  0xf2   : > { %9826 = vpow2.f32 %v7923_v48  ;;  %v10514_v52 = vadd.f32 %v10492_v36, %v587_v51 }
  0xf3   : > { %v7926_v53 = vmul.f32 -1.442695, %v10511_v50 }
  0xf4   : > { %v7925_v54 = vmul.f32 -1.442695, %v10514_v52  ;;  %v8879_v55 = vpop.f32.mrb[6].mxu0 }
  0xf5   : > { %9828 = vpow2.f32 %v7926_v53  ;;  %v10519_v56 = vadd.f32 %v8879_v55, %v10492_v36  ;;  %v597_v57 = vpop.f32.mrb[7].mxu0 }
  0xf6   : > { %9830 = vpow2.f32 %v7925_v54  ;;  %v10522_v58 = vadd.f32 %v10492_v36, %v597_v57 }
  0xf7   : > { %v9821_v59 = vpop.eup %9820  ;;  %v7928_v60 = vmul.f32 -1.442695, %v10519_v56 }
  0xf8   : > { %v9823_v61 = vpop.eup %9822  ;;  %v823_v62 = vadd.f32 1.0, %v9821_v59  ;;  %v7927_v63 = vmul.f32 -1.442695, %v10522_v58  ;;  %v8882_v0 = vpop.f32.mrb[8].mxu0 }
  0xf9   : > { %v822_v1 = vadd.f32 1.0, %v9823_v61  ;;  %9832 = vpow2.f32 %v7928_v60  ;;  %v10527_v2 = vadd.f32 %v8882_v0, %v10492_v36  ;;  %v607_v3 = vpop.f32.mrb[9].mxu0 }
  0xfa   : > { %9834 = vrcp.f32 %v823_v62  ;;  %v10530_v4 = vadd.f32 %v10492_v36, %v607_v3 }
  0xfb   : > { %v9825_v5 = vpop.eup %9824  ;;  %9836 = vrcp.f32 %v822_v1  ;;  %v7930_v6 = vmul.f32 -1.442695, %v10527_v2 }
  0xfc   : > { %v9827_v7 = vpop.eup %9826  ;;  %v825_v8 = vadd.f32 1.0, %v9825_v5  ;;  %9838 = vpow2.f32 %v7927_v63  ;;  %v7929_v9 = vmul.f32 -1.442695, %v10530_v4  ;;  %v8885_v10 = vpop.f32.mrb[10].mxu0 }
  0xfd   : > { %v824_v11 = vadd.f32 1.0, %v9827_v7  ;;  %9840 = vpow2.f32 %v7930_v6  ;;  %v10535_v12 = vadd.f32 %v8885_v10, %v10492_v36  ;;  %v617_v13 = vpop.f32.mrb[11].mxu0 }
  0xfe   : > { %9842 = vrcp.f32 %v825_v8  ;;  %v10538_v14 = vadd.f32 %v10492_v36, %v617_v13 }
  0xff   : > { %v9829_v15 = vpop.eup %9828  ;;  %9844 = vrcp.f32 %v824_v11  ;;  %v7932_v16 = vmul.f32 -1.442695, %v10535_v12 }
 0x100   : > { %v9831_v17 = vpop.eup %9830  ;;  %v827_v18 = vadd.f32 1.0, %v9829_v15  ;;  %9846 = vpow2.f32 %v7929_v9  ;;  %v7931_v19 = vmul.f32 -1.442695, %v10538_v14  ;;  %v8888_v20 = vpop.f32.mrb[12].mxu0 }
 0x101   : > { %v826_v21 = vadd.f32 1.0, %v9831_v17  ;;  %9848 = vpow2.f32 %v7932_v16  ;;  %v10543_v22 = vadd.f32 %v8888_v20, %v10492_v36  ;;  %v627_v23 = vpop.f32.mrb[13].mxu0 }
 0x102   : > { %9850 = vrcp.f32 %v827_v18  ;;  %v10546_v24 = vadd.f32 %v10492_v36, %v627_v23 }
 0x103   : > { %v9833_v25 = vpop.eup %9832  ;;  %9852 = vrcp.f32 %v826_v21  ;;  %v7934_v26 = vmul.f32 -1.442695, %v10543_v22 }
 0x104   : > { %v9835_v27 = vpop.eup %9834  ;;  %v829_v28 = vadd.f32 1.0, %v9833_v25  ;;  %9854 = vpow2.f32 %v7931_v19  ;;  %v7933_v29 = vmul.f32 -1.442695, %v10546_v24  ;;  %v8891_v30 = vpop.f32.mrb[14].mxu0 }
 0x105   : > { %v9837_v31 = vpop.eup %9836  ;;  %9856 = vpow2.f32 %v7934_v26  ;;  %v10551_v32 = vadd.f32 %v8891_v30, %v10492_v36  ;;  %v637_v33 = vpop.f32.mrb[15].mxu0  ;;  %v919_v41 = vmul.f32 %v9835_v27, %v10495_v38 }
 0x106   : > { %v9839_v34 = vpop.eup %9838  ;;  %v10554_v35 = vadd.f32 %v10492_v36, %v637_v33  ;;  %v918_v37 = vmul.f32 %v9837_v31, %v10498_v40  ;;  %9858 = vpow2.f32 %v7933_v29 }
 0x107   : > { %v9841_v39 = vpop.eup %9840  ;;  %v828_v42 = vadd.f32 1.0, %v9839_v34  ;;  %v7936_v43 = vmul.f32 -1.442695, %v10551_v32  ;;  %9860 = vrcp.f32 %v829_v28 }
 0x108   : > { %v9843_v45 = vpop.eup %9842  ;;  %v831_v47 = vadd.f32 1.0, %v9841_v39  ;;  %v7935_v48 = vmul.f32 -1.442695, %v10554_v35  ;;  %v8894_v49 = vpop.f32.mrb[16].mxu0  ;;  %6854 = vrot.lane.b32.xlu0 %v918_v37, %s10341_s28  ;;  %8918 = vmatprep.mubr.msk.f32.mxu0 %vm13437_vm1, %v918_v37 }
 0x109   : > { %v9845_v51 = vpop.eup %9844  ;;  %9862 = vrcp.f32 %v828_v42  ;;  %v10563_v40 = vadd.f32 %v8894_v49, %v10492_v36  ;;  %v647_v38 = vpop.f32.mrb[17].mxu0  ;;  %8919 = vmatmul.mubr.msk.f32.vlgmr.msra.gmra.mrb[32].mxu0 %vm13437_vm1, %v919_v41  ;;  %v921_v62 = vmul.f32 %v9843_v45, %v10503_v44 }
 0x10a   : > { %v9847_v53 = vpop.eup %9846  ;;  %9864 = vrcp.f32 %v831_v47  ;;  %v10567_v54 = vadd.f32 %v10492_v36, %v647_v38  ;;  %v920_v55 = vmul.f32 %v9845_v51, %v10506_v46 }
 0x10b   : > { %v9849_v57 = vpop.eup %9848  ;;  %v830_v59 = vadd.f32 1.0, %v9847_v53  ;;  %9866 = vpow2.f32 %v7936_v43  ;;  %v7938_v60 = vmul.f32 -1.442695, %v10563_v40 }
 0x10c   : > { %v9851_v61 = vpop.eup %9850  ;;  %v833_v63 = vadd.f32 1.0, %v9849_v57  ;;  %9868 = vpow2.f32 %v7935_v48  ;;  %v7937_v0 = vmul.f32 -1.442695, %v10567_v54  ;;  %v8897_v1 = vpop.f32.mrb[18].mxu0  ;;  %6858 = vrot.lane.b32.xlu1 %v920_v55, %s10341_s28  ;;  %6856 = vrot.lane.b32.xlu0 %v919_v41, %s10341_s28 }
 0x10d   : > { %v9853_v3 = vpop.eup %9852  ;;  %9870 = vrcp.f32 %v830_v59  ;;  %v10576_v46 = vadd.f32 %v8897_v1, %v10492_v36  ;;  %8921 = vmatprep.mubr.msk.f32.mxu0 %vm13437_vm1, %v920_v55  ;;  %v657_v5 = vpop.f32.mrb[19].mxu0  ;;  %v923_v11 = vmul.f32 %v9851_v61, %v10511_v50 }
 0x10e   : > { %v9855_v6 = vpop.eup %9854  ;;  %v922_v44 = vmul.f32 %v9853_v3, %v10514_v52  ;;  %9872 = vrcp.f32 %v833_v63  ;;  %v10581_v7 = vadd.f32 %v10492_v36, %v657_v5  ;;  %8922 = vmatmul.mubr.msk.f32.gmra.mrb[34].mxu0 %vm13437_vm1, %v921_v62 }
 0x10f   : > { %v9857_v8 = vpop.eup %9856  ;;  %v832_v9 = vadd.f32 1.0, %v9855_v6  ;;  %9874 = vpow2.f32 %v7938_v60  ;;  %v7940_v10 = vmul.f32 -1.442695, %v10576_v46 }
 0x110   : > { %v835_v13 = vadd.f32 1.0, %v9857_v8  ;;  %9876 = vpow2.f32 %v7937_v0  ;;  %v8900_v15 = vpop.f32.mrb[20].mxu0  ;;  %6860 = vrot.lane.b32.xlu1 %v921_v62, %s10341_s28  ;;  %6862 = vrot.lane.b32.xlu0 %v922_v44, %s10341_s28  ;;  %v9859_v52 = vpop.eup %9858  ;;  %v7939_v16 = vmul.f32 -1.442695, %v10581_v7 }
 0x111   : > { %9878 = vrcp.f32 %v832_v9  ;;  %v10590_v17 = vadd.f32 %v8900_v15, %v10492_v36  ;;  %8924 = vmatprep.mubr.msk.f32.mxu0 %vm13437_vm1, %v922_v44  ;;  %v667_v18 = vpop.f32.mrb[21].mxu0  ;;  %v9861_v19 = vpop.eup %9860  ;;  %v834_v50 = vadd.f32 1.0, %v9859_v52 }
 0x112   : > { %9880 = vrcp.f32 %v835_v13  ;;  %v10594_v20 = vadd.f32 %v10492_v36, %v667_v18  ;;  %8925 = vmatmul.mubr.msk.f32.gmra.mrb[36].mxu0 %vm13437_vm1, %v923_v11  ;;  %v925_v30 = vmul.f32 %v9861_v19, %v10519_v56 }
 0x113   : > { %v9863_v21 = vpop.eup %9862  ;;  %9882 = vpow2.f32 %v7940_v10  ;;  %v7942_v23 = vmul.f32 -1.442695, %v10590_v17 }
 0x114   : > { %v9865_v25 = vpop.eup %9864  ;;  %v924_v26 = vmul.f32 %v9863_v21, %v10522_v58  ;;  %9884 = vrcp.f32 %v834_v50  ;;  %v7941_v27 = vmul.f32 -1.442695, %v10594_v20  ;;  %v8903_v28 = vpop.f32.mrb[22].mxu0  ;;  %6864 = vrot.lane.b32.xlu1 %v923_v11, %s10341_s28 }
 0x115   : > { %v9867_v29 = vpop.eup %9866  ;;  %9886 = vpow2.f32 %v7939_v16  ;;  %v10603_v31 = vadd.f32 %v8903_v28, %v10492_v36  ;;  %v677_v33 = vpop.f32.mrb[23].mxu0  ;;  %v927_v49 = vmul.f32 %v9865_v25, %v10527_v2 }
 0x116   : > { %v9869_v34 = vpop.eup %9868  ;;  %v837_v37 = vadd.f32 1.0, %v9867_v29  ;;  %9888 = vpow2.f32 %v7942_v23  ;;  %6866 = vrot.lane.b32.xlu0 %v924_v26, %s10341_s28  ;;  %8927 = vmatprep.mubr.msk.f32.mxu0 %vm13437_vm1, %v924_v26  ;;  %v10608_v58 = vadd.f32 %v10492_v36, %v677_v33 }
 0x117   : > { %v9871_v39 = vpop.eup %9870  ;;  %v836_v41 = vadd.f32 1.0, %v9869_v34  ;;  %9890 = vpow2.f32 %v7941_v27  ;;  %v7944_v56 = vmul.f32 -1.442695, %v10603_v31  ;;  %8928 = vmatmul.mubr.msk.f32.gmra.mrb[38].mxu0 %vm13437_vm1, %v925_v30 }
 0x118   : > { %v9873_v42 = vpop.eup %9872  ;;  %v926_v43 = vmul.f32 %v9871_v39, %v10530_v4  ;;  %9892 = vrcp.f32 %v837_v37  ;;  %v7943_v45 = vmul.f32 -1.442695, %v10608_v58  ;;  %v8906_v47 = vpop.f32.mrb[24].mxu0  ;;  %6868 = vrot.lane.b32.xlu1 %v925_v30, %s10341_s28 }
 0x119   : > { %v9875_v48 = vpop.eup %9874  ;;  %9894 = vrcp.f32 %v836_v41  ;;  %v10617_v51 = vadd.f32 %v8906_v47, %v10492_v36  ;;  %v687_v38 = vpop.f32.mrb[25].mxu0  ;;  %v929_v1 = vmul.f32 %v9873_v42, %v10535_v12 }
 0x11a   : > { %v9877_v53 = vpop.eup %9876  ;;  %v839_v55 = vadd.f32 1.0, %v9875_v48  ;;  %9896 = vpow2.f32 %v7944_v56  ;;  %6870 = vrot.lane.b32.xlu0 %v926_v43, %s10341_s28  ;;  %8930 = vmatprep.mubr.msk.f32.mxu0 %vm13437_vm1, %v926_v43  ;;  %v10622_v4 = vadd.f32 %v10492_v36, %v687_v38 }
 0x11b   : > { %v9879_v57 = vpop.eup %9878  ;;  %v838_v59 = vadd.f32 1.0, %v9877_v53  ;;  %9898 = vpow2.f32 %v7943_v45  ;;  %v7946_v2 = vmul.f32 -1.442695, %v10617_v51  ;;  %8931 = vmatmul.mubr.msk.f32.gmra.mrb[40].mxu0 %vm13437_vm1, %v927_v49 }
 0x11c   : > { %v9881_v60 = vpop.eup %9880  ;;  %v928_v61 = vmul.f32 %v9879_v57, %v10538_v14  ;;  %9900 = vrcp.f32 %v839_v55  ;;  %v7945_v62 = vmul.f32 -1.442695, %v10622_v4  ;;  %v8909_v63 = vpop.f32.mrb[26].mxu0  ;;  %6872 = vrot.lane.b32.xlu1 %v927_v49, %s10341_s28 }
 0x11d   : > { %v9883_v0 = vpop.eup %9882  ;;  %9902 = vrcp.f32 %v838_v59  ;;  %v10631_v3 = vadd.f32 %v8909_v63, %v10492_v36  ;;  %v697_v5 = vpop.f32.mrb[27].mxu0  ;;  %v931_v11 = vmul.f32 %v9881_v60, %v10543_v22 }
 0x11e   : > { %v9885_v6 = vpop.eup %9884  ;;  %v841_v44 = vadd.f32 1.0, %v9883_v0  ;;  %9904 = vpow2.f32 %v7946_v2  ;;  %6874 = vrot.lane.b32.xlu0 %v928_v61, %s10341_s28  ;;  %8933 = vmatprep.mubr.msk.f32.mxu0 %vm13437_vm1, %v928_v61  ;;  %v10636_v14 = vadd.f32 %v10492_v36, %v697_v5 }
 0x11f   : > { %v9887_v8 = vpop.eup %9886  ;;  %v930_v9 = vmul.f32 %v9885_v6, %v10546_v24  ;;  %9906 = vpow2.f32 %v7945_v62  ;;  %v7948_v12 = vmul.f32 -1.442695, %v10631_v3  ;;  %8934 = vmatmul.mubr.msk.f32.gmra.mrb[42].mxu0 %vm13437_vm1, %v929_v1 }
 0x120   : > { %v9889_v10 = vpop.eup %9888  ;;  %9908 = vrcp.f32 %v841_v44  ;;  %v840_v13 = vadd.f32 1.0, %v9887_v8  ;;  %v8912_v15 = vpop.f32.mrb[28].mxu0  ;;  %6876 = vrot.lane.b32.xlu1 %v929_v1, %s10341_s28  ;;  %v7947_v18 = vmul.f32 -1.442695, %v10636_v14 }
 0x121   : > { %v9891_v52 = vpop.eup %9890  ;;  %v843_v16 = vadd.f32 1.0, %v9889_v10  ;;  %9910 = vpow2.f32 %v7948_v12  ;;  %v10645_v24 = vadd.f32 %v8912_v15, %v10492_v36  ;;  %8936 = vmatprep.mubr.msk.f32.mxu0 %vm13437_vm1, %v930_v9  ;;  %v707_v19 = vpop.f32.mrb[29].mxu0 }
 0x122   : > { %v9893_v50 = vpop.eup %9892  ;;  %9912 = vrcp.f32 %v840_v13  ;;  %v842_v21 = vadd.f32 1.0, %v9891_v52  ;;  %6878 = vrot.lane.b32.xlu0 %v930_v9, %s10341_s28  ;;  %v10650_v22 = vadd.f32 %v10492_v36, %v707_v19 }
 0x123   : > { %v9895_v23 = vpop.eup %9894  ;;  %9914 = vrcp.f32 %v843_v16  ;;  %v7950_v25 = vmul.f32 -1.442695, %v10645_v24  ;;  %8937 = vmatmul.mubr.msk.f32.gmra.mrb[44].mxu0 %vm13437_vm1, %v931_v11  ;;  %v933_v27 = vmul.f32 %v9893_v50, %v10551_v32 }
 0x124   : > { %v9897_v26 = vpop.eup %9896  ;;  %v932_v28 = vmul.f32 %v9895_v23, %v10554_v35  ;;  %9916 = vrcp.f32 %v842_v21  ;;  %v8915_v29 = vpop.f32.mrb[30].mxu0  ;;  %6880 = vrot.lane.b32.xlu1 %v931_v11, %s10341_s28  ;;  %v7949_v34 = vmul.f32 -1.442695, %v10650_v22 }
 0x125   : > { %v9899_v30 = vpop.eup %9898  ;;  %v845_v33 = vadd.f32 1.0, %v9897_v26  ;;  %9918 = vpow2.f32 %v7947_v18  ;;  %v10659_v37 = vadd.f32 %v8915_v29, %v10492_v36  ;;  %v717_v39 = vpop.f32.mrb[31].mxu0  ;;  %v13350_v26 = vmov 0.0  }
 0x126   : > { %v9901_v41 = vpop.eup %9900  ;;  %v844_v56 = vadd.f32 1.0, %v9899_v30  ;;  %9920 = vpow2.f32 %v7950_v25  ;;  %6882 = vrot.lane.b32.xlu0 %v932_v28, %s10341_s28  ;;  %8939 = vmatprep.mubr.msk.f32.mxu0 %vm13437_vm1, %v932_v28  ;;  %v10664_v32 = vadd.f32 %v10492_v36, %v717_v39  ;;  %v2628_v25 = vld [vmem:[%s13344_s5] sm:$0xff] }
 0x127   : > { %v9903_v35 = vpop.eup %9902  ;;  %9922 = vrcp.f32 %v845_v33  ;;  %v7952_v42 = vmul.f32 -1.442695, %v10659_v37  ;;  %8940 = vmatmul.mubr.msk.f32.gmra.mrb[46].mxu0 %vm13437_vm1, %v933_v27  ;;  %v935_v48 = vmul.f32 %v9901_v41, %v10563_v40  ;;  %8966 = vmatprep.subr.mxu0 %v2628_v25 }
 0x128   : > { %v9905_v43 = vpop.eup %9904  ;;  %v934_v45 = vmul.f32 %v9903_v35, %v10567_v54  ;;  %9924 = vrcp.f32 %v844_v56  ;;  %6884 = vrot.lane.b32.xlu1 %v933_v27, %s10341_s28  ;;  %v7951_v36 = vmul.f32 -1.442695, %v10664_v32  ;;  %8967 = vmatpush3.msra.mxu0 %v2628_v25  ;;  %v10739_v27 = vld [vmem:[%s13343_s4] ss:$0 sm:$0xff] }
 0x129   : > { %v9907_v47 = vpop.eup %9906  ;;  %v847_v49 = vadd.f32 1.0, %v9905_v43  ;;  %9926 = vpow2.f32 %v7949_v34 }
 0x12a   : > { %v9909_v38 = vpop.eup %9908  ;;  %v846_v53 = vadd.f32 1.0, %v9907_v47  ;;  %9928 = vpow2.f32 %v7952_v42  ;;  %6886 = vrot.lane.b32.xlu0 %v934_v45, %s10341_s28  ;;  %8942 = vmatprep.mubr.msk.f32.mxu0 %vm13437_vm1, %v934_v45 }
 0x12b   : > { %v9911_v55 = vpop.eup %9910  ;;  %9930 = vrcp.f32 %v847_v49  ;;  %8943 = vmatmul.mubr.msk.f32.gmra.mrb[48].mxu0 %vm13437_vm1, %v935_v48  ;;  %v937_v60 = vmul.f32 %v9909_v38, %v10576_v46 }
 0x12c   : > { %v9913_v54 = vpop.eup %9912  ;;  %9932 = vrcp.f32 %v846_v53  ;;  %6888 = vrot.lane.b32.xlu1 %v935_v48, %s10341_s28  ;;  %v849_v59 = vadd.f32 1.0, %v9911_v55 }
 0x12d   : > { %v9915_v40 = vpop.eup %9914  ;;  %v936_v57 = vmul.f32 %v9913_v54, %v10581_v7  ;;  %9934 = vpow2.f32 %v7951_v36 }
 0x12e   : > { %v9917_v2 = vpop.eup %9916  ;;  %9936 = vrcp.f32 %v849_v59  ;;  %v939_v46 = vmul.f32 %v9915_v40, %v10590_v17 }
 0x12f   : > { %v9919_v61 = vpop.eup %9918  ;;  %v938_v62 = vmul.f32 %v9917_v2, %v10594_v20  ;;  %6890 = vrot.lane.b32.xlu0 %v936_v57, %s10341_s28  ;;  %8945 = vmatprep.mubr.msk.f32.mxu0 %vm13437_vm1, %v936_v57 }
 0x130   : > { %v9921_v63 = vpop.eup %9920  ;;  %v848_v0 = vadd.f32 1.0, %v9919_v61  ;;  %8946 = vmatmul.mubr.msk.f32.gmra.mrb[50].mxu0 %vm13437_vm1, %v937_v60  ;;  %6892 = vrot.lane.b32.xlu1 %v937_v60, %s10341_s28 }
 0x131   : > { %v9923_v1 = vpop.eup %9922  ;;  %v851_v7 = vadd.f32 1.0, %v9921_v63  ;;  %8948 = vmatprep.mubr.msk.f32.mxu0 %vm13437_vm1, %v938_v62 }
 0x132   : > { %v9925_v5 = vpop.eup %9924  ;;  %9938 = vrcp.f32 %v848_v0  ;;  %v941_v17 = vmul.f32 %v9923_v1, %v10603_v31 }
 0x133   : > { %v9927_v20 = vpop.eup %9926  ;;  %v940_v6 = vmul.f32 %v9925_v5, %v10608_v58  ;;  %6894 = vrot.lane.b32.xlu0 %v938_v62, %s10341_s28  ;;  %9940 = vrcp.f32 %v851_v7 }
 0x134   : > { %v9929_v44 = vpop.eup %9928  ;;  %v850_v8 = vadd.f32 1.0, %v9927_v20  ;;  %8949 = vmatmul.mubr.msk.f32.gmra.mrb[52].mxu0 %vm13437_vm1, %v939_v46  ;;  %6896 = vrot.lane.b32.xlu1 %v939_v46, %s10341_s28 }
 0x135   : > { %v9931_v9 = vpop.eup %9930  ;;  %v853_v12 = vadd.f32 1.0, %v9929_v44  ;;  %8951 = vmatprep.mubr.msk.f32.mxu0 %vm13437_vm1, %v940_v6 }
 0x136   : > { %v9933_v10 = vpop.eup %9932  ;;  %9942 = vrcp.f32 %v850_v8  ;;  %v943_v15 = vmul.f32 %v9931_v9, %v10617_v51  ;;  %v1504_v8 = vlaneseq }
 0x137   : > { %v9935_v11 = vpop.eup %9934  ;;  %v942_v58 = vmul.f32 %v9933_v10, %v10622_v4  ;;  %9944 = vrcp.f32 %v853_v12  ;;  %6898 = vrot.lane.b32.xlu0 %v940_v6, %s10341_s28 }
 0x138   : > { %v852_v13 = vadd.f32 1.0, %v9935_v11  ;;  %8952 = vmatmul.mubr.msk.f32.gmra.mrb[54].mxu0 %vm13437_vm1, %v941_v17  ;;  %6900 = vrot.lane.b32.xlu1 %v941_v17, %s10341_s28  ;;  %v9937_v52 = vpop.eup %9936 }
 0x139   : > { %8954 = vmatprep.mubr.msk.f32.mxu0 %vm13437_vm1, %v942_v58  ;;  %v945_v16 = vmul.f32 %v9937_v52, %v10631_v3 }
 0x13a   : > { %9946 = vrcp.f32 %v852_v13 }
 0x13b   : > { %6902 = vrot.lane.b32.xlu0 %v942_v58, %s10341_s28 }
 0x13c   : > { %v9939_v31 = vpop.eup %9938  ;;  %8955 = vmatmul.mubr.msk.f32.gmra.mrb[56].mxu0 %vm13437_vm1, %v943_v15  ;;  %6904 = vrot.lane.b32.xlu1 %v943_v15, %s10341_s28 }
 0x13d   : > { %v944_v4 = vmul.f32 %v9939_v31, %v10636_v14  ;;  %v9941_v18 = vpop.eup %9940  ;;  %v10787_v31 = vshrl.u32 %v1504_v8, 7 }
 0x13e   : > { %v947_v21 = vmul.f32 %v9941_v18, %v10645_v24  ;;  %v10721_v24 = vld [vmem:[%s13344_s5 + $0x8] sm:$0xff] }
 0x13f   : > { %6906 = vrot.lane.b32.xlu0 %v944_v4, %s10341_s28  ;;  %8957 = vmatprep.mubr.msk.f32.mxu0 %vm13437_vm1, %v944_v4  ;;  %v10802_v25 = vadd.s32 16, %v10787_v31  ;;  %vm13428_vm2 = vcmp.lt.s32.totalorder %v10787_v31, 7  ;;  %v10940_v8 = vadd.s32 120, %v10787_v31  ;;  %vm13427_vm4 = vcmp.lt.s32.totalorder %v10787_v31, 1 }
 0x140   : > { %v9943_v19 = vpop.eup %9942  ;;  %8958 = vmatmul.mubr.msk.f32.gmra.mrb[58].mxu0 %vm13437_vm1, %v945_v16  ;;  %6908 = vrot.lane.b32.xlu1 %v945_v16, %s10341_s28 }
 0x141   : > { %v9945_v51 = vpop.eup %9944  ;;  %v946_v50 = vmul.f32 %v9943_v19, %v10650_v22  ;;  %9520 = vmatprep.subr.mxu1 %v10721_v24  ;;  %v10728_v22 = vld [vmem:[%s13344_s5 + $0x10] sm:$0xff]  ;;  %13642 = vst [vmem:[#allocation3_spill] sm:$0xff] %v10802_v25  ;;  %13654 = vst [vmem:[#allocation13_spill] sm:$0xff] %v10940_v8  ;;  %v10995_v8 = vadd.s32 152, %v10787_v31 }
 0x142   : > { %v949_v14 = vmul.f32 %v9945_v51, %v10659_v37  ;;  %9521 = vmatpush3.msra.mxu1 %v10721_v24 }
 0x143   : > { %6910 = vrot.lane.b32.xlu0 %v946_v50, %s10341_s28  ;;  %8960 = vmatprep.mubr.msk.f32.mxu0 %vm13437_vm1, %v946_v50 }
 0x144   : > { %v9947_v3 = vpop.eup %9946  ;;  %8961 = vmatmul.mubr.msk.f32.gmra.mrb[60].mxu0 %vm13437_vm1, %v947_v21  ;;  %6912 = vrot.lane.b32.xlu1 %v947_v21, %s10341_s28 }
 0x145   : > { %v948_v23 = vmul.f32 %v9947_v3, %v10664_v32  ;;  %9116 = vmatprep.subr.mxu1 %v10728_v22 }
 0x147   : > { %8963 = vmatprep.mubr.msk.f32.mxu0 %vm13437_vm1, %v948_v23  ;;  %6914 = vrot.lane.b32.xlu0 %v948_v23, %s10341_s28 }
 0x148   : > { %8964 = vmatmul.mubr.msk.f32.gmra.mrb[62].mxu0 %vm13437_vm1, %v949_v14  ;;  %6916 = vrot.lane.b32.xlu1 %v949_v14, %s10341_s28 }
 0x149   : > { %8968 = vmatprep.mubr.f32.mxu0 %v13350_v26 }
 0x14c   : > { %8969 = vmatmul.mubr.f32.vlgmr.msra.gmra.mrb[64].mxu0 %v13350_v26 }
 0x1dc   : > { %v8920_v28 = vpop.f32.mrb[32].mxu0 }
 0x1dd   : > { %v10742_v29 = vadd.f32 %v8920_v28, %v10739_v27  ;;  %v1121_v30 = vpop.f32.mrb[33].mxu0  ;;  %v8018_v28 = vld [vmem:[%s13344_s5 + $0x20] sm:$0xff] }
 0x1de   : > { %v10745_v33 = vadd.f32 %v10739_v27, %v1121_v30  ;;  %9016 = vmatprep.subr.mxu0 %v8018_v28 }
 0x1df   : > { %v7987_v34 = vmul.f32 -1.442695, %v10742_v29  ;;  %9017 = vmatpush3.msra.mxu0 %v8018_v28  ;;  %v10932_v28 = vadd.s32 128, %v10787_v31 }
 0x1e0   : > { %v7986_v39 = vmul.f32 -1.442695, %v10745_v33  ;;  %9066 = vmatprep.subr.mxu0 %v10721_v24 }
 0x1e1   : > { %v8923_v37 = vpop.f32.mrb[34].mxu0  ;;  %9948 = vpow2.f32 %v7987_v34  ;;  %13653 = vst [vmem:[#allocation12_spill] sm:$0xff] %v10932_v28 }
 0x1e2   : > { %v10750_v41 = vadd.f32 %v8923_v37, %v10739_v27  ;;  %v1131_v56 = vpop.f32.mrb[35].mxu0  ;;  %9950 = vpow2.f32 %v7986_v39  ;;  %v10811_v37 = vadd.s32 32, %v10787_v31  ;;  %v1506_v39 = vadd.s32 8, %v10787_v31 }
 0x1e3   : > { %v10753_v32 = vadd.f32 %v10739_v27, %v1131_v56 }
 0x1e4   : > { %v7989_v35 = vmul.f32 -1.442695, %v10750_v41 }
 0x1e5   : > { %v7988_v42 = vmul.f32 -1.442695, %v10753_v32  ;;  %v8926_v43 = vpop.f32.mrb[36].mxu0 }
 0x1e6   : > { %v10758_v45 = vadd.f32 %v8926_v43, %v10739_v27  ;;  %v1141_v47 = vpop.f32.mrb[37].mxu0  ;;  %9952 = vpow2.f32 %v7989_v35 }
 0x1e7   : > { %v10761_v48 = vadd.f32 %v10739_v27, %v1141_v47  ;;  %9954 = vpow2.f32 %v7988_v42  ;;  %v10817_v42 = vadd.s32 24, %v10787_v31 }
 0x1e8   : > { %v7991_v49 = vmul.f32 -1.442695, %v10758_v45 }
 0x1e9   : > { %v7990_v36 = vmul.f32 -1.442695, %v10761_v48 }
 0x1ea   : > { %v8929_v38 = vpop.f32.mrb[38].mxu0 }
 0x1eb   : > { %9956 = vpow2.f32 %v7990_v36  ;;  %v10766_v53 = vadd.f32 %v8929_v38, %v10739_v27  ;;  %v1151_v55 = vpop.f32.mrb[39].mxu0  ;;  %v9949_v40 = vpop.eup %9948  ;;  %v10823_v38 = vadd.s32 48, %v10787_v31 }
 0x1ec   : > { %9958 = vpow2.f32 %v7991_v49  ;;  %v10769_v54 = vadd.f32 %v10739_v27, %v1151_v55  ;;  %v9951_v62 = vpop.eup %9950  ;;  %v1377_v63 = vadd.f32 1.0, %v9949_v40 }
 0x1ed   : > { %v7993_v57 = vmul.f32 -1.442695, %v10766_v53  ;;  %v1376_v6 = vadd.f32 1.0, %v9951_v62 }
 0x1ee   : > { %v7992_v59 = vmul.f32 -1.442695, %v10769_v54  ;;  %v8932_v2 = vpop.f32.mrb[40].mxu0 }
 0x1ef   : > { %v10774_v60 = vadd.f32 %v8932_v2, %v10739_v27  ;;  %v1161_v61 = vpop.f32.mrb[41].mxu0  ;;  %9960 = vpow2.f32 %v7993_v57  ;;  %v10830_v2 = vadd.s32 40, %v10787_v31 }
 0x1f0   : > { %v10777_v0 = vadd.f32 %v10739_v27, %v1161_v61  ;;  %v9953_v1 = vpop.eup %9952  ;;  %9962 = vpow2.f32 %v7992_v59 }
 0x1f1   : > { %v7995_v7 = vmul.f32 -1.442695, %v10774_v60  ;;  %v9955_v20 = vpop.eup %9954  ;;  %9964 = vrcp.f32 %v1377_v63  ;;  %v1379_v9 = vadd.f32 1.0, %v9953_v1  ;;  %v10921_v63 = vadd.s32 112, %v10787_v31 }
 0x1f2   : > { %v7994_v5 = vmul.f32 -1.442695, %v10777_v0  ;;  %v8935_v46 = vpop.f32.mrb[42].mxu0  ;;  %v1378_v17 = vadd.f32 1.0, %v9955_v20 }
 0x1f3   : > { %v1171_v44 = vpop.f32.mrb[43].mxu0  ;;  %9966 = vpow2.f32 %v7995_v7  ;;  %v10782_v58 = vadd.f32 %v8935_v46, %v10739_v27  ;;  %v10841_v46 = vadd.s32 64, %v10787_v31  ;;  %13651 = vst [vmem:[#allocation10_spill] sm:$0xff] %v10921_v63 }
 0x1f4   : > { %9968 = vpow2.f32 %v7994_v5  ;;  %v10793_v18 = vadd.f32 %v10739_v27, %v1171_v44  ;;  %v1548_v5 = vand.u32 15, %v1506_v39 }
 0x1f5   : > { %v9957_v12 = vpop.eup %9956  ;;  %13641 = vst [vmem:[#allocation2_spill] sm:$0xff] %v10782_v58  ;;  %9970 = vrcp.f32 %v1376_v6  ;;  %v7997_v51 = vmul.f32 -1.442695, %v10782_v58 }
 0x1f6   : > { %v9959_v10 = vpop.eup %9958  ;;  %v1380_v11 = vadd.f32 1.0, %v9957_v12  ;;  %v8938_v13 = vpop.f32.mrb[44].mxu0  ;;  %9972 = vrcp.f32 %v1379_v9  ;;  %v7996_v56 = vmul.f32 -1.442695, %v10793_v18  ;;  %vm10865_vm3 = vcmp.le.s32.totalorder %v1548_v5, 14 }
 0x1f7   : > { %v10785_v15 = vadd.f32 %v8938_v13, %v10739_v27  ;;  %v1181_v52 = vpop.f32.mrb[45].mxu0  ;;  %v1381_v16 = vadd.f32 1.0, %v9959_v10 }
 0x1f8   : > { %v10790_v4 = vadd.f32 %v10739_v27, %v1181_v52  ;;  %9974 = vrcp.f32 %v1380_v11 }
 0x1f9   : > { %v7999_v19 = vmul.f32 -1.442695, %v10785_v15  ;;  %9976 = vrcp.f32 %v1378_v17  ;;  %v9961_v3 = vpop.eup %9960 }
 0x1fa   : > { %v7998_v50 = vmul.f32 -1.442695, %v10790_v4  ;;  %v8941_v21 = vpop.f32.mrb[46].mxu0  ;;  %v9963_v30 = vpop.eup %9962  ;;  %v1383_v47 = vadd.f32 1.0, %v9961_v3 }
 0x1fb   : > { %9978 = vpow2.f32 %v7999_v19  ;;  %v10799_v14 = vadd.f32 %v8941_v21, %v10739_v27  ;;  %v1191_v23 = vpop.f32.mrb[47].mxu0  ;;  %v10819_v43 = vpop.eup %9964  ;;  %v1382_v40 = vadd.f32 1.0, %v9963_v30  ;;  %v10854_v19 = vadd.s32 56, %v10787_v31 }
 0x1fc   : > { %9980 = vpow2.f32 %v7998_v50  ;;  %v10808_v34 = vadd.f32 %v10739_v27, %v1191_v23  ;;  %v13644_v23 = vmov 0 }
 0x1fd   : > { %9982 = vrcp.f32 %v1381_v16  ;;  %v8001_v35 = vmul.f32 -1.442695, %v10799_v14  ;;  %v9967_v55 = vpop.eup %9966  ;;  %v13645_v23 = vsel %vm10865_vm3, 4294967295, %v13644_v23  ;;  %vm13810_vm3 = vcmp.lt.s32.totalorder %v10787_v31, 1 }
 0x1fe   : > { %9984 = vpow2.f32 %v7997_v51  ;;  %v8000_v49 = vmul.f32 -1.442695, %v10808_v34  ;;  %v8944_v36 = vpop.f32.mrb[48].mxu0  ;;  %v9969_v61 = vpop.eup %9968  ;;  %v1385_v6 = vadd.f32 1.0, %v9967_v55  ;;  %v10857_v51 = vadd.s32 80, %v10787_v31  ;;  %13646 = vst [vmem:[#allocation5_spill] sm:$0xff] %v13645_v23 }
 0x1ff   : > { %9986 = vpow2.f32 %v8001_v35  ;;  %v10827_v57 = vadd.f32 %v8944_v36, %v10739_v27  ;;  %v1201_v59 = vpop.f32.mrb[49].mxu0  ;;  %v10837_v24 = vpop.eup %9970  ;;  %v1384_v12 = vadd.f32 1.0, %v9969_v61  ;;  %v10878_v55 = vadd.s32 72, %v10787_v31 }
 0x200   : > { %9988 = vpow2.f32 %v8000_v49  ;;  %v10833_v62 = vadd.f32 %v10739_v27, %v1201_v59  ;;  %v9973_v20 = vpop.eup %9972 }
 0x201   : > { %9990 = vpow2.f32 %v7996_v56  ;;  %v8003_v7 = vmul.f32 -1.442695, %v10827_v57  ;;  %v10860_v21 = vmul.f32 %v9973_v20, %v10750_v41 }
 0x202   : > { %9992 = vrcp.f32 %v1383_v47  ;;  %v8002_v44 = vmul.f32 -1.442695, %v10833_v62  ;;  %v9975_v9 = vpop.eup %9974 }
 0x203   : > { %9994 = vrcp.f32 %v1382_v40  ;;  %v8947_v10 = vpop.f32.mrb[50].mxu0  ;;  %v10848_v13 = vpop.eup %9976  ;;  %13643 = vst [vmem:[#allocation4_spill] sm:$0xff] %v10860_v21  ;;  %v10871_v39 = vmul.f32 %v9975_v9, %v10761_v48 }
 0x204   : > { %9996 = vpow2.f32 %v8003_v7  ;;  %v10851_v52 = vadd.f32 %v8947_v10, %v10739_v27  ;;  %v1211_v16 = vpop.f32.mrb[51].mxu0 }
 0x205   : > { %v9979_v50 = vpop.eup %9978  ;;  %9998 = vpow2.f32 %v8002_v44  ;;  %v10863_v3 = vadd.f32 %v10739_v27, %v1211_v16  ;;  %13647 = vst [vmem:[#allocation6_spill] sm:$0xff] %v10871_v39  ;;  %v10892_v44 = vadd.s32 96, %v10787_v31  ;;  %v13352_v16 = vrot.slane %v10871_v39, 1 }
 0x206   : > { %v9981_v30 = vpop.eup %9980  ;;  %10000 = vrcp.f32 %v1385_v6  ;;  %v1389_v56 = vadd.f32 1.0, %v9979_v50  ;;  %v8005_v35 = vmul.f32 -1.442695, %v10851_v52  ;;  %v13353_v6 = vrot.slane %v10860_v21, 1 }
 0x207   : > { %v10874_v41 = vpop.eup %9982  ;;  %10002 = vrcp.f32 %v1384_v12  ;;  %v1388_v47 = vadd.f32 1.0, %v9981_v30  ;;  %v8004_v49 = vmul.f32 -1.442695, %v10863_v3  ;;  %v8950_v36 = vpop.f32.mrb[52].mxu0  ;;  %13648 = vst [vmem:[#allocation7_spill] sm:$0xff] %v10892_v44 }
 0x208   : > { %v10880_v40 = vpop.eup %9984  ;;  %10004 = vrcp.f32 %v1389_v56  ;;  %v10883_v48 = vadd.f32 %v8950_v36, %v10739_v27  ;;  %v1221_v59 = vpop.f32.mrb[53].mxu0 }
 0x209   : > { %v9987_v5 = vpop.eup %9986  ;;  %10006 = vrcp.f32 %v1388_v47  ;;  %v10888_v20 = vadd.f32 %v10739_v27, %v1221_v59 }
 0x20a   : > { %v9989_v9 = vpop.eup %9988  ;;  %v1391_v12 = vadd.f32 1.0, %v9987_v5  ;;  %10008 = vpow2.f32 %v8005_v35  ;;  %v8007_v10 = vmul.f32 -1.442695, %v10883_v48  ;;  %v10909_v35 = vsel %vm13428_vm2, %v13353_v6, %v13352_v16 }
 0x20b   : > { %v9991_v50 = vpop.eup %9990  ;;  %v1390_v30 = vadd.f32 1.0, %v9989_v9  ;;  %10010 = vpow2.f32 %v8004_v49  ;;  %v8006_v56 = vmul.f32 -1.442695, %v10888_v20  ;;  %v8953_v47 = vpop.f32.mrb[54].mxu0  ;;  %13649 = vst [vmem:[#allocation8_spill] sm:$0xff] %v10909_v35  ;;  %v10912_v49 = vadd.s32 88, %v10787_v31 }
 0x20c   : > { %v10898_v59 = vpop.eup %9992  ;;  %10012 = vrcp.f32 %v1391_v12  ;;  %v10901_v26 = vadd.f32 %v8953_v47, %v10739_v27  ;;  %v1231_v5 = vpop.f32.mrb[55].mxu0  ;;  %v10928_v6 = vadd.s32 104, %v10787_v31 }
 0x20d   : > { %13650 = vst [vmem:[#allocation9_spill] sm:$0xff] %v10912_v49  ;;  %v10914_v9 = vpop.eup %9994  ;;  %10014 = vrcp.f32 %v1390_v30  ;;  %v10917_v12 = vadd.f32 %v10739_v27, %v1231_v5 }
 0x20e   : > { %v9997_v36 = vpop.eup %9996  ;;  %10016 = vpow2.f32 %v8007_v10  ;;  %v8009_v7 = vmul.f32 -1.442695, %v10901_v26  ;;  %13652 = vst [vmem:[#allocation11_spill] sm:$0xff] %v10928_v6 }
 0x20f   : > { %v9999_v30 = vpop.eup %9998  ;;  %v1393_v61 = vadd.f32 1.0, %v9997_v36  ;;  %10018 = vpow2.f32 %v8006_v56  ;;  %v8008_v5 = vmul.f32 -1.442695, %v10917_v12  ;;  %v8956_v47 = vpop.f32.mrb[56].mxu0 }
 0x210   : > { %v10934_v11 = vpop.eup %10000  ;;  %v1392_v10 = vadd.f32 1.0, %v9999_v30  ;;  %10020 = vpow2.f32 %v8009_v7  ;;  %v10937_v17 = vadd.f32 %v8956_v47, %v10739_v27  ;;  %v1241_v16 = vpop.f32.mrb[57].mxu0  ;;  %v1386_v30 = vadd.f32 1.0, %v9991_v50 }
 0x211   : > { %v10942_v1 = vpop.eup %10002  ;;  %10022 = vrcp.f32 %v1393_v61  ;;  %v10945_v56 = vadd.f32 %v10739_v27, %v1241_v16  ;;  %v10954_v16 = vadd.s32 144, %v10787_v31 }
 0x212   : > { %v10005_v44 = vpop.eup %10004  ;;  %10024 = vrcp.f32 %v1392_v10  ;;  %v8011_v7 = vmul.f32 -1.442695, %v10937_v17 }
 0x213   : > { %v10007_v25 = vpop.eup %10006  ;;  %10026 = vpow2.f32 %v8008_v5  ;;  %v8010_v35 = vmul.f32 -1.442695, %v10945_v56  ;;  %v8959_v58 = vpop.f32.mrb[58].mxu0  ;;  %13655 = vst [vmem:[#allocation14_spill] sm:$0xff] %v10954_v16  ;;  %v10964_v63 = vmul.f32 %v10005_v44, %v10785_v15  ;;  %v10978_v15 = vadd.s32 136, %v10787_v31 }
 0x214   : > { %v10009_v36 = vpop.eup %10008  ;;  %v10957_v23 = vmul.f32 %v10007_v25, %v10790_v4  ;;  %10028 = vpow2.f32 %v8011_v7  ;;  %v10960_v50 = vadd.f32 %v8959_v58, %v10739_v27  ;;  %v1251_v10 = vpop.f32.mrb[59].mxu0  ;;  %v10975_v58 = vld [vmem:[%s13344_s5 + $0x18] sm:$0xff]  ;;  %v10985_v7 = vadd.s32 160, %v10787_v31 }
 0x215   : > { %v10011_v5 = vpop.eup %10010  ;;  %13657 = vst [vmem:[#allocation16_spill] sm:$0xff] %v10964_v63  ;;  %v1395_v6 = vadd.f32 1.0, %v10009_v36  ;;  %10030 = vpow2.f32 %v8010_v35  ;;  %v10967_v61 = vadd.f32 %v10739_v27, %v1251_v10  ;;  %13658 = vst [vmem:[#allocation17_spill] sm:$0xff] %v10975_v58 }
 0x216   : > { %13656 = vst [vmem:[#allocation15_spill] sm:$0xff] %v10957_v23  ;;  %v10013_v28 = vpop.eup %10012  ;;  %10032 = vrcp.f32 %v1386_v30  ;;  %v1394_v4 = vadd.f32 1.0, %v10011_v5  ;;  %v8013_v25 = vmul.f32 -1.442695, %v10960_v50  ;;  %9089 = vmatprep.mubr.msk.f32.mxu1 %vm13437_vm1, %v10957_v23  ;;  %13659 = vst [vmem:[#allocation18_spill] sm:$0xff] %v10978_v15 }
 0x217   : > { %v10015_v44 = vpop.eup %10014  ;;  %10034 = vrcp.f32 %v1395_v6  ;;  %v8012_v35 = vmul.f32 -1.442695, %v10967_v61  ;;  %v8962_v36 = vpop.f32.mrb[60].mxu0  ;;  %9090 = vmatmul.mubr.msk.f32.vlgmr.msra.gmra.mrb[0].mxu1 %vm13437_vm1, %v10964_v63  ;;  %13660 = vst [vmem:[#allocation19_spill] sm:$0xff] %v10985_v7  ;;  %v10998_v30 = vmul.f32 %v10013_v28, %v10799_v14 }
 0x218   : > { %v10017_v10 = vpop.eup %10016  ;;  %v10988_v5 = vmul.f32 %v10015_v44, %v10808_v34  ;;  %10036 = vrcp.f32 %v1394_v4  ;;  %v10991_v47 = vadd.f32 %v8962_v36, %v10739_v27  ;;  %v1261_v6 = vpop.f32.mrb[61].mxu0  ;;  %9117 = vmatpush3.msra.mxu1 %v10728_v22  ;;  %v11032_v22 = vadd.s32 192, %v10787_v31 }
 0x219   : > { %v10019_v49 = vpop.eup %10018  ;;  %13662 = vst [vmem:[#allocation21_spill] sm:$0xff] %v10998_v30  ;;  %v1397_v16 = vadd.f32 1.0, %v10017_v10  ;;  %10038 = vpow2.f32 %v8013_v25  ;;  %v11001_v63 = vadd.f32 %v10739_v27, %v1261_v6  ;;  %9166 = vmatprep.subr.mxu1 %v10975_v58  ;;  %v11012_v10 = vadd.s32 176, %v10787_v31 }
 0x21a   : > { %13661 = vst [vmem:[#allocation20_spill] sm:$0xff] %v10988_v5  ;;  %v10021_v34 = vpop.eup %10020  ;;  %v1396_v4 = vadd.f32 1.0, %v10019_v49  ;;  %10040 = vpow2.f32 %v8012_v35  ;;  %v8015_v44 = vmul.f32 -1.442695, %v10991_v47  ;;  %9092 = vmatprep.mubr.msk.f32.mxu1 %vm13437_vm1, %v10988_v5  ;;  %13666 = vst [vmem:[#allocation25_spill] sm:$0xff] %v11032_v22 }
 0x21b   : > { %v10023_v36 = vpop.eup %10022  ;;  %10042 = vrcp.f32 %v1397_v16  ;;  %v1399_v14 = vadd.f32 1.0, %v10021_v34  ;;  %v8014_v28 = vmul.f32 -1.442695, %v11001_v63  ;;  %v8965_v25 = vpop.f32.mrb[62].mxu0  ;;  %9093 = vmatmul.mubr.msk.f32.gmra.mrb[2].mxu1 %vm13437_vm1, %v10998_v30  ;;  %13663 = vst [vmem:[#allocation22_spill] sm:$0xff] %v11012_v10  ;;  %v11019_v16 = vadd.s32 168, %v10787_v31 }
 0x21c   : > { %v10025_v49 = vpop.eup %10024  ;;  %10044 = vrcp.f32 %v1396_v4  ;;  %v11015_v35 = vadd.f32 %v8965_v25, %v10739_v27  ;;  %v1271_v6 = vpop.f32.mrb[63].mxu0  ;;  %v11029_v25 = vmul.f32 %v10023_v36, %v10827_v57  ;;  %v13673_v30 = vmov 0 }
 0x21d   : > { %v10027_v34 = vpop.eup %10026  ;;  %v11022_v15 = vmul.f32 %v10025_v49, %v10833_v62  ;;  %10046 = vrcp.f32 %v1399_v14  ;;  %v11025_v58 = vadd.f32 %v10739_v27, %v1271_v6  ;;  %v11046_v6 = vadd.s32 184, %v10787_v31 }
 0x21e   : > { %v10029_v4 = vpop.eup %10028  ;;  %13665 = vst [vmem:[#allocation24_spill] sm:$0xff] %v11029_v25  ;;  %v1398_v5 = vadd.f32 1.0, %v10027_v34  ;;  %10048 = vpow2.f32 %v8015_v44  ;;  %v8017_v62 = vmul.f32 -1.442695, %v11015_v35  ;;  %v11049_v34 = vadd.s32 208, %v10787_v31 }
 0x21f   : > { %13664 = vst [vmem:[#allocation23_spill] sm:$0xff] %v11022_v15  ;;  %v10031_v7 = vpop.eup %10030  ;;  %v1401_v23 = vadd.f32 1.0, %v10029_v4  ;;  %10050 = vpow2.f32 %v8014_v28  ;;  %9095 = vmatprep.mubr.msk.f32.mxu1 %vm13437_vm1, %v11022_v15  ;;  %v8016_v36 = vmul.f32 -1.442695, %v11025_v58  ;;  %v1387_v28 = vadd.f32 1.0, %v10880_v40 }
 0x220   : > { %v11038_v14 = vpop.eup %10032  ;;  %10052 = vrcp.f32 %v1398_v5  ;;  %v1400_v57 = vadd.f32 1.0, %v10031_v7  ;;  %9096 = vmatmul.mubr.msk.f32.gmra.mrb[4].mxu1 %vm13437_vm1, %v11029_v25  ;;  %13667 = vst [vmem:[#allocation26_spill] sm:$0xff] %v11049_v34  ;;  %v11054_v5 = vadd.s32 200, %v10787_v31  ;;  %v11057_v27 = vadd.s32 224, %v10787_v31 }
 0x221   : > { %v10035_v49 = vpop.eup %10034  ;;  %10054 = vrcp.f32 %v1401_v23  ;;  %v11061_v23 = vmul.f32 %v10819_v43, %v10742_v29  ;;  %v11065_v44 = vmul.f32 %v10848_v13, %v10753_v32  ;;  %v13672_v7 = vand.u32 15, %v10811_v37 }
 0x222   : > { %v10037_v4 = vpop.eup %10036  ;;  %10056 = vrcp.f32 %v1400_v57  ;;  %13668 = vst [vmem:[#allocation27_spill] sm:$0xff] %v11057_v27  ;;  %v11078_v10 = vmul.f32 %v10837_v24, %v10745_v33  ;;  %v11081_v29 = vmul.f32 %v10035_v49, %v10851_v52  ;;  %v13678_v43 = vand.u32 15, %v10817_v42 }
 0x223   : > { %v10039_v40 = vpop.eup %10038  ;;  %13669 = vst [vmem:[#allocation28_spill] sm:$0xff] %v11061_v23  ;;  %13670 = vst [vmem:[#allocation29_spill] sm:$0xff] %v11065_v44  ;;  %v11068_v57 = vmul.f32 %v10037_v4, %v10863_v3  ;;  %10058 = vpow2.f32 %v8017_v62  ;;  %vm11072_vm5 = vcmp.ge.s32.totalorder %v13672_v7, 1  ;;  %v13679_v13 = vmov 0 }
 0x224   : > { %v13674_v30 = vsel %vm11072_vm5, 4294967295, %v13673_v30  ;;  %v10041_v22 = vpop.eup %10040  ;;  %13676 = vst [vmem:[#allocation32_spill] sm:$0xff] %v11078_v10  ;;  %13677 = vst [vmem:[#allocation33_spill] sm:$0xff] %v11081_v29  ;;  %v1403_v32 = vadd.f32 1.0, %v10039_v40  ;;  %10060 = vpow2.f32 %v8016_v36  ;;  %vm11085_vm6 = vcmp.le.s32.totalorder %v13678_v43, 14 }
 0x225   : > { %13671 = vst [vmem:[#allocation30_spill] sm:$0xff] %v11068_v57  ;;  %13675 = vst [vmem:[#allocation31_spill] sm:$0xff] %v13674_v30  ;;  %v13680_v13 = vsel %vm11085_vm6, 4294967295, %v13679_v13  ;;  %v10043_v37 = vpop.eup %10042  ;;  %10062 = vrcp.f32 %v1387_v28  ;;  %v1402_v3 = vadd.f32 1.0, %v10041_v22  ;;  %9098 = vmatprep.mubr.msk.f32.mxu1 %vm13437_vm1, %v11068_v57  ;;  %v11097_v62 = vadd.s32 216, %v10787_v31 }
 0x226   : > { %13681 = vst [vmem:[#allocation34_spill] sm:$0xff] %v13680_v13  ;;  %v10045_v52 = vpop.eup %10044  ;;  %10064 = vrcp.f32 %v1403_v32  ;;  %9099 = vmatmul.mubr.msk.f32.gmra.mrb[6].mxu1 %vm13437_vm1, %v11081_v29  ;;  %v11100_v36 = vadd.s32 232, %v10787_v31  ;;  %v13380_v28 = vrot.slane %v11065_v44, 7  ;;  %v11108_v40 = vmul.f32 %v10043_v37, %v10883_v48 }
 0x227   : > { %v10047_v22 = vpop.eup %10046  ;;  %v11103_v49 = vmul.f32 %v10045_v52, %v10888_v20  ;;  %10066 = vrcp.f32 %v1402_v3  ;;  %v3723_v43 = vrot.slane %v11061_v23, 1  ;;  %v3724_v24 = vrot.slane %v11065_v44, 1 }
 0x228   : > { %13682 = vst [vmem:[#allocation35_spill] sm:$0xff] %v11100_v36  ;;  %v10049_v7 = vpop.eup %10048  ;;  %13684 = vst [vmem:[#allocation37_spill] sm:$0xff] %v11108_v40  ;;  %v13685_v42 = vand.u32 15, %v10823_v38  ;;  %v13686_v20 = vmov 0  ;;  %v11121_v52 = vmul.f32 %v10914_v9, %v10769_v54  ;;  %v2436_v37 = vrot.slane %v11061_v23, 7 }
 0x229   : > { %13683 = vst [vmem:[#allocation36_spill] sm:$0xff] %v11103_v49  ;;  %v10051_v3 = vpop.eup %10050  ;;  %v1405_v4 = vadd.f32 1.0, %v10049_v7  ;;  %9101 = vmatprep.mubr.msk.f32.mxu1 %vm13437_vm1, %v11103_v49  ;;  %v13690_v33 = vand.u32 15, %v10830_v2  ;;  %v13691_v38 = vmov 0  ;;  %v11135_v32 = vmul.f32 %v10874_v41, %v10758_v45 }
 0x22a   : > { %vm11115_vm7 = vcmp.ge.s32.totalorder %v13685_v42, 1  ;;  %13689 = vst [vmem:[#allocation39_spill] sm:$0xff] %v11121_v52  ;;  %v10053_v42 = vpop.eup %10052  ;;  %v1404_v54 = vadd.f32 1.0, %v10051_v3  ;;  %9102 = vmatmul.mubr.msk.f32.gmra.mrb[8].mxu1 %vm13437_vm1, %v11108_v40  ;;  %v13695_v9 = vand.u32 15, %v10841_v46  ;;  %v13696_v7 = vmov 0 }
 0x22b   : > { %v13687_v20 = vsel %vm11115_vm7, 4294967295, %v13686_v20  ;;  %vm11129_vm8 = vcmp.le.s32.totalorder %v13690_v33, 14  ;;  %13694 = vst [vmem:[#allocation41_spill] sm:$0xff] %v11135_v32  ;;  %v13699_v2 = vand.u32 15, %v10854_v19  ;;  %v13700_v33 = vmov 0  ;;  %v10055_v41 = vpop.eup %10054 }
 0x22c   : > { %13688 = vst [vmem:[#allocation38_spill] sm:$0xff] %v13687_v20  ;;  %v13692_v38 = vsel %vm11129_vm8, 4294967295, %v13691_v38  ;;  %vm11141_vm9 = vcmp.ge.s32.totalorder %v13695_v9, 1  ;;  %v11154_v3 = vmul.f32 %v10053_v42, %v10917_v12  ;;  %10068 = vrcp.f32 %v1405_v4  ;;  %v10057_v9 = vpop.eup %10056 }
 0x22d   : > { %13693 = vst [vmem:[#allocation40_spill] sm:$0xff] %v13692_v38  ;;  %v13697_v7 = vsel %vm11141_vm9, 4294967295, %v13696_v7  ;;  %vm11147_vm10 = vcmp.le.s32.totalorder %v13699_v2, 14  ;;  %v11160_v46 = vsel %vm13427_vm4, %v2436_v37, %v13380_v28  ;;  %v2439_v19 = vrot.slane %v10871_v39, 7  ;;  %v10059_v42 = vpop.eup %10058 }
 0x22e   : > { %13698 = vst [vmem:[#allocation42_spill] sm:$0xff] %v13697_v7  ;;  %v13701_v33 = vsel %vm11147_vm10, 4294967295, %v13700_v33  ;;  %13703 = vst [vmem:[#allocation44_spill] sm:$0xff] %v11154_v3  ;;  %v11164_v2 = vmul.f32 %v10047_v22, %v10901_v26  ;;  %10070 = vrcp.f32 %v1404_v54  ;;  %v13706_v45 = vrot.slane %v11078_v10, 1  ;;  %9104 = vmatprep.mubr.msk.f32.mxu1 %vm13437_vm1, %v11154_v3  ;;  %v10061_v28 = vpop.eup %10060 }
 0x22f   : > { %13702 = vst [vmem:[#allocation43_spill] sm:$0xff] %v13701_v33  ;;  %13704 = vst [vmem:[#allocation45_spill] sm:$0xff] %v11160_v46  ;;  %v11174_v4 = vsel %vm13428_vm2, %v3723_v43, %v3724_v24  ;;  %v11177_v48 = vmul.f32 %v10057_v9, %v10945_v56  ;;  %v13710_v26 = vrot.slane %v11078_v10, 7  ;;  %v2438_v54 = vrot.slane %v10860_v21, 7 }
 0x230   : > { %13705 = vst [vmem:[#allocation46_spill] sm:$0xff] %v11164_v2  ;;  %v11170_v12 = vsel %vm13428_vm2, %v13706_v45, %v3723_v43  ;;  %13708 = vst [vmem:[#allocation48_spill] sm:$0xff] %v11174_v4  ;;  %v2441_v45 = vrot.slane %v11121_v52, 7  ;;  %v11191_v43 = vmul.f32 %v10942_v1, %v10777_v0  ;;  %v1407_v56 = vadd.f32 1.0, %v10059_v42  ;;  %9105 = vmatmul.mubr.msk.f32.gmra.mrb[10].mxu1 %vm13437_vm1, %v11164_v2  ;;  %v10063_v1 = vpop.eup %10062 }
 0x231   : > { %13707 = vst [vmem:[#allocation47_spill] sm:$0xff] %v11170_v12  ;;  %13709 = vst [vmem:[#allocation49_spill] sm:$0xff] %v11177_v48  ;;  %v11185_v22 = vsel %vm13427_vm4, %v13710_v26, %v2436_v37  ;;  %v3728_v37 = vrot.slane %v11121_v52, 1  ;;  %v13713_v26 = vand.u32 15, %v10857_v51  ;;  %v13714_v23 = vmov 0  ;;  %9107 = vmatprep.mubr.msk.f32.mxu1 %vm13437_vm1, %v11177_v48 }
 0x232   : > { %13711 = vst [vmem:[#allocation50_spill] sm:$0xff] %v11185_v22  ;;  %13712 = vst [vmem:[#allocation51_spill] sm:$0xff] %v11191_v43  ;;  %v13717_v27 = vand.u32 15, %v10878_v55  ;;  %v13718_v0 = vmov 0  ;;  %v11213_v42 = vmul.f32 %v10898_v59, %v10766_v53  ;;  %v2440_v55 = vrot.slane %v11135_v32, 7 }
 0x233   : > { %vm11201_vm11 = vcmp.ge.s32.totalorder %v13713_v26, 1  ;;  %v11222_v26 = vsel %vm13427_vm4, %v2438_v54, %v2439_v19  ;;  %v11226_v9 = vmul.f32 %v10055_v41, %v10937_v17  ;;  %10072 = vrcp.f32 %v1407_v56 }
 0x234   : > { %v13715_v23 = vsel %vm11201_vm11, 4294967295, %v13714_v23  ;;  %vm11207_vm12 = vcmp.le.s32.totalorder %v13717_v27, 14  ;;  %13721 = vst [vmem:[#allocation54_spill] sm:$0xff] %v11213_v42  ;;  %13722 = vst [vmem:[#allocation55_spill] sm:$0xff] %v11222_v26  ;;  %v10065_v27 = vpop.eup %10064  ;;  %v1406_v53 = vadd.f32 1.0, %v10061_v28  ;;  %v3727_v59 = vrot.slane %v11135_v32, 1 }
 0x235   : > { %13716 = vst [vmem:[#allocation52_spill] sm:$0xff] %v13715_v23  ;;  %v13719_v0 = vsel %vm11207_vm12, 4294967295, %v13718_v0  ;;  %13723 = vst [vmem:[#allocation56_spill] sm:$0xff] %v11226_v9  ;;  %v10067_v52 = vpop.eup %10066  ;;  %v11231_v34 = vmul.f32 %v10934_v11, %v10774_v60  ;;  %v11235_v51 = vmul.f32 %v11038_v14, %v10793_v18  ;;  %v13726_v2 = vrot.slane %v10860_v21, 1  ;;  %9108 = vmatmul.mubr.msk.f32.gmra.mrb[12].mxu1 %vm13437_vm1, %v11226_v9 }
 0x236   : > { %13720 = vst [vmem:[#allocation53_spill] sm:$0xff] %v13719_v0  ;;  %v11245_v17 = vsel %vm13427_vm4, %v2440_v55, %v2441_v45  ;;  %v11248_v28 = vmul.f32 %v10067_v52, %v10967_v61  ;;  %v11254_v60 = vsel %vm13428_vm2, %v3727_v59, %v3728_v37  ;;  %v3730_v11 = vrot.slane %v11191_v43, 1  ;;  %v10069_v32 = vpop.eup %10068 }
 0x237   : > { %13724 = vst [vmem:[#allocation57_spill] sm:$0xff] %v11231_v34  ;;  %13725 = vst [vmem:[#allocation58_spill] sm:$0xff] %v11235_v51  ;;  %v11241_v36 = vsel %vm13428_vm2, %v3724_v24, %v13726_v2  ;;  %v13731_v14 = vrot.slane %v11065_v44, 7  ;;  %v3729_v52 = vrot.slane %v11213_v42, 1  ;;  %v2442_v41 = vrot.slane %v11213_v42, 7  ;;  %v13733_v2 = vld [vmem:[#allocation2_spill] sm:$0xff] }
 0x238   : > { %13727 = vst [vmem:[#allocation59_spill] sm:$0xff] %v11241_v36  ;;  %13728 = vst [vmem:[#allocation60_spill] sm:$0xff] %v11245_v17  ;;  %v11270_v56 = vmul.f32 %v10063_v1, %v13733_v2  ;;  %v11273_v18 = vmul.f32 %v10065_v27, %v10960_v50  ;;  %10074 = vrcp.f32 %v1406_v53  ;;  %9110 = vmatprep.mubr.msk.f32.mxu1 %vm13437_vm1, %v11248_v28  ;;  %v13737_v61 = vrot.slane %v10871_v39, 1  ;;  %v10071_v53 = vpop.eup %10070  ;;  %v13744_v27 = vld [vmem:[#allocation3_spill] sm:$0xff] }
 0x239   : > { %13729 = vst [vmem:[#allocation61_spill] sm:$0xff] %v11248_v28  ;;  %13730 = vst [vmem:[#allocation62_spill] sm:$0xff] %v11254_v60  ;;  %v11262_v24 = vsel %vm13427_vm4, %v13731_v14, %v2438_v54  ;;  %v13736_v54 = vld [vmem:[#allocation8_spill] sm:$0xff]  ;;  %v11288_v1 = vsel %vm13427_vm4, %v2439_v19, %v2440_v55  ;;  %v13740_v2 = vrot.slane %v11191_v43, 7  ;;  %v11306_v19 = vsel %vm13428_vm2, %v3729_v52, %v3730_v11 }
 0x23a   : > { %13732 = vst [vmem:[#allocation63_spill] sm:$0xff] %v11262_v24  ;;  %13734 = vst [vmem:[#allocation2_spill] sm:$0xff] %v11270_v56  ;;  %v11284_v42 = vsel %vm13428_vm2, %v13737_v61, %v3727_v59  ;;  %9111 = vmatmul.mubr.msk.f32.gmra.mrb[14].mxu1 %vm13437_vm1, %v11273_v18  ;;  %v3731_v55 = vrot.slane %v11231_v34, 1  ;;  %v11311_v50 = vmul.f32 %v10071_v53, %v11001_v63  ;;  %v13745_v14 = vand.u32 15, %v13744_v27  ;;  %v13752_v27 = vld [vmem:[#allocation15_spill] sm:$0xff] }
 0x23b   : > { %13735 = vst [vmem:[#allocation64_spill] sm:$0xff] %v11273_v18  ;;  %13738 = vst [vmem:[#allocation65_spill] sm:$0xff] %v11284_v42  ;;  %v11302_v59 = vsel %vm13427_vm4, %v2442_v41, %v13740_v2  ;;  %v13746_v39 = vmov 0  ;;  %v11321_v2 = vsel %vm13428_vm2, %v3728_v37, %v3729_v52  ;;  %v11325_v21 = vsel %vm13427_vm4, %v2441_v45, %v2442_v41  ;;  %v13753_v52 = vld [vmem:[#allocation20_spill] sm:$0xff] }
 0x23c   : > { %13739 = vst [vmem:[#allocation66_spill] sm:$0xff] %v11288_v1  ;;  %13741 = vst [vmem:[#allocation67_spill] sm:$0xff] %v11302_v59  ;;  %vm11315_vm13 = vcmp.ge.s32.totalorder %v13745_v14, 1  ;;  %v11329_v61 = vmul.f32 %v10069_v32, %v10991_v47  ;;  %v13405_v63 = vrot.slane %v11231_v34, 7  ;;  %9113 = vmatprep.mubr.msk.f32.mxu1 %vm13437_vm1, %v11311_v50  ;;  %v11348_v53 = vsel %vm13428_vm2, %v3730_v11, %v3731_v55  ;;  %v13761_v59 = vld [vmem:[#allocation16_spill] sm:$0xff] }
 0x23d   : > { %13742 = vst [vmem:[#allocation68_spill] sm:$0xff] %v11306_v19  ;;  %13743 = vst [vmem:[#allocation69_spill] sm:$0xff] %v11311_v50  ;;  %v13747_v39 = vsel %vm11315_vm13, 4294967295, %v13746_v39  ;;  %v10073_v41 = vpop.eup %10072  ;;  %v13755_v14 = vrot.slane %v11235_v51, 7  ;;  %v13412_v45 = vrot.slane %v11270_v56, 1  ;;  %v13410_v32 = vrot.slane %v11270_v56, 7 }
 0x23e   : > { %13748 = vst [vmem:[#allocation3_spill] sm:$0xff] %v13747_v39  ;;  %13749 = vst [vmem:[#allocation70_spill] sm:$0xff] %v11321_v2  ;;  %9114 = vmatmul.mubr.msk.f32.gmra.mrb[16].mxu1 %vm13437_vm1, %v11329_v61  ;;  %v11361_v47 = vmul.f32 %v10073_v41, %v11015_v35  ;;  %v13758_v44 = vmov 0.0   ;;  %v13759_v11 = vrot.slane %v11235_v51, 1  ;;  %v13763_v41 = vrot.slane %v13752_v27, 1  ;;  %v13782_v56 = vld [vmem:[#allocation11_spill] sm:$0xff] }
 0x23f   : > { %13750 = vst [vmem:[#allocation71_spill] sm:$0xff] %v11325_v21  ;;  %13751 = vst [vmem:[#allocation72_spill] sm:$0xff] %v11329_v61  ;;  %v11356_v37 = vsel %vm13427_vm4, %v13405_v63, %v13755_v14  ;;  %9118 = vmatprep.mubr.f32.mxu1 %v13758_v44  ;;  %v13762_v63 = vrot.slane %v13752_v27, 7  ;;  %v13765_v51 = vrot.slane %v13753_v52, 7  ;;  %v13766_v34 = vrot.slane %v13761_v59, 7 }
 0x240   : > { %13754 = vst [vmem:[#allocation73_spill] sm:$0xff] %v11348_v53  ;;  %13756 = vst [vmem:[#allocation74_spill] sm:$0xff] %v11356_v37  ;;  %v11368_v53 = vsel %vm13428_vm2, %v3731_v55, %v13759_v11  ;;  %v11386_v55 = vsel %vm13428_vm2, %v13412_v45, %v13763_v41  ;;  %v13769_v27 = vrot.slane %v13761_v59, 1  ;;  %v13771_v45 = vld [vmem:[#allocation21_spill] sm:$0xff]  ;;  %v11411_v11 = vld [vmem:[%s13344_s5 + $0x28] sm:$0xff]  ;;  %v13775_v43 = vrot.slane %v11361_v47, 7 }
 0x241   : > { %13757 = vst [vmem:[#allocation75_spill] sm:$0xff] %v11361_v47  ;;  %13760 = vst [vmem:[#allocation76_spill] sm:$0xff] %v11368_v53  ;;  %v11378_v35 = vsel %vm13427_vm4, %v13410_v32, %v13762_v63  ;;  %v11397_v63 = vsel %vm13427_vm4, %v13766_v34, %v13765_v51  ;;  %v13768_v32 = vrot.slane %v13753_v52, 1  ;;  %v13777_v59 = vld [vmem:[#allocation9_spill] sm:$0xff]  ;;  %v13788_v52 = vrot.slane %v13771_v45, 7 }
 0x242   : > { %13764 = vst [vmem:[#allocation77_spill] sm:$0xff] %v11386_v55  ;;  %13767 = vst [vmem:[#allocation78_spill] sm:$0xff] %v11397_v63  ;;  %v10075_v14 = vpop.eup %10074  ;;  %9119 = vmatmul.mubr.f32.vlgmr.msra.gmra.mrb[18].mxu1 %v13758_v44  ;;  %v13783_v63 = vand.u32 15, %v13782_v56  ;;  %v13804_v56 = vmov 0  ;;  %v13819_v13 = vand.u32 15, %v11054_v5  ;;  %v13830_v5 = vld [vmem:[#allocation7_spill] sm:$0xff] }
 0x243   : > { %v11405_v41 = vsel %vm13428_vm2, %v13769_v27, %v13768_v32  ;;  %13772 = vst [vmem:[#allocation80_spill] sm:$0xff] %v11411_v11  ;;  %v13773_v27 = vld [vmem:[#allocation17_spill] sm:$0xff]  ;;  %9121 = vmatprep.mubr.msk.f32.mxu1 %vm13437_vm1, %v11170_v12  ;;  %v13774_v32 = vrot.slane %v11078_v10, 7  ;;  %v13778_v12 = vand.u32 15, %v13777_v59  ;;  %v13779_v10 = vmov 0 }
 0x244   : > { %13770 = vst [vmem:[#allocation79_spill] sm:$0xff] %v11405_v41  ;;  %9167 = vmatpush3.msra.mxu1 %v13773_v27  ;;  %vm11443_vm15 = vcmp.le.s32.totalorder %v13783_v63, 14  ;;  %v13789_v59 = vrot.slane %v11022_v15, 1  ;;  %v11466_v63 = vmul.f32 %v10075_v14, %v11025_v58  ;;  %v13839_v58 = vrot.slane %v11103_v49, 7 }
 0x245   : > { %v11427_v44 = vsel %vm13427_vm4, %v13775_v43, %v13774_v32  ;;  %vm11437_vm14 = vcmp.le.s32.totalorder %v13778_v12, 14  ;;  %v13784_v43 = vmov 0  ;;  %v13787_v32 = vrot.slane %v11022_v15, 7  ;;  %9216 = vmatprep.subr.mxu1 %v11411_v11  ;;  %v13798_v15 = vld [vmem:[#allocation18_spill] sm:$0xff] }
 0x246   : > { %13776 = vst [vmem:[#allocation17_spill] sm:$0xff] %v11427_v44  ;;  %v2598_v27 = vsel %vm11315_vm13, %v11427_v44, 0.0  ;;  %v13780_v10 = vsel %vm11437_vm14, 4294967295, %v13779_v10  ;;  %v13785_v43 = vsel %vm11443_vm15, 4294967295, %v13784_v43  ;;  %v13790_v12 = vrot.slane %v13771_v45, 1  ;;  %13792 = vst [vmem:[#allocation82_spill] sm:$0xff] %v11466_v63 }
 0x247   : > { %13781 = vst [vmem:[#allocation9_spill] sm:$0xff] %v13780_v10  ;;  %13786 = vst [vmem:[#allocation11_spill] sm:$0xff] %v13785_v43  ;;  %v11453_v51 = vsel %vm13427_vm4, %v13788_v52, %v13787_v32  ;;  %8971 = vmatprep.mubr.msk.f32.mxu0 %vm13437_vm1, %v2598_v27  ;;  %v13793_v44 = vld [vmem:[#allocation13_spill] sm:$0xff]  ;;  %v13795_v32 = vmov 0  ;;  %v13799_v45 = vand.u32 15, %v13798_v15  ;;  %v13807_v15 = vsel %vm11085_vm6, %v11174_v4, 0.0 }
 0x248   : > { %v11461_v34 = vsel %vm13428_vm2, %v13790_v12, %v13789_v59  ;;  %v13794_v52 = vand.u32 15, %v13793_v44  ;;  %v13800_v59 = vmov 0  ;;  %v13803_v12 = vand.u32 15, %v10995_v8  ;;  %8972 = vmatmul.mubr.msk.f32.gmra.mrb[66].mxu0 %vm13437_vm1, %v11185_v22  ;;  %9122 = vmatmul.mubr.msk.f32.gmra.mrb[20].mxu1 %vm13437_vm1, %v13807_v15 }
 0x249   : > { %13791 = vst [vmem:[#allocation81_spill] sm:$0xff] %v11461_v34  ;;  %vm11477_vm4 = vcmp.le.s32.totalorder %v13799_v45, 14  ;;  %v13808_v8 = vrot.slane %v11068_v57, 7  ;;  %v13809_v45 = vrot.slane %v11029_v25, 7  ;;  %v13815_v44 = vand.u32 15, %v11046_v6 }
 0x24a   : > { %vm11471_vm0 = vcmp.le.s32.totalorder %v13794_v52, 14  ;;  %v13801_v59 = vsel %vm11477_vm4, 4294967295, %v13800_v59  ;;  %vm11483_vm2 = vcmp.le.s32.totalorder %v13803_v12, 14  ;;  %v13811_v52 = vand.u32 15, %v11019_v16 }
 0x24b   : > { %v13796_v32 = vsel %vm11471_vm0, 4294967295, %v13795_v32  ;;  %13802 = vst [vmem:[#allocation18_spill] sm:$0xff] %v13801_v59  ;;  %v13805_v56 = vsel %vm11483_vm2, 4294967295, %v13804_v56  ;;  %v11503_v27 = vsel %vm13810_vm3, %v13809_v45, %v13808_v8  ;;  %v13812_v12 = vmov 0 }
 0x24c   : > { %13797 = vst [vmem:[#allocation13_spill] sm:$0xff] %v13796_v32  ;;  %13806 = vst [vmem:[#allocation83_spill] sm:$0xff] %v13805_v56  ;;  %vm11507_vm11 = vcmp.le.s32.totalorder %v13811_v52, 14  ;;  %vm11514_vm6 = vcmp.le.s32.totalorder %v13815_v44, 14  ;;  %v13816_v15 = vmov 0  ;;  %vm11521_vm3 = vcmp.le.s32.totalorder %v13819_v13, 14 }
 0x24d   : > { %v13813_v12 = vsel %vm11507_vm11, 4294967295, %v13812_v12  ;;  %v13817_v15 = vsel %vm11514_vm6, 4294967295, %v13816_v15  ;;  %v13820_v8 = vmov 0  ;;  %v13823_v45 = vand.u32 15, %v11097_v62 }
 0x24e   : > { %13814 = vst [vmem:[#allocation84_spill] sm:$0xff] %v13813_v12  ;;  %13818 = vst [vmem:[#allocation85_spill] sm:$0xff] %v13817_v15  ;;  %v13821_v8 = vsel %vm11521_vm3, 4294967295, %v13820_v8  ;;  %v13824_v52 = vmov 0  ;;  %v13827_v6 = vsel %vm11072_vm5, %v11160_v46, 0.0  ;;  %vm13828_vm13 = vcmask 64512  }
 0x24f   : > { %13822 = vst [vmem:[#allocation86_spill] sm:$0xff] %v13821_v8  ;;  %vm11528_vm1 = vcmp.le.s32.totalorder %v13823_v45, 14  ;;  %8974 = vmatprep.mubr.msk.f32.mxu0 %vm13828_vm13, %v13827_v6  ;;  %vm13829_vm6 = vmmov %vm13828_vm13  ;;  %v13831_v13 = vand.u32 15, %v13830_v5  ;;  %v13832_v44 = vmov 0  ;;  %v13835_v62 = vrot.slane %v11068_v57, 1  ;;  %v13851_v46 = vld [vmem:[#allocation46_spill] sm:$0xff] }
 0x250   : > { %v13825_v52 = vsel %vm11528_vm1, 4294967295, %v13824_v52  ;;  %9124 = vmatprep.mubr.msk.f32.mxu1 %vm13829_vm6, %v11241_v36  ;;  %v13836_v45 = vrot.slane %v11029_v25, 1  ;;  %vm13837_vm1 = vcmp.lt.s32.totalorder %v10787_v31, 7  ;;  %v13840_v6 = vrot.slane %v11081_v29, 7 }
 0x251   : > { %13826 = vst [vmem:[#allocation87_spill] sm:$0xff] %v13825_v52  ;;  %vm11541_vm3 = vcmp.ge.s32.totalorder %v13831_v13, 1  ;;  %vm13841_vm6 = vcmp.lt.s32.totalorder %v10787_v31, 1  ;;  %v13842_v5 = vrot.slane %v11103_v49, 1  ;;  %v13843_v13 = vrot.slane %v11081_v29, 1  ;;  %vm13844_vm13 = vmmov %vm13837_vm1  ;;  %v13852_v49 = vld [vmem:[#allocation10_spill] sm:$0xff] }
 0x252   : > { %v13833_v44 = vsel %vm11541_vm3, 4294967295, %v13832_v44  ;;  %v11551_v16 = vsel %vm13837_vm1, %v13836_v45, %v13835_v62  ;;  %v11559_v14 = vsel %vm13841_vm6, %v13840_v6, %v13839_v58  ;;  %v13459_v4 = vrot.slane %v11108_v40, 7  ;;  %v13846_v62 = vld [vmem:[#allocation35_spill] sm:$0xff]  ;;  %v14398_v58 = vld [vmem:[#allocation57_spill] sm:$0xff] }
 0x253   : > { %13834 = vst [vmem:[#allocation7_spill] sm:$0xff] %v13833_v44  ;;  %13838 = vst [vmem:[#allocation88_spill] sm:$0xff] %v11551_v16  ;;  %v11567_v36 = vsel %vm13844_vm13, %v13843_v13, %v13842_v5  ;;  %v13847_v45 = vand.u32 15, %v13846_v62  ;;  %v13848_v30 = vmov 0  ;;  %v13853_v57 = vand.u32 15, %v13852_v49  ;;  %v13873_v49 = vld [vmem:[#allocation19_spill] sm:$0xff] }
 0x254   : > { %13845 = vst [vmem:[#allocation89_spill] sm:$0xff] %v11567_v36  ;;  %v13854_v5 = vmov 0  ;;  %v13856_v13 = vrot.slane %v11154_v3, 7  ;;  %vm13857_vm13 = vcmp.lt.s32.totalorder %v10787_v31, 1  ;;  %v13859_v6 = vrot.slane %v11108_v40, 1 }
 0x255   : > { %vm11572_vm1 = vcmp.le.s32.totalorder %v13847_v45, 14  ;;  %vm11582_vm6 = vcmp.ge.s32.totalorder %v13853_v57, 1  ;;  %v13858_v45 = vrot.slane %v11154_v3, 1  ;;  %vm13860_vm5 = vcmp.lt.s32.totalorder %v10787_v31, 7 }
 0x256   : > { %v13849_v30 = vsel %vm11572_vm1, 4294967295, %v13848_v30  ;;  %v13855_v5 = vsel %vm11582_vm6, 4294967295, %v13854_v5  ;;  %v11592_v62 = vsel %vm13857_vm13, %v13459_v4, %v13856_v13  ;;  %vm13862_vm6 = vcmask 64512   ;;  %v13865_v4 = vld [vmem:[#allocation12_spill] sm:$0xff] }
 0x257   : > { %13850 = vst [vmem:[#allocation35_spill] sm:$0xff] %v13849_v30  ;;  %v11600_v22 = vsel %vm13860_vm5, %v13859_v6, %v13858_v45  ;;  %8975 = vmatmul.mubr.msk.f32.gmra.mrb[68].mxu0 %vm13862_vm6, %v11262_v24  ;;  %v13863_v13 = vsel %vm11129_vm8, %v13736_v54, 0.0  ;;  %vm13864_vm13 = vmmov %vm13862_vm6  ;;  %v13866_v11 = vand.u32 15, %v13865_v4  ;;  %v13869_v6 = vld [vmem:[#allocation14_spill] sm:$0xff]  ;;  %v13871_v57 = vmov 0 }
 0x258   : > { %13861 = vst [vmem:[#allocation10_spill] sm:$0xff] %v11600_v22  ;;  %9125 = vmatmul.mubr.msk.f32.gmra.mrb[22].mxu1 %vm13864_vm13, %v13863_v13  ;;  %v13870_v45 = vand.u32 15, %v13869_v6  ;;  %v13874_v24 = vand.u32 15, %v13873_v49  ;;  %v13875_v38 = vmov 0  ;;  %v13877_v13 = vrot.slane %v11177_v48, 7  ;;  %v13895_v49 = vld [vmem:[#allocation26_spill] sm:$0xff] }
 0x259   : > { %vm11613_vm3 = vcmp.ge.s32.totalorder %v13866_v11, 1  ;;  %v13878_v4 = vrot.slane %v13851_v46, 7  ;;  %vm13879_vm13 = vcmp.lt.s32.totalorder %v10787_v31, 1  ;;  %v13880_v6 = vrot.slane %v11177_v48, 1 }
 0x25a   : > { %vm11619_vm5 = vcmp.ge.s32.totalorder %v13870_v45, 1  ;;  %vm11625_vm6 = vcmp.ge.s32.totalorder %v13874_v24, 1  ;;  %v13881_v45 = vrot.slane %v13851_v46, 1  ;;  %vm13882_vm8 = vcmp.lt.s32.totalorder %v10787_v31, 7 }
 0x25b   : > { %v13872_v57 = vsel %vm11619_vm5, 4294967295, %v13871_v57  ;;  %v13876_v38 = vsel %vm11625_vm6, 4294967295, %v13875_v38  ;;  %v11635_v11 = vsel %vm13879_vm13, %v13878_v4, %v13877_v13  ;;  %v13884_v3 = vsel %vm11115_vm7, %v11222_v26, 0.0  ;;  %v13887_v13 = vld [vmem:[#allocation22_spill] sm:$0xff] }
 0x25c   : > { %v11643_v54 = vsel %vm13882_vm8, %v13881_v45, %v13880_v6  ;;  %vm13885_vm6 = vcmask 64512   ;;  %v13888_v4 = vand.u32 15, %v13887_v13  ;;  %v13891_v6 = vld [vmem:[#allocation25_spill] sm:$0xff]  ;;  %v13893_v24 = vmov 0 }
 0x25d   : > { %13883 = vst [vmem:[#allocation12_spill] sm:$0xff] %v11643_v54  ;;  %8977 = vmatprep.mubr.msk.f32.mxu0 %vm13885_vm6, %v13884_v3  ;;  %vm13886_vm13 = vmmov %vm13885_vm6  ;;  %v13892_v45 = vand.u32 15, %v13891_v6  ;;  %v13896_v20 = vand.u32 15, %v13895_v49  ;;  %v13897_v46 = vmov 0  ;;  %v13899_v3 = vld [vmem:[#allocation27_spill] sm:$0xff]  ;;  %v13901_v13 = vmov 0 }
 0x25e   : > { %9127 = vmatprep.mubr.msk.f32.mxu1 %vm13886_vm13, %v11284_v42  ;;  %vm11656_vm5 = vcmp.ge.s32.totalorder %v13888_v4, 1  ;;  %v13900_v42 = vand.u32 15, %v13899_v3  ;;  %v13903_v49 = vrot.slane %v11248_v28, 1  ;;  %vm13905_vm13 = vcmp.lt.s32.totalorder %v10787_v31, 7 }
 0x25f   : > { %vm11662_vm8 = vcmp.ge.s32.totalorder %v13892_v45, 1  ;;  %vm11668_vm7 = vcmp.ge.s32.totalorder %v13896_v20, 1  ;;  %v13904_v20 = vrot.slane %v11226_v9, 1  ;;  %v13908_v3 = vrot.slane %v11273_v18, 1 }
 0x260   : > { %v13894_v24 = vsel %vm11662_vm8, 4294967295, %v13893_v24  ;;  %v13898_v46 = vsel %vm11668_vm7, 4294967295, %v13897_v46  ;;  %vm11674_vm6 = vcmp.ge.s32.totalorder %v13900_v42, 1  ;;  %v13907_v42 = vrot.slane %v11311_v50, 1 }
 0x261   : > { %v13902_v13 = vsel %vm11674_vm6, 4294967295, %v13901_v13  ;;  %v11688_v29 = vsel %vm13905_vm13, %v13904_v20, %v13903_v49  ;;  %vm13909_vm6 = vmmov %vm13905_vm13  ;;  %v13911_v40 = vrot.slane %v11466_v63, 1  ;;  %v13912_v49 = vrot.slane %v11329_v61, 1 }
 0x262   : > { %13906 = vst [vmem:[#allocation14_spill] sm:$0xff] %v11688_v29  ;;  %v11696_v4 = vsel %vm13909_vm6, %v13908_v3, %v13907_v42  ;;  %vm13913_vm13 = vmmov %vm13909_vm6  ;;  %vm13915_vm6 = vcmask 64512   ;;  %v13916_v45 = vsel %vm11147_vm10, %v11254_v60, 0.0  ;;  %v13918_v6 = vsel %vm11141_vm9, %v11245_v17, 0.0 }
 0x263   : > { %13910 = vst [vmem:[#allocation19_spill] sm:$0xff] %v11696_v4  ;;  %v11710_v20 = vsel %vm13913_vm13, %v13912_v49, %v13911_v40  ;;  %8978 = vmatmul.mubr.msk.f32.gmra.mrb[70].mxu0 %vm13915_vm6, %v11288_v1  ;;  %vm13917_vm7 = vmmov %vm13915_vm6  ;;  %vm13922_vm2 = vnez %v13821_v8  ;;  %v13925_v40 = vrot.slane %v11226_v9, 7  ;;  %v13928_v42 = vrot.slane %v11273_v18, 7  ;;  %v13941_v49 = vld [vmem:[#allocation51_spill] sm:$0xff] }
 0x264   : > { %13914 = vst [vmem:[#allocation22_spill] sm:$0xff] %v11710_v20  ;;  %9128 = vmatmul.mubr.msk.f32.gmra.mrb[24].mxu1 %vm13917_vm7, %v13916_v45  ;;  %vm13919_vm13 = vmmov %vm13915_vm6  ;;  %v13927_v45 = vrot.slane %v11311_v50, 7  ;;  %v13931_v60 = vrot.slane %v11466_v63, 7  ;;  %vm13936_vm4 = vcmask 64512   ;;  %v13937_v3 = vsel %vm11207_vm12, %v11306_v19, 0.0  ;;  %v13944_v63 = vld [vmem:[#allocation78_spill] sm:$0xff] }
 0x265   : > { %8980 = vmatprep.mubr.msk.f32.mxu0 %vm13919_vm13, %v13918_v6  ;;  %vm13920_vm7 = vmmov %vm13915_vm6  ;;  %vm13921_vm6 = vnez %v13817_v15  ;;  %v13924_v6 = vrot.slane %v11248_v28, 7  ;;  %vm13926_vm13 = vcmp.lt.s32.totalorder %v10787_v31, 1  ;;  %v13942_v17 = vrot.slane %v13941_v49, 7  ;;  %v13946_v19 = vld [vmem:[#allocation67_spill] sm:$0xff]  ;;  %v13956_v49 = vld [vmem:[#allocation58_spill] sm:$0xff] }
 0x266   : > { %9130 = vmatprep.mubr.msk.f32.mxu1 %vm13920_vm7, %v11321_v2  ;;  %vm13929_vm7 = vmmov %vm13926_vm13  ;;  %vm13943_vm9 = vnez %v13833_v44  ;;  %v13957_v44 = vrot.slane %v13956_v49, 1  ;;  %vm13976_vm10 = vcmask 64512  }
 0x267   : > { %v11761_v25 = vsel %vm13926_vm13, %v13925_v40, %v13924_v6  ;;  %v11769_v2 = vsel %vm13929_vm7, %v13928_v42, %v13927_v45  ;;  %v13932_v40 = vrot.slane %v11329_v61, 7  ;;  %vm13933_vm13 = vmmov %vm13929_vm7  ;;  %vm13935_vm7 = vnez %v13715_v23  ;;  %8981 = vmatmul.mubr.msk.f32.gmra.mrb[72].mxu0 %vm13936_vm4, %v11325_v21  ;;  %v13954_v23 = vld [vmem:[#allocation2_spill] sm:$0xff] }
 0x268   : > { %vm13938_vm1 = vmmov %vm13936_vm4  ;;  %v2608_v45 = vsel %vm13943_vm9, %v11356_v37, 0.0  ;;  %vm13945_vm4 = vnez %v13855_v5  ;;  %vm13950_vm9 = vnez %v13872_v57  ;;  %v13955_v37 = vrot.slane %v13954_v23, 1  ;;  %v14402_v57 = vld [vmem:[#allocation2_spill] sm:$0xff] }
 0x269   : > { %v11783_v6 = vsel %vm13933_vm13, %v13932_v40, %v13931_v60  ;;  %9131 = vmatmul.mubr.msk.f32.gmra.mrb[26].mxu1 %vm13938_vm1, %v13937_v3  ;;  %v13939_v60 = vld [vmem:[#allocation57_spill] sm:$0xff]  ;;  %v13980_v3 = vld [vmem:[#allocation15_spill] sm:$0xff]  ;;  %v14371_v5 = vsel %vm13950_vm9, %v11559_v14, 0.0 }
 0x26a   : > { %13934 = vst [vmem:[#allocation25_spill] sm:$0xff] %v11783_v6  ;;  %v13940_v40 = vrot.slane %v13939_v60, 7  ;;  %v13947_v60 = vsel %vm13935_vm7, %v13946_v19, 0.0  ;;  %vm13958_vm7 = vcmp.lt.s32.totalorder %v10787_v31, 7  ;;  %v13987_v43 = vrot.slane %v13980_v3, 7 }
 0x26b   : > { %8983 = vmatprep.mubr.msk.f32.mxu0 %vm13938_vm1, %v13947_v60  ;;  %v11853_v19 = vsel %vm13958_vm7, %v13957_v44, %v13955_v37  ;;  %v13960_v60 = vld [vmem:[#allocation32_spill] sm:$0xff]  ;;  %vm13963_vm8 = vmmov %vm13958_vm7  ;;  %v13973_v37 = vrot.slane %v13954_v23, 7 }
 0x26c   : > { %v11805_v42 = vsel %vm13933_vm13, %v13942_v17, %v13940_v40  ;;  %v13948_v17 = vld [vmem:[#allocation73_spill] sm:$0xff]  ;;  %vm13949_vm13 = vmmov %vm13938_vm1  ;;  %v3894_v40 = vsel %vm11437_vm14, %v11368_v53, 0.0  ;;  %vm13952_vm1 = vnez %v13898_v46  ;;  %13959 = vst [vmem:[#allocation26_spill] sm:$0xff] %v11853_v19  ;;  %v13961_v21 = vrot.slane %v13960_v60, 1  ;;  %v14393_v46 = vld [vmem:[#allocation39_spill] sm:$0xff] }
 0x26d   : > { %9133 = vmatprep.mubr.msk.f32.mxu1 %vm13949_vm13, %v13948_v17  ;;  %v13962_v17 = vrot.slane %v11361_v47, 1  ;;  %vm13965_vm13 = vcmask 64512   ;;  %vm13975_vm14 = vcmp.lt.s32.totalorder %v10787_v31, 1  ;;  %v14383_v48 = vsel %vm13952_vm1, %v11769_v2, 0.0 }
 0x26e   : > { %8984 = vmatmul.mubr.msk.f32.gmra.mrb[74].mxu0 %vm13965_vm13, %v11805_v42  ;;  %vm13966_vm7 = vmmov %vm13965_vm13 }
 0x26f   : > { %v11861_v1 = vsel %vm13963_vm8, %v13962_v17, %v13961_v21  ;;  %9134 = vmatmul.mubr.msk.f32.gmra.mrb[28].mxu1 %vm13966_vm7, %v3894_v40  ;;  %vm13967_vm8 = vnez %v13801_v59  ;;  %vm13968_vm12 = vmmov %vm13966_vm7  ;;  %v13974_v21 = vrot.slane %v13956_v49, 7  ;;  %v3896_v17 = vsel %vm11443_vm15, %v11386_v55, 0.0  ;;  %v13978_v40 = vld [vmem:[#allocation16_spill] sm:$0xff] }
 0x270   : > { %13964 = vst [vmem:[#allocation27_spill] sm:$0xff] %v11861_v1  ;;  %8986 = vmatprep.mubr.msk.f32.mxu0 %vm13968_vm12, %v2608_v45  ;;  %vm13969_vm13 = vmmov %vm13966_vm7  ;;  %vm13970_vm7 = vnez %v13805_v56  ;;  %v2610_v45 = vsel %vm13945_vm4, %v11378_v35, 0.0  ;;  %v13979_v44 = vrot.slane %v13978_v40, 1  ;;  %v13981_v1 = vrot.slane %v13980_v3, 1 }
 0x271   : > { %9136 = vmatprep.mubr.msk.f32.mxu1 %vm13969_vm13, %v11853_v19  ;;  %v11911_v7 = vsel %vm13975_vm14, %v13974_v21, %v13973_v37  ;;  %vm13977_vm13 = vmmov %vm13976_vm10  ;;  %vm13982_vm14 = vcmp.lt.s32.totalorder %v10787_v31, 7  ;;  %v13986_v21 = vrot.slane %v13978_v40, 7  ;;  %v3898_v55 = vsel %vm11471_vm0, %v11405_v41, 0.0 }
 0x272   : > { %8987 = vmatmul.mubr.msk.f32.gmra.mrb[76].mxu0 %vm13976_vm10, %v11911_v7  ;;  %v11928_v37 = vsel %vm13982_vm14, %v13981_v1, %v13979_v44  ;;  %vm13984_vm12 = vmmov %vm13976_vm10  ;;  %v2612_v1 = vsel %vm11613_vm3, %v13944_v63, 0.0  ;;  %v13991_v44 = vld [vmem:[#allocation21_spill] sm:$0xff]  ;;  %v3900_v41 = vsel %vm13967_vm8, %v11461_v34, 0.0  ;;  %v3902_v34 = vsel %vm13970_vm7, %v11551_v16, 0.0 }
 0x273   : > { %9137 = vmatmul.mubr.msk.f32.gmra.mrb[30].mxu1 %vm13977_vm13, %v3896_v17  ;;  %13983 = vst [vmem:[#allocation78_spill] sm:$0xff] %v11928_v37  ;;  %8989 = vmatprep.mubr.msk.f32.mxu0 %vm13984_vm12, %v2610_v45  ;;  %vm13985_vm15 = vmmov %vm13976_vm10  ;;  %vm13988_vm10 = vcmp.lt.s32.totalorder %v10787_v31, 1  ;;  %v13992_v45 = vrot.slane %v13991_v44, 1  ;;  %v3904_v16 = vsel %vm11507_vm11, %v11567_v36, 0.0  ;;  %v3906_v36 = vsel %vm13921_vm6, %v11600_v22, 0.0 }
 0x274   : > { %9139 = vmatprep.mubr.msk.f32.mxu1 %vm13985_vm15, %v11928_v37  ;;  %v11939_v17 = vsel %vm13988_vm10, %v13987_v43, %v13986_v21  ;;  %vm13989_vm13 = vmmov %vm13984_vm12  ;;  %v13993_v37 = vld [vmem:[#allocation20_spill] sm:$0xff]  ;;  %v13999_v21 = vrot.slane %v13991_v44, 7 }
 0x275   : > { %vm13990_vm15 = vmmov %vm13984_vm12  ;;  %v13994_v10 = vrot.slane %v13993_v37, 1  ;;  %v14000_v32 = vrot.slane %v13993_v37, 7 }
 0x276   : > { %8990 = vmatmul.mubr.msk.f32.gmra.mrb[78].mxu0 %vm13989_vm13, %v11939_v17  ;;  %vm13995_vm12 = vmmov %vm13982_vm14 }
 0x277   : > { %9140 = vmatmul.mubr.msk.f32.gmra.mrb[0].mxu1 %vm13990_vm15, %v3898_v55  ;;  %v11956_v43 = vsel %vm13995_vm12, %v13994_v10, %v13992_v45  ;;  %vm13997_vm14 = vmmov %vm13989_vm13  ;;  %v2614_v10 = vsel %vm13950_vm9, %v11453_v51, 0.0 }
 0x278   : > { %13996 = vst [vmem:[#allocation32_spill] sm:$0xff] %v11956_v43  ;;  %8992 = vmatprep.mubr.msk.f32.mxu0 %vm13997_vm14, %v2612_v1  ;;  %vm13998_vm10 = vmmov %vm13989_vm13  ;;  %vm14001_vm13 = vcmp.lt.s32.totalorder %v10787_v31, 1  ;;  %v14004_v1 = vld [vmem:[#allocation24_spill] sm:$0xff]  ;;  %vm14008_vm14 = vcmp.lt.s32.totalorder %v10787_v31, 7 }
 0x279   : > { %9142 = vmatprep.mubr.msk.f32.mxu1 %vm13998_vm10, %v11956_v43  ;;  %v11967_v55 = vsel %vm14001_vm13, %v14000_v32, %v13999_v21  ;;  %vm14002_vm15 = vmmov %vm13998_vm10  ;;  %v14005_v45 = vrot.slane %v14004_v1, 1  ;;  %v14006_v43 = vld [vmem:[#allocation23_spill] sm:$0xff]  ;;  %v14011_v21 = vrot.slane %v14004_v1, 7 }
 0x27a   : > { %8993 = vmatmul.mubr.msk.f32.gmra.mrb[80].mxu0 %vm14002_vm15, %v11967_v55  ;;  %vm14003_vm12 = vmmov %vm13998_vm10  ;;  %v14007_v19 = vrot.slane %v14006_v43, 1  ;;  %v14012_v59 = vrot.slane %v14006_v43, 7  ;;  %vm14013_vm15 = vcmp.lt.s32.totalorder %v10787_v31, 1 }
 0x27b   : > { %9143 = vmatmul.mubr.msk.f32.gmra.mrb[2].mxu1 %vm14003_vm12, %v3900_v41  ;;  %8995 = vmatprep.mubr.msk.f32.mxu0 %vm13998_vm10, %v2614_v10  ;;  %vm14010_vm13 = vmmov %vm13998_vm10  ;;  %v14016_v10 = vld [vmem:[#allocation33_spill] sm:$0xff] }
 0x27c   : > { %v11984_v32 = vsel %vm14008_vm14, %v14007_v19, %v14005_v45  ;;  %v11995_v41 = vsel %vm14013_vm15, %v14012_v59, %v14011_v21  ;;  %vm14014_vm12 = vmmov %vm13998_vm10  ;;  %vm14015_vm14 = vnez %v13876_v38  ;;  %v14017_v45 = vrot.slane %v14016_v10, 1 }
 0x27d   : > { %14009 = vst [vmem:[#allocation90_spill] sm:$0xff] %v11984_v32  ;;  %9145 = vmatprep.mubr.msk.f32.mxu1 %vm14010_vm13, %v11984_v32  ;;  %v2616_v19 = vsel %vm14015_vm14, %v11503_v27, 0.0  ;;  %v14018_v32 = vld [vmem:[#allocation30_spill] sm:$0xff]  ;;  %vm14020_vm13 = vcmp.lt.s32.totalorder %v10787_v31, 7  ;;  %vm14022_vm15 = vmmov %vm13998_vm10  ;;  %v14024_v21 = vrot.slane %v14016_v10, 7 }
 0x27e   : > { %8996 = vmatmul.mubr.msk.f32.gmra.mrb[82].mxu0 %vm14014_vm12, %v11995_v41  ;;  %v14019_v53 = vrot.slane %v14018_v32, 1  ;;  %vm14023_vm7 = vmmov %vm13998_vm10  ;;  %v14025_v56 = vrot.slane %v14018_v32, 7  ;;  %vm14026_vm12 = vcmp.lt.s32.totalorder %v10787_v31, 1 }
 0x27f   : > { %9146 = vmatmul.mubr.msk.f32.gmra.mrb[4].mxu1 %vm13998_vm10, %v3902_v34  ;;  %8998 = vmatprep.mubr.msk.f32.mxu0 %vm14022_vm15, %v2616_v19  ;;  %vm14027_vm10 = vmmov %vm14023_vm7  ;;  %v14028_v19 = vld [vmem:[#allocation37_spill] sm:$0xff] }
 0x280   : > { %v12012_v59 = vsel %vm14020_vm13, %v14019_v53, %v14017_v45  ;;  %v12023_v34 = vsel %vm14026_vm12, %v14025_v56, %v14024_v21  ;;  %v2618_v53 = vsel %vm11656_vm5, %v11559_v14, 0.0  ;;  %v14029_v45 = vrot.slane %v14028_v19, 1  ;;  %vm14033_vm15 = vmmov %vm14023_vm7 }
 0x281   : > { %14021 = vst [vmem:[#allocation91_spill] sm:$0xff] %v12012_v59  ;;  %9148 = vmatprep.mubr.msk.f32.mxu1 %vm14023_vm7, %v12012_v59  ;;  %v14030_v59 = vld [vmem:[#allocation36_spill] sm:$0xff]  ;;  %vm14034_vm12 = vmmov %vm14023_vm7  ;;  %v14035_v21 = vrot.slane %v14028_v19, 7 }
 0x282   : > { %8999 = vmatmul.mubr.msk.f32.gmra.mrb[84].mxu0 %vm14027_vm10, %v12023_v34  ;;  %v14031_v0 = vrot.slane %v14030_v59, 1  ;;  %v14036_v12 = vrot.slane %v14030_v59, 7  ;;  %vm14037_vm10 = vcmp.lt.s32.totalorder %v10787_v31, 1  ;;  %vm14047_vm6 = vmmov %vm14023_vm7 }
 0x283   : > { %9149 = vmatmul.mubr.msk.f32.gmra.mrb[6].mxu1 %vm14023_vm7, %v3904_v16  ;;  %9001 = vmatprep.mubr.msk.f32.mxu0 %vm14033_vm15, %v2618_v53  ;;  %vm14039_vm15 = vmmov %vm14023_vm7  ;;  %v14040_v53 = vld [vmem:[#allocation46_spill] sm:$0xff] }
 0x284   : > { %v12040_v56 = vsel %vm14020_vm13, %v14031_v0, %v14029_v45  ;;  %v12051_v16 = vsel %vm14037_vm10, %v14036_v12, %v14035_v21  ;;  %vm14038_vm13 = vnez %v13894_v24  ;;  %v14041_v45 = vrot.slane %v14040_v53, 1  ;;  %vm14046_vm10 = vmmov %vm14023_vm7  ;;  %v14406_v24 = vld [vmem:[#allocation16_spill] sm:$0xff] }
 0x285   : > { %14032 = vst [vmem:[#allocation92_spill] sm:$0xff] %v12040_v56  ;;  %9151 = vmatprep.mubr.msk.f32.mxu1 %vm14034_vm12, %v12040_v56  ;;  %v2620_v0 = vsel %vm14038_vm13, %v11592_v62, 0.0  ;;  %v14042_v56 = vld [vmem:[#allocation44_spill] sm:$0xff]  ;;  %vm14044_vm12 = vcmp.lt.s32.totalorder %v10787_v31, 7  ;;  %v1535_v21 = vadd.s32 240, %v10787_v31  ;;  %v14048_v15 = vrot.slane %v14040_v53, 7 }
 0x286   : > { %9002 = vmatmul.mubr.msk.f32.gmra.mrb[86].mxu0 %vm14023_vm7, %v12051_v16  ;;  %v14043_v33 = vrot.slane %v14042_v56, 1  ;;  %v14049_v22 = vrot.slane %v14042_v56, 7  ;;  %vm14050_vm7 = vcmp.lt.s32.totalorder %v10787_v31, 1  ;;  %v14380_v38 = vsel %vm14038_vm13, %v11761_v25, 0.0 }
 0x287   : > { %9152 = vmatmul.mubr.msk.f32.gmra.mrb[8].mxu1 %vm14039_vm15, %v3906_v36  ;;  %9004 = vmatprep.mubr.msk.f32.mxu0 %vm14046_vm10, %v2620_v0  ;;  %vm14051_vm15 = vmmov %vm14047_vm6  ;;  %v2622_v0 = vsel %vm13952_vm1, %v11635_v11, 0.0  ;;  %v1751_v8 = vand.u32 15, %v1535_v21  ;;  %v14064_v21 = vrot.slane %v11273_v18, 1 }
 0x288   : > { %v12068_v12 = vsel %vm14044_vm12, %v14043_v33, %v14041_v45  ;;  %v12080_v36 = vsel %vm14050_vm7, %v14049_v22, %v14048_v15  ;;  %v3908_v33 = vsel %vm13922_vm2, %v11643_v54, 0.0  ;;  %v14052_v45 = vrot.slane %v11226_v9, 1  ;;  %vm14056_vm10 = vmmov %vm14047_vm6 }
 0x289   : > { %14045 = vst [vmem:[#allocation93_spill] sm:$0xff] %v12068_v12  ;;  %9154 = vmatprep.mubr.msk.f32.mxu1 %vm14047_vm6, %v12068_v12  ;;  %v14053_v12 = vld [vmem:[#allocation49_spill] sm:$0xff]  ;;  %v1536_v15 = vadd.s32 248, %v10787_v31  ;;  %vm14057_vm7 = vmmov %vm14047_vm6  ;;  %v14058_v54 = vrot.slane %v11226_v9, 7 }
 0x28a   : > { %9005 = vmatmul.mubr.msk.f32.gmra.mrb[88].mxu0 %vm14051_vm15, %v12080_v36  ;;  %v14054_v47 = vrot.slane %v14053_v12, 1  ;;  %vm14060_vm15 = vcmp.lt.s32.totalorder %v10787_v31, 1  ;;  %vm14068_vm2 = vmmov %vm14057_vm7 }
 0x28b   : > { %9155 = vmatmul.mubr.msk.f32.gmra.mrb[10].mxu1 %vm14047_vm6, %v3908_v33  ;;  %9007 = vmatprep.mubr.msk.f32.mxu0 %vm14056_vm10, %v2622_v0  ;;  %v14059_v33 = vrot.slane %v14053_v12, 7  ;;  %vm14061_vm6 = vnez %v13825_v52  ;;  %vm14063_vm10 = vnez %v13902_v13  ;;  %v14070_v52 = vmov 0  ;;  %vm14084_vm11 = vmmov %vm14068_vm2 }
 0x28c   : > { %v12097_v22 = vsel %vm14044_vm12, %v14054_v47, %v14052_v45  ;;  %v3910_v47 = vsel %vm14061_vm6, %v11688_v29, 0.0  ;;  %vm14062_vm12 = vmmov %vm14057_vm7  ;;  %v2624_v0 = vsel %vm14063_vm10, %v11761_v25, 0.0  ;;  %v14065_v45 = vrot.slane %v11248_v28, 1 }
 0x28d   : > { %14055 = vst [vmem:[#allocation94_spill] sm:$0xff] %v12097_v22  ;;  %9157 = vmatprep.mubr.msk.f32.mxu1 %vm14057_vm7, %v12097_v22  ;;  %v12109_v6 = vsel %vm14060_vm15, %v14059_v33, %v14058_v54  ;;  %vm14066_vm15 = vcmp.lt.s32.totalorder %v10787_v31, 7  ;;  %v1758_v33 = vand.u32 15, %v1536_v15  ;;  %vm14069_vm6 = vmmov %vm14068_vm2  ;;  %v14073_v29 = vrot.slane %v11248_v28, 7 }
 0x28e   : > { %9008 = vmatmul.mubr.msk.f32.gmra.mrb[90].mxu0 %vm14062_vm12, %v12109_v6  ;;  %v12126_v54 = vsel %vm14066_vm15, %v14065_v45, %v14064_v21  ;;  %vm12131_vm12 = vcmp.ge.s32.totalorder %v1751_v8, 1  ;;  %vm14075_vm15 = vnez %v13849_v30  ;;  %v14077_v21 = vrot.slane %v11329_v61, 1  ;;  %vm14094_vm8 = vmmov %vm14068_vm2 }
 0x28f   : > { %9158 = vmatmul.mubr.msk.f32.gmra.mrb[12].mxu1 %vm14057_vm7, %v3910_v47  ;;  %14067 = vst [vmem:[#allocation95_spill] sm:$0xff] %v12126_v54  ;;  %9010 = vmatprep.mubr.msk.f32.mxu0 %vm14068_vm2, %v2624_v0  ;;  %v14071_v52 = vsel %vm12131_vm12, 4294967295, %v14070_v52  ;;  %v14072_v47 = vrot.slane %v11273_v18, 7  ;;  %vm14074_vm7 = vcmp.lt.s32.totalorder %v10787_v31, 1  ;;  %v3912_v15 = vsel %vm14075_vm15, %v11696_v4, 0.0  ;;  %vm14098_vm0 = vmmov %vm14068_vm2 }
 0x290   : > { %9160 = vmatprep.mubr.msk.f32.mxu1 %vm14069_vm6, %v12126_v54  ;;  %v1541_v0 = vand.u32 15, %v10787_v31  ;;  %v2626_v8 = vsel %vm12131_vm12, %v11769_v2, 0.0  ;;  %vm14076_vm6 = vmmov %vm14068_vm2  ;;  %vm12161_vm15 = vcmp.le.s32.totalorder %v1758_v33, 14  ;;  %v14085_v30 = vrot.slane %v11329_v61, 7  ;;  %v14116_v54 = vld [vmem:[#allocation60_spill] sm:$0xff] }
 0x291   : > { %v12141_v22 = vsel %vm14074_vm7, %v14073_v29, %v14072_v47  ;;  %v14078_v29 = vrot.slane %v11311_v50, 1  ;;  %vm14079_vm7 = vcmp.lt.s32.totalorder %v10787_v31, 7  ;;  %v14081_v47 = vmov 0  ;;  %vm14121_vm12 = vmmov %vm14098_vm0 }
 0x292   : > { %9011 = vmatmul.mubr.msk.f32.gmra.mrb[92].mxu0 %vm14068_vm2, %v12141_v22  ;;  %v14082_v47 = vsel %vm12161_vm15, 4294967295, %v14081_v47  ;;  %v3914_v33 = vsel %vm12161_vm15, %v11710_v20, 0.0  ;;  %vm14096_vm15 = vmmov %vm14068_vm2  ;;  %v14104_v20 = vld [vmem:[#allocation4_spill] sm:$0xff] }
 0x293   : > { %9161 = vmatmul.mubr.msk.f32.gmra.mrb[14].mxu1 %vm14076_vm6, %v3912_v15  ;;  %v12159_v45 = vsel %vm14079_vm7, %v14078_v29, %v14077_v21  ;;  %14083 = vst [vmem:[#allocation97_spill] sm:$0xff] %v14082_v47  ;;  %9013 = vmatprep.mubr.msk.f32.mxu0 %vm14084_vm11, %v2626_v8  ;;  %v14086_v15 = vrot.slane %v11311_v50, 7  ;;  %vm14087_vm6 = vcmp.lt.s32.totalorder %v10787_v31, 1  ;;  %vm12179_vm7 = vcmp.ge.s32.totalorder %v1541_v0, 1  ;;  %vm14091_vm11 = vmmov %vm14068_vm2  ;;  %v14092_v8 = vld [vmem:[#allocation17_spill] sm:$0xff]  ;;  %v14097_v0 = vld [vmem:[#allocation50_spill] sm:$0xff] }
 0x294   : > { %14080 = vst [vmem:[#allocation96_spill] sm:$0xff] %v12159_v45  ;;  %9163 = vmatprep.mubr.msk.f32.mxu1 %vm14068_vm2, %v12159_v45  ;;  %v14088_v21 = vmov 0  ;;  %v4334_v29 = vsel %vm12179_vm7, %v14092_v8, 0.0  ;;  %v14099_v8 = vld [vmem:[#allocation29_spill] sm:$0xff]  ;;  %v14106_v45 = vld [vmem:[#allocation63_spill] sm:$0xff] }
 0x295   : > { %v12174_v4 = vsel %vm14087_vm6, %v14086_v15, %v14085_v30  ;;  %v14089_v21 = vsel %vm12179_vm7, 4294967295, %v14088_v21  ;;  %vm14093_vm6 = vmmov %vm14068_vm2  ;;  %v14095_v30 = vld [vmem:[#allocation28_spill] sm:$0xff] }
 0x296   : > { %14090 = vst [vmem:[#allocation98_spill] sm:$0xff] %v14089_v21  ;;  %9014 = vmatmul.mubr.msk.f32.gmra.mrb[94].mxu0 %vm14091_vm11, %v12174_v4  ;;  %v12199_v15 = vld [vmem:[%s13344_s5 + $0x30] sm:$0xff]  ;;  %vm14100_vm11 = vmmov %vm14098_vm0  ;;  %v14102_v21 = vld [vmem:[#allocation45_spill] sm:$0xff] }
 0x297   : > { %9164 = vmatmul.mubr.msk.f32.gmra.mrb[16].mxu1 %vm14068_vm2, %v3914_v33  ;;  %9018 = vmatprep.mubr.msk.f32.mxu0 %vm14093_vm6, %v13960_v60  ;;  %v12204_v33 = vld [vmem:[%s13347_s8] sm:$0xff]  ;;  %vm14107_vm2 = vmmov %vm14098_vm0 }
 0x298   : > { %9168 = vmatprep.mubr.msk.f32.mxu1 %vm14094_vm8, %v4334_v29  ;;  %v14101_v29 = vld [vmem:[#allocation80_spill] sm:$0xff]  ;;  %vm14103_vm8 = vnez %v13747_v39  ;;  %vm14115_vm7 = vmmov %vm14098_vm0 }
 0x299   : > { %v4336_v47 = vsel %vm14103_vm8, %v14102_v21, 0.0  ;;  %vm14113_vm8 = vmmov %vm14098_vm0  ;;  %v14114_v21 = vld [vmem:[#allocation66_spill] sm:$0xff] }
 0x29a   : > { %9019 = vmatmul.mubr.msk.f32.vlgmr.msra.gmra.mrb[64].mxu0 %vm14096_vm15, %v14095_v30  ;;  %vm14105_vm15 = vmmov %vm14098_vm0 }
 0x29b   : > { %9169 = vmatmul.mubr.msk.f32.vlgmr.msra.gmra.mrb[18].mxu1 %vm14098_vm0, %v14097_v0  ;;  %9021 = vmatprep.mubr.msk.f32.mxu0 %vm14100_vm11, %v14099_v8  ;;  %v10332_v0 = vld [vmem:[%s13344_s5 + $0x8] sm:$0xff]  ;;  %vm14111_vm11 = vmmov %vm14098_vm0 }
 0x29c   : > { %9217 = vmatpush3.msra.mxu1 %v14101_v29  ;;  %9171 = vmatprep.mubr.msk.f32.mxu1 %vm14098_vm0, %v4336_v47  ;;  %v14108_v29 = vld [vmem:[#allocation31_spill] sm:$0xff]  ;;  %v14110_v47 = vld [vmem:[#allocation6_spill] sm:$0xff] }
 0x29d   : > { %9067 = vmatpush3.msra.mxu0 %v10332_v0  ;;  %9266 = vmatprep.subr.mxu1 %v12199_v15  ;;  %vm14109_vm6 = vnez %v14108_v29  ;;  %v14112_v0 = vld [vmem:[#allocation41_spill] sm:$0xff]  ;;  %v14122_v29 = vld [vmem:[#allocation54_spill] sm:$0xff] }
 0x29e   : > { %9416 = vmatprep.subr.mxu0 %v12204_v33  ;;  %9022 = vmatmul.mubr.msk.f32.gmra.mrb[66].mxu0 %vm14105_vm15, %v14104_v20  ;;  %v4338_v39 = vsel %vm14109_vm6, %v11222_v26, 0.0  ;;  %v14117_v20 = vld [vmem:[#allocation38_spill] sm:$0xff]  ;;  %vm14123_vm6 = vmmov %vm14098_vm0  ;;  %v14124_v26 = vld [vmem:[#allocation71_spill] sm:$0xff] }
 0x29f   : > { %9172 = vmatmul.mubr.msk.f32.gmra.mrb[20].mxu1 %vm14107_vm2, %v14106_v45  ;;  %9024 = vmatprep.mubr.msk.f32.mxu0 %vm14111_vm11, %v14110_v47  ;;  %vm14118_vm15 = vnez %v14117_v20  ;;  %v14119_v45 = vld [vmem:[#allocation39_spill] sm:$0xff]  ;;  %vm14120_vm2 = vmmov %vm14098_vm0  ;;  %v14131_v20 = vld [vmem:[#allocation57_spill] sm:$0xff] }
 0x2a0   : > { %9174 = vmatprep.mubr.msk.f32.mxu1 %vm14098_vm0, %v4338_v39  ;;  %v4340_v8 = vsel %vm14118_vm15, %v14116_v54, 0.0  ;;  %vm14125_vm11 = vmmov %vm14098_vm0  ;;  %v14126_v39 = vld [vmem:[#allocation67_spill] sm:$0xff]  ;;  %v14135_v54 = vld [vmem:[#allocation52_spill] sm:$0xff] }
 0x2a1   : > { %vm14132_vm15 = vmmov %vm14098_vm0 }
 0x2a2   : > { %9025 = vmatmul.mubr.msk.f32.gmra.mrb[68].mxu0 %vm14113_vm8, %v14112_v0  ;;  %v14127_v0 = vld [vmem:[#allocation42_spill] sm:$0xff] }
 0x2a3   : > { %9175 = vmatmul.mubr.msk.f32.gmra.mrb[22].mxu1 %vm14115_vm7, %v14114_v21  ;;  %9027 = vmatprep.mubr.msk.f32.mxu0 %vm14120_vm2, %v14119_v45  ;;  %vm14128_vm8 = vnez %v14127_v0  ;;  %v14129_v21 = vld [vmem:[#allocation51_spill] sm:$0xff]  ;;  %vm14130_vm7 = vmmov %vm14098_vm0 }
 0x2a4   : > { %9177 = vmatprep.mubr.msk.f32.mxu1 %vm14121_vm12, %v4340_v8  ;;  %v4342_v47 = vsel %vm14128_vm8, %v14126_v39, 0.0  ;;  %vm14133_vm12 = vmmov %vm14098_vm0  ;;  %v14134_v8 = vld [vmem:[#allocation74_spill] sm:$0xff] }
 0x2a5   : > { %vm14137_vm2 = vmmov %vm14098_vm0 }
 0x2a6   : > { %9028 = vmatmul.mubr.msk.f32.gmra.mrb[70].mxu0 %vm14123_vm6, %v14122_v29  ;;  %vm14136_vm6 = vnez %v14135_v54  ;;  %vm14139_vm8 = vmmov %vm14098_vm0 }
 0x2a7   : > { %9178 = vmatmul.mubr.msk.f32.gmra.mrb[24].mxu1 %vm14125_vm11, %v14124_v26  ;;  %9030 = vmatprep.mubr.msk.f32.mxu0 %vm14130_vm7, %v14129_v21  ;;  %v4344_v29 = vsel %vm14136_vm6, %v14134_v8, 0.0  ;;  %vm14138_vm11 = vmmov %vm14098_vm0 }
 0x2a8   : > { %9180 = vmatprep.mubr.msk.f32.mxu1 %vm14098_vm0, %v4342_v47  ;;  %vm14140_vm7 = vmmov %vm14098_vm0  ;;  %v14141_v47 = vld [vmem:[#allocation7_spill] sm:$0xff] }
 0x2a9   : > { %vm14144_vm6 = vmmov %vm14098_vm0 }
 0x2aa   : > { %9031 = vmatmul.mubr.msk.f32.gmra.mrb[72].mxu0 %vm14132_vm15, %v14131_v20  ;;  %vm14142_vm15 = vnez %v14141_v47 }
 0x2ab   : > { %9181 = vmatmul.mubr.msk.f32.gmra.mrb[26].mxu1 %vm14133_vm12, %v11805_v42  ;;  %9033 = vmatprep.mubr.msk.f32.mxu0 %vm14137_vm2, %v13956_v49  ;;  %v4346_v0 = vsel %vm14142_vm15, %v11378_v35, 0.0  ;;  %vm14143_vm12 = vmmov %vm14098_vm0 }
 0x2ac   : > { %9183 = vmatprep.mubr.msk.f32.mxu1 %vm14138_vm11, %v4344_v29  ;;  %vm14145_vm2 = vmmov %vm14098_vm0  ;;  %v4348_v29 = vsel %vm13945_vm4, %v13944_v63, 0.0 }
 0x2ad   : > { %vm14147_vm11 = vmmov %vm14098_vm0 }
 0x2ae   : > { %9034 = vmatmul.mubr.msk.f32.gmra.mrb[74].mxu0 %vm14139_vm8, %v13954_v23  ;;  %vm14146_vm8 = vmmov %vm14098_vm0 }
 0x2af   : > { %9184 = vmatmul.mubr.msk.f32.gmra.mrb[28].mxu1 %vm14140_vm7, %v11911_v7  ;;  %9036 = vmatprep.mubr.msk.f32.mxu0 %vm14098_vm0, %v13980_v3  ;;  %vm14148_vm7 = vmmov %vm14098_vm0 }
 0x2b0   : > { %9186 = vmatprep.mubr.msk.f32.mxu1 %vm14143_vm12, %v4346_v0  ;;  %v4350_v0 = vsel %vm11613_vm3, %v11453_v51, 0.0  ;;  %vm14150_vm12 = vmmov %vm14098_vm0 }
 0x2b2   : > { %9037 = vmatmul.mubr.msk.f32.gmra.mrb[76].mxu0 %vm14144_vm6, %v13978_v40  ;;  %vm14149_vm6 = vmmov %vm14098_vm0  ;;  %v14224_v40 = vld [vmem:[#allocation76_spill] sm:$0xff] }
 0x2b3   : > { %9187 = vmatmul.mubr.msk.f32.gmra.mrb[30].mxu1 %vm14145_vm2, %v11939_v17  ;;  %9039 = vmatprep.mubr.msk.f32.mxu0 %vm14146_vm8, %v13993_v37  ;;  %vm14151_vm2 = vmmov %vm14098_vm0  ;;  %v14220_v37 = vld [vmem:[#allocation54_spill] sm:$0xff] }
 0x2b4   : > { %9189 = vmatprep.mubr.msk.f32.mxu1 %vm14147_vm11, %v4348_v29  ;;  %vm14152_vm8 = vmmov %vm14098_vm0  ;;  %v4352_v29 = vsel %vm13950_vm9, %v11503_v27, 0.0 }
 0x2b5   : > { %vm14153_vm11 = vmmov %vm14098_vm0 }
 0x2b6   : > { %9040 = vmatmul.mubr.msk.f32.gmra.mrb[78].mxu0 %vm14148_vm7, %v13991_v44  ;;  %vm14154_vm7 = vmmov %vm14098_vm0 }
 0x2b7   : > { %9190 = vmatmul.mubr.msk.f32.gmra.mrb[0].mxu1 %vm14098_vm0, %v11967_v55  ;;  %9042 = vmatprep.mubr.msk.f32.mxu0 %vm14149_vm6, %v14006_v43  ;;  %vm14155_vm6 = vmmov %vm14098_vm0  ;;  %v14210_v43 = vld [vmem:[#allocation41_spill] sm:$0xff] }
 0x2b8   : > { %9192 = vmatprep.mubr.msk.f32.mxu1 %vm14150_vm12, %v4350_v0  ;;  %v4354_v0 = vsel %vm14015_vm14, %v11559_v14, 0.0  ;;  %vm14156_vm12 = vmmov %vm14098_vm0 }
 0x2ba   : > { %9043 = vmatmul.mubr.msk.f32.gmra.mrb[80].mxu0 %vm14151_vm2, %v14004_v1  ;;  %vm14157_vm2 = vmmov %vm14098_vm0 }
 0x2bb   : > { %9193 = vmatmul.mubr.msk.f32.gmra.mrb[2].mxu1 %vm14152_vm8, %v11995_v41  ;;  %9045 = vmatprep.mubr.msk.f32.mxu0 %vm14153_vm11, %v14018_v32  ;;  %vm14158_vm8 = vmmov %vm14098_vm0 }
 0x2bc   : > { %9195 = vmatprep.mubr.msk.f32.mxu1 %vm14154_vm7, %v4352_v29  ;;  %vm14159_vm11 = vmmov %vm14098_vm0  ;;  %v4356_v29 = vsel %vm11656_vm5, %v11592_v62, 0.0 }
 0x2bd   : > { %vm14160_vm7 = vmmov %vm14098_vm0 }
 0x2be   : > { %9046 = vmatmul.mubr.msk.f32.gmra.mrb[82].mxu0 %vm14098_vm0, %v14016_v10  ;;  %v14197_v10 = vld [vmem:[#allocation29_spill] sm:$0xff] }
 0x2bf   : > { %9196 = vmatmul.mubr.msk.f32.gmra.mrb[4].mxu1 %vm14155_vm6, %v12023_v34  ;;  %9048 = vmatprep.mubr.msk.f32.mxu0 %vm14156_vm12, %v14030_v59  ;;  %vm14161_vm6 = vmmov %vm14098_vm0 }
 0x2c0   : > { %9198 = vmatprep.mubr.msk.f32.mxu1 %vm14157_vm2, %v4354_v0  ;;  %vm14162_vm12 = vmmov %vm14098_vm0  ;;  %v4358_v0 = vsel %vm14038_vm13, %v11635_v11, 0.0 }
 0x2c1   : > { %vm14163_vm2 = vmmov %vm14098_vm0 }
 0x2c2   : > { %9049 = vmatmul.mubr.msk.f32.gmra.mrb[84].mxu0 %vm14158_vm8, %v14028_v19  ;;  %vm14164_vm8 = vmmov %vm14098_vm0  ;;  %v14187_v19 = vld [vmem:[#allocation5_spill] sm:$0xff] }
 0x2c3   : > { %9199 = vmatmul.mubr.msk.f32.gmra.mrb[6].mxu1 %vm14159_vm11, %v12051_v16  ;;  %9051 = vmatprep.mubr.msk.f32.mxu0 %vm14160_vm7, %v14042_v56  ;;  %vm14165_vm11 = vmmov %vm14098_vm0  ;;  %v14186_v56 = vld [vmem:[#allocation48_spill] sm:$0xff] }
 0x2c4   : > { %9201 = vmatprep.mubr.msk.f32.mxu1 %vm14098_vm0, %v4356_v29  ;;  %vm14166_vm7 = vmmov %vm14098_vm0  ;;  %v4360_v29 = vsel %vm13952_vm1, %v11761_v25, 0.0  ;;  %v6852_v25 = vld [vmem:[%s13346_s7] sm:$0xff] }
 0x2c6   : > { %9052 = vmatmul.mubr.msk.f32.gmra.mrb[86].mxu0 %vm14161_vm6, %v14040_v53  ;;  %vm14167_vm6 = vmmov %vm14098_vm0  ;;  %v14185_v53 = vmov 0.0  }
 0x2c7   : > { %9202 = vmatmul.mubr.msk.f32.gmra.mrb[8].mxu1 %vm14162_vm12, %v12080_v36  ;;  %9054 = vmatprep.mubr.msk.f32.mxu0 %vm14163_vm2, %v14053_v12  ;;  %vm14168_vm12 = vmmov %vm14098_vm0 }
 0x2c8   : > { %9204 = vmatprep.mubr.msk.f32.mxu1 %vm14164_vm8, %v4358_v0  ;;  %vm14169_vm2 = vmmov %vm14098_vm0  ;;  %v4362_v0 = vsel %vm14063_vm10, %v11769_v2, 0.0  ;;  %v14395_v2 = vld [vmem:[#allocation54_spill] sm:$0xff] }
 0x2c9   : > { %vm14170_vm8 = vmmov %vm14098_vm0 }
 0x2ca   : > { %9055 = vmatmul.mubr.msk.f32.gmra.mrb[88].mxu0 %vm14165_vm11, %v11226_v9  ;;  %vm14171_vm11 = vmmov %vm14098_vm0  ;;  %v14178_v9 = vld [vmem:[#allocation75_spill] sm:$0xff] }
 0x2cb   : > { %9205 = vmatmul.mubr.msk.f32.gmra.mrb[10].mxu1 %vm14166_vm7, %v12109_v6  ;;  %9057 = vmatprep.mubr.msk.f32.mxu0 %vm14098_vm0, %v11248_v28  ;;  %vm14172_vm7 = vmmov %vm14098_vm0  ;;  %v14175_v28 = vld [vmem:[#allocation82_spill] sm:$0xff]  ;;  %v14179_v12 = vrot.slane %v14178_v9, 7 }
 0x2cc   : > { %9207 = vmatprep.mubr.msk.f32.mxu1 %vm14167_vm6, %v4360_v29  ;;  %v14173_v29 = vld [vmem:[#allocation25_spill] sm:$0xff]  ;;  %vm14174_vm6 = vnez %v14071_v52  ;;  %v14184_v52 = vld [vmem:[#allocation47_spill] sm:$0xff] }
 0x2ce   : > { %9058 = vmatmul.mubr.msk.f32.gmra.mrb[90].mxu0 %vm14168_vm12, %v11273_v18  ;;  %v4364_v18 = vsel %vm14174_vm6, %v14173_v29, 0.0  ;;  %vm14176_vm12 = vmmov %vm14098_vm0  ;;  %vm14188_vm6 = vnez %v14187_v19  ;;  %v14194_v19 = vld [vmem:[#allocation34_spill] sm:$0xff] }
 0x2cf   : > { %9208 = vmatmul.mubr.msk.f32.gmra.mrb[12].mxu1 %vm14169_vm2, %v12141_v22  ;;  %9060 = vmatprep.mubr.msk.f32.mxu0 %vm14170_vm8, %v11311_v50  ;;  %vm14177_vm2 = vmmov %vm14098_vm0  ;;  %v14180_v50 = vrot.slane %v14175_v28, 7  ;;  %vm14181_vm8 = vcmp.lt.s32.totalorder %v10787_v31, 1  ;;  %v4786_v59 = vsel %vm14188_vm6, %v14186_v56, 0.0  ;;  %v14193_v56 = vld [vmem:[#allocation8_spill] sm:$0xff] }
 0x2d0   : > { %9210 = vmatprep.mubr.msk.f32.mxu1 %vm14171_vm11, %v4362_v0  ;;  %vm14182_vm11 = vmmov %vm14098_vm0 }
 0x2d1   : > { %v12364_v0 = vsel %vm14181_vm8, %v14180_v50, %v14179_v12  ;;  %v12381_v50 = vld [vmem:[%s13344_s5 + $0x38] sm:$0xff]  ;;  %vm14192_vm8 = vmmov %vm14098_vm0 }
 0x2d2   : > { %9061 = vmatmul.mubr.msk.f32.gmra.mrb[92].mxu0 %vm14172_vm7, %v11329_v61  ;;  %v6855_v61 = vpop.permute.xlu0 %6854  ;;  %vm14183_vm7 = vmmov %vm14098_vm0 }
 0x2d3   : > { %9211 = vmatmul.mubr.msk.f32.gmra.mrb[14].mxu1 %vm14098_vm0, %v12174_v4  ;;  %9063 = vmatprep.mubr.msk.f32.mxu0 %vm14176_vm12, %v14175_v28  ;;  %vm14189_vm12 = vmmov %vm14098_vm0 }
 0x2d4   : > { %9213 = vmatprep.mubr.msk.f32.mxu1 %vm14177_vm2, %v4364_v18  ;;  %v6859_v18 = vpop.permute.xlu1 %6858  ;;  %vm14190_vm2 = vmmov %vm14098_vm0 }
 0x2d5   : > { %vm14206_vm6 = vmmov %vm14098_vm0 }
 0x2d6   : > { %9064 = vmatmul.mubr.msk.f32.gmra.mrb[94].mxu0 %vm14182_vm11, %v14178_v9  ;;  %v6857_v12 = vpop.permute.xlu0 %6856  ;;  %vm14195_vm11 = vnez %v14194_v19 }
 0x2d7   : > { %9214 = vmatmul.mubr.msk.f32.gmra.mrb[16].mxu1 %vm14183_vm7, %v12364_v0  ;;  %9068 = vmatprep.mubr.f32.mxu0 %v14185_v53  ;;  %vm14196_vm7 = vmmov %vm14098_vm0 }
 0x2d8   : > { %9218 = vmatprep.mubr.msk.f32.mxu1 %vm14098_vm0, %v14184_v52  ;;  %v14191_v52 = vld [vmem:[#allocation59_spill] sm:$0xff] }
 0x2da   : > { %9069 = vmatmul.mubr.f32.vlgmr.msra.gmra.mrb[64].mxu0 %v14185_v53  ;;  %v6863_v19 = vpop.permute.xlu0 %6862 }
 0x2db   : > { %9219 = vmatmul.mubr.msk.f32.vlgmr.msra.gmra.mrb[18].mxu1 %vm14189_vm12, %v4786_v59  ;;  %9071 = vmatprep.mubr.msk.f32.mxu0 %vm14190_vm2, %v13960_v60  ;;  %v4788_v59 = vsel %vm14195_vm11, %v14193_v56, 0.0  ;;  %v6861_v60 = vpop.permute.xlu1 %6860  ;;  %vm14198_vm12 = vmmov %vm14098_vm0  ;;  %v14204_v56 = vld [vmem:[#allocation4_spill] sm:$0xff] }
 0x2dc   : > { %9267 = vmatpush3.msra.mxu1 %v12199_v15  ;;  %9221 = vmatprep.mubr.msk.f32.mxu1 %vm14192_vm8, %v14191_v52  ;;  %v14199_v15 = vld [vmem:[#allocation65_spill] sm:$0xff]  ;;  %vm14200_vm2 = vmmov %vm14098_vm0  ;;  %v14201_v52 = vld [vmem:[#allocation62_spill] sm:$0xff] }
 0x2dd   : > { %9417 = vmatpush3.msra.mxu0 %v12204_v33  ;;  %9316 = vmatprep.subr.mxu1 %v12381_v50  ;;  %v14202_v33 = vld [vmem:[#allocation40_spill] sm:$0xff]  ;;  %vm14205_vm11 = vmmov %vm14098_vm0 }
 0x2de   : > { %9072 = vmatmul.mubr.msk.f32.gmra.mrb[66].mxu0 %vm14196_vm7, %v14095_v30  ;;  %vm14203_vm8 = vnez %v14202_v33  ;;  %v14207_v30 = vld [vmem:[#allocation6_spill] sm:$0xff]  ;;  %vm14208_vm7 = vmmov %vm14098_vm0  ;;  %v14214_v33 = vld [vmem:[#allocation68_spill] sm:$0xff]  ;;  %v6867_v44 = vpop.permute.xlu0 %6866  ;;  %9466 = vmatprep.subr.mxu0 %v6852_v25 }
 0x2df   : > { %9222 = vmatmul.mubr.msk.f32.gmra.mrb[20].mxu1 %vm14098_vm0, %v4788_v59  ;;  %9074 = vmatprep.mubr.msk.f32.mxu0 %vm14198_vm12, %v14197_v10  ;;  %v4790_v32 = vsel %vm14203_vm8, %v14201_v52, 0.0  ;;  %v14209_v59 = vld [vmem:[#allocation70_spill] sm:$0xff]  ;;  %v6865_v1 = vpop.permute.xlu1 %6864  ;;  %vm14211_vm12 = vmmov %vm14098_vm0 }
 0x2e0   : > { %9224 = vmatprep.mubr.msk.f32.mxu1 %vm14200_vm2, %v14199_v15  ;;  %v14212_v15 = vld [vmem:[#allocation43_spill] sm:$0xff]  ;;  %vm14216_vm8 = vmmov %vm14098_vm0 }
 0x2e1   : > { %vm14213_vm2 = vnez %v14212_v15 }
 0x2e2   : > { %9075 = vmatmul.mubr.msk.f32.gmra.mrb[68].mxu0 %vm14205_vm11, %v14204_v56  ;;  %v14215_v52 = vsel %vm14213_vm2, %v14214_v33, 0.0  ;;  %vm14217_vm11 = vmmov %vm14098_vm0  ;;  %v6871_v33 = vpop.permute.xlu0 %6870 }
 0x2e3   : > { %9225 = vmatmul.mubr.msk.f32.gmra.mrb[22].mxu1 %vm14206_vm6, %v4790_v32  ;;  %9077 = vmatprep.mubr.msk.f32.mxu0 %vm14208_vm7, %v14207_v30  ;;  %v14218_v32 = vld [vmem:[#allocation73_spill] sm:$0xff]  ;;  %vm14219_vm6 = vmmov %vm14098_vm0  ;;  %v6869_v15 = vpop.permute.xlu1 %6868 }
 0x2e4   : > { %9227 = vmatprep.mubr.msk.f32.mxu1 %vm14098_vm0, %v14209_v59  ;;  %vm14221_vm7 = vmmov %vm14098_vm0  ;;  %v14222_v59 = vld [vmem:[#allocation53_spill] sm:$0xff] }
 0x2e5   : > { %vm14223_vm0 = vnez %v14222_v59  ;;  %vm14227_vm2 = vmmov %vm14219_vm6 }
 0x2e6   : > { %9078 = vmatmul.mubr.msk.f32.gmra.mrb[70].mxu0 %vm14211_vm12, %v14210_v43  ;;  %v14225_v3 = vsel %vm14223_vm0, %v14224_v40, 0.0  ;;  %vm14226_vm12 = vmmov %vm14219_vm6  ;;  %v14242_v40 = vld [vmem:[#allocation79_spill] sm:$0xff] }
 0x2e7   : > { %9228 = vmatmul.mubr.msk.f32.gmra.mrb[24].mxu1 %vm14216_vm8, %v14215_v52  ;;  %9080 = vmatprep.mubr.msk.f32.mxu0 %vm14217_vm11, %v14119_v45  ;;  %v14228_v52 = vld [vmem:[#allocation26_spill] sm:$0xff]  ;;  %vm14229_vm8 = vmmov %vm14227_vm2  ;;  %v6873_v59 = vpop.permute.xlu1 %6872 }
 0x2e8   : > { %9230 = vmatprep.mubr.msk.f32.mxu1 %vm14219_vm6, %v14218_v32  ;;  %vm14230_vm11 = vmmov %vm14227_vm2  ;;  %v14231_v32 = vld [vmem:[#allocation9_spill] sm:$0xff] }
 0x2e9   : > { %vm14232_vm6 = vnez %v14231_v32  ;;  %vm14236_vm0 = vmmov %vm14227_vm2  ;;  %v14246_v32 = vld [vmem:[#allocation32_spill] sm:$0xff] }
 0x2ea   : > { %9081 = vmatmul.mubr.msk.f32.gmra.mrb[72].mxu0 %vm14221_vm7, %v14220_v37  ;;  %v14233_v37 = vld [vmem:[#allocation77_spill] sm:$0xff]  ;;  %vm14235_vm7 = vmmov %vm14227_vm2 }
 0x2eb   : > { %9231 = vmatmul.mubr.msk.f32.gmra.mrb[26].mxu1 %vm14226_vm12, %v14225_v3  ;;  %9083 = vmatprep.mubr.msk.f32.mxu0 %vm14227_vm2, %v14129_v21  ;;  %v14234_v45 = vsel %vm14232_vm6, %v14233_v37, 0.0  ;;  %v14237_v3 = vld [vmem:[#allocation78_spill] sm:$0xff]  ;;  %vm14238_vm12 = vmmov %vm14236_vm0  ;;  %v14248_v37 = vld [vmem:[#allocation13_spill] sm:$0xff] }
 0x2ec   : > { %9233 = vmatprep.mubr.msk.f32.mxu1 %vm14229_vm8, %v14228_v52  ;;  %vm14239_vm2 = vmmov %vm14236_vm0  ;;  %v14240_v52 = vld [vmem:[#allocation11_spill] sm:$0xff] }
 0x2ed   : > { %vm14241_vm8 = vnez %v14240_v52  ;;  %vm14245_vm10 = vmmov %vm14236_vm0  ;;  %v14254_v52 = vld [vmem:[#allocation90_spill] sm:$0xff] }
 0x2ee   : > { %9084 = vmatmul.mubr.msk.f32.gmra.mrb[74].mxu0 %vm14230_vm11, %v14131_v20  ;;  %v14243_v20 = vsel %vm14241_vm8, %v14242_v40, 0.0  ;;  %vm14244_vm11 = vmmov %vm14236_vm0 }
 0x2ef   : > { %9234 = vmatmul.mubr.msk.f32.gmra.mrb[28].mxu1 %vm14235_vm7, %v14234_v45  ;;  %9086 = vmatprep.mubr.msk.f32.mxu0 %vm14236_vm0, %v13956_v49  ;;  %vm14247_vm7 = vmmov %vm14236_vm0  ;;  %v6875_v45 = vpop.permute.xlu0 %6874 }
 0x2f0   : > { %9236 = vmatprep.mubr.msk.f32.mxu1 %vm14238_vm12, %v14237_v3  ;;  %vm14249_vm12 = vnez %v14248_v37  ;;  %v14250_v3 = vld [vmem:[#allocation81_spill] sm:$0xff]  ;;  %vm14252_vm6 = vmmov %vm14236_vm0 }
 0x2f1   : > { %v14251_v49 = vsel %vm14249_vm12, %v14250_v3, 0.0  ;;  %vm14255_vm8 = vmmov %vm14236_vm0  ;;  %v14267_v37 = vld [vmem:[#allocation89_spill] sm:$0xff] }
 0x2f2   : > { %9087 = vmatmul.mubr.msk.f32.gmra.mrb[76].mxu0 %vm14239_vm2, %v13954_v23  ;;  %v6877_v23 = vpop.permute.xlu1 %6876  ;;  %vm14253_vm2 = vmmov %vm14236_vm0 }
 0x2f3   : > { %9237 = vmatmul.mubr.msk.f32.gmra.mrb[30].mxu1 %vm14244_vm11, %v14243_v20  ;;  %9418 = vmatprep.mubr.msk.f32.mxu0 %vm14245_vm10, %v6855_v61  ;;  %v6879_v20 = vpop.permute.xlu0 %6878  ;;  %vm14256_vm10 = vmmov %vm14236_vm0  ;;  %v14257_v61 = vld [vmem:[#allocation18_spill] sm:$0xff] }
 0x2f4   : > { %9239 = vmatprep.mubr.msk.f32.mxu1 %vm14247_vm7, %v14246_v32  ;;  %vm14258_vm11 = vnez %v14257_v61  ;;  %v14259_v32 = vld [vmem:[#allocation88_spill] sm:$0xff]  ;;  %vm14261_vm7 = vmmov %vm14236_vm0  ;;  %v14276_v61 = vld [vmem:[#allocation10_spill] sm:$0xff] }
 0x2f5   : > { %v14260_v40 = vsel %vm14258_vm11, %v14259_v32, 0.0  ;;  %vm14263_vm12 = vmmov %vm14236_vm0 }
 0x2f6   : > { %9419 = vmatmul.mubr.msk.f32.vlgmr.msra.gmra.mrb[96].mxu0 %vm14236_vm0, %v6857_v12  ;;  %v14262_v12 = vld [vmem:[#allocation91_spill] sm:$0xff]  ;;  %vm14272_vm11 = vmmov %vm14236_vm0 }
 0x2f7   : > { %9240 = vmatmul.mubr.msk.f32.gmra.mrb[0].mxu1 %vm14252_vm6, %v14251_v49  ;;  %9421 = vmatprep.mubr.msk.f32.mxu0 %vm14253_vm2, %v6859_v18  ;;  %v6881_v49 = vpop.permute.xlu1 %6880  ;;  %vm14264_vm6 = vmmov %vm14236_vm0  ;;  %v14265_v18 = vld [vmem:[#allocation83_spill] sm:$0xff] }
 0x2f8   : > { %9242 = vmatprep.mubr.msk.f32.mxu1 %vm14255_vm8, %v14254_v52  ;;  %vm14266_vm2 = vnez %v14265_v18  ;;  %vm14269_vm8 = vmmov %vm14236_vm0  ;;  %v14279_v18 = vld [vmem:[#allocation93_spill] sm:$0xff]  ;;  %9467 = vmatpush3.msra.mxu0 %v6852_v25  ;;  %v14466_v25 = vld [vmem:[#allocation26_spill] sm:$0xff] }
 0x2f9   : > { %v14268_v52 = vsel %vm14266_vm2, %v14267_v37, 0.0  ;;  %vm14280_vm2 = vmmov %vm14264_vm6 }
 0x2fa   : > { %9422 = vmatmul.mubr.msk.f32.gmra.mrb[98].mxu0 %vm14256_vm10, %v6861_v60  ;;  %vm14270_vm10 = vmmov %vm14236_vm0  ;;  %v14271_v60 = vld [vmem:[#allocation92_spill] sm:$0xff] }
 0x2fb   : > { %9243 = vmatmul.mubr.msk.f32.gmra.mrb[2].mxu1 %vm14261_vm7, %v14260_v40  ;;  %9424 = vmatprep.mubr.msk.f32.mxu0 %vm14236_vm0, %v6863_v19  ;;  %v6883_v40 = vpop.permute.xlu0 %6882  ;;  %vm14273_vm7 = vmmov %vm14236_vm0  ;;  %v14274_v19 = vld [vmem:[#allocation84_spill] sm:$0xff] }
 0x2fc   : > { %9245 = vmatprep.mubr.msk.f32.mxu1 %vm14263_vm12, %v14262_v12  ;;  %vm14275_vm0 = vnez %v14274_v19  ;;  %vm14278_vm12 = vmmov %vm14264_vm6  ;;  %v14293_v19 = vld [vmem:[#allocation14_spill] sm:$0xff] }
 0x2fd   : > { %v14277_v12 = vsel %vm14275_vm0, %v14276_v61, 0.0  ;;  %vm14289_vm0 = vmmov %vm14280_vm2 }
 0x2fe   : > { %9425 = vmatmul.mubr.msk.f32.gmra.mrb[100].mxu0 %vm14264_vm6, %v6865_v1  ;;  %v6885_v1 = vpop.permute.xlu1 %6884  ;;  %vm14379_vm9 = vmmov %vm14289_vm0 }
 0x2ff   : > { %9246 = vmatmul.mubr.msk.f32.gmra.mrb[4].mxu1 %vm14269_vm8, %v14268_v52  ;;  %9427 = vmatprep.mubr.msk.f32.mxu0 %vm14270_vm10, %v6867_v44  ;;  %v6887_v52 = vpop.permute.xlu0 %6886  ;;  %vm14281_vm8 = vmmov %vm14280_vm2  ;;  %v14282_v44 = vld [vmem:[#allocation85_spill] sm:$0xff] }
 0x300   : > { %9248 = vmatprep.mubr.msk.f32.mxu1 %vm14272_vm11, %v14271_v60  ;;  %vm14283_vm11 = vnez %v14282_v44  ;;  %v14284_v60 = vld [vmem:[#allocation12_spill] sm:$0xff]  ;;  %vm14286_vm10 = vmmov %vm14280_vm2  ;;  %v14302_v44 = vld [vmem:[#allocation19_spill] sm:$0xff] }
 0x301   : > { %v14285_v37 = vsel %vm14283_vm11, %v14284_v60, 0.0  ;;  %vm14298_vm11 = vmmov %vm14289_vm0 }
 0x302   : > { %9428 = vmatmul.mubr.msk.f32.gmra.mrb[102].mxu0 %vm14273_vm7, %v6869_v15  ;;  %vm14287_vm7 = vmmov %vm14280_vm2  ;;  %v14288_v15 = vld [vmem:[#allocation94_spill] sm:$0xff] }
 0x303   : > { %9249 = vmatmul.mubr.msk.f32.gmra.mrb[6].mxu1 %vm14278_vm12, %v14277_v12  ;;  %9430 = vmatprep.mubr.msk.f32.mxu0 %vm14264_vm6, %v6871_v33  ;;  %v6889_v12 = vpop.permute.xlu1 %6888  ;;  %vm14290_vm12 = vmmov %vm14289_vm0  ;;  %v14291_v33 = vld [vmem:[#allocation86_spill] sm:$0xff] }
 0x304   : > { %9251 = vmatprep.mubr.msk.f32.mxu1 %vm14280_vm2, %v14279_v18  ;;  %vm14292_vm6 = vnez %v14291_v33  ;;  %vm14295_vm2 = vmmov %vm14289_vm0  ;;  %v14305_v33 = vld [vmem:[#allocation96_spill] sm:$0xff] }
 0x305   : > { %v14294_v18 = vsel %vm14292_vm6, %v14293_v19, 0.0  ;;  %vm14306_vm6 = vmmov %vm14289_vm0 }
 0x306   : > { %9431 = vmatmul.mubr.msk.f32.gmra.mrb[104].mxu0 %vm14281_vm8, %v6873_v59  ;;  %vm14296_vm8 = vmmov %vm14289_vm0  ;;  %v14297_v59 = vld [vmem:[#allocation95_spill] sm:$0xff] }
 0x307   : > { %9252 = vmatmul.mubr.msk.f32.gmra.mrb[8].mxu1 %vm14286_vm10, %v14285_v37  ;;  %9433 = vmatprep.mubr.msk.f32.mxu0 %vm14287_vm7, %v6875_v45  ;;  %v6891_v37 = vpop.permute.xlu0 %6890  ;;  %vm14299_vm10 = vmmov %vm14289_vm0  ;;  %v14300_v45 = vld [vmem:[#allocation87_spill] sm:$0xff] }
 0x308   : > { %9254 = vmatprep.mubr.msk.f32.mxu1 %vm14289_vm0, %v14288_v15  ;;  %vm14301_vm7 = vnez %v14300_v45  ;;  %v14314_v45 = vrot.slane %v14175_v28, 1  ;;  %vm14388_vm13 = vmmov %vm14289_vm0 }
 0x309   : > { %v14303_v15 = vsel %vm14301_vm7, %v14302_v44, 0.0  ;;  %vm14326_vm7 = vmmov %vm14289_vm0 }
 0x30a   : > { %9434 = vmatmul.mubr.msk.f32.gmra.mrb[106].mxu0 %vm14290_vm12, %v6877_v23  ;;  %v6893_v23 = vpop.permute.xlu1 %6892  ;;  %vm14304_vm12 = vmmov %vm14289_vm0 }
 0x30b   : > { %9255 = vmatmul.mubr.msk.f32.gmra.mrb[10].mxu1 %vm14295_vm2, %v14294_v18  ;;  %9436 = vmatprep.mubr.msk.f32.mxu0 %vm14296_vm8, %v6879_v20  ;;  %v6895_v18 = vpop.permute.xlu0 %6894  ;;  %vm14307_vm2 = vmmov %vm14289_vm0  ;;  %v14308_v20 = vld [vmem:[#allocation35_spill] sm:$0xff] }
 0x30c   : > { %9257 = vmatprep.mubr.msk.f32.mxu1 %vm14298_vm11, %v14297_v59  ;;  %vm14309_vm11 = vnez %v14308_v20  ;;  %v14310_v59 = vld [vmem:[#allocation22_spill] sm:$0xff]  ;;  %vm14312_vm8 = vmmov %vm14289_vm0  ;;  %v14318_v20 = vld [vmem:[#allocation97_spill] sm:$0xff] }
 0x30d   : > { %v14311_v19 = vsel %vm14309_vm11, %v14310_v59, 0.0  ;;  %vm14389_vm1 = vmmov %vm14289_vm0 }
 0x30e   : > { %9437 = vmatmul.mubr.msk.f32.gmra.mrb[108].mxu0 %vm14299_vm10, %v6881_v49  ;;  %v14313_v49 = vrot.slane %v14178_v9, 1  ;;  %vm14315_vm10 = vcmp.lt.s32.totalorder %v10787_v31, 7 }
 0x30f   : > { %9258 = vmatmul.mubr.msk.f32.gmra.mrb[12].mxu1 %vm14289_vm0, %v14303_v15  ;;  %9439 = vmatprep.mubr.msk.f32.mxu0 %vm14304_vm12, %v6883_v40  ;;  %v6897_v40 = vpop.permute.xlu1 %6896  ;;  %vm14319_vm12 = vnez %v14318_v20  ;;  %v14327_v20 = vld [vmem:[#allocation63_spill] sm:$0xff] }
 0x310   : > { %9260 = vmatprep.mubr.msk.f32.mxu1 %vm14306_vm6, %v14305_v33  ;;  %v12528_v15 = vsel %vm14315_vm10, %v14314_v45, %v14313_v49  ;;  %vm14316_vm6 = vmmov %vm14289_vm0  ;;  %v14323_v33 = vld [vmem:[#allocation98_spill] sm:$0xff] }
 0x311   : > { %vm14324_vm11 = vnez %v14323_v33  ;;  %vm14325_vm10 = vmmov %vm14289_vm0  ;;  %v12546_v45 = vld [vmem:[%s13344_s5 + $0x40] sm:$0xff]  ;;  %v14330_v33 = vld [vmem:[#allocation3_spill] sm:$0xff] }
 0x312   : > { %9440 = vmatmul.mubr.msk.f32.gmra.mrb[110].mxu0 %vm14307_vm2, %v6885_v1  ;;  %v14317_v1 = vld [vmem:[#allocation27_spill] sm:$0xff]  ;;  %vm14320_vm2 = vmmov %vm14289_vm0 }
 0x313   : > { %9261 = vmatmul.mubr.msk.f32.gmra.mrb[14].mxu1 %vm14312_vm8, %v14311_v19  ;;  %9442 = vmatprep.mubr.msk.f32.mxu0 %vm14289_vm0, %v6887_v52  ;;  %v4816_v59 = vsel %vm14319_vm12, %v14317_v1, 0.0  ;;  %vm14321_vm8 = vmmov %vm14289_vm0  ;;  %v14322_v19 = vld [vmem:[#allocation45_spill] sm:$0xff]  ;;  %v6899_v52 = vpop.permute.xlu0 %6898 }
 0x314   : > { %9263 = vmatprep.mubr.msk.f32.mxu1 %vm14316_vm6, %v12528_v15  ;;  %v5268_v31 = vsel %vm14324_vm11, %v14322_v19, 0.0  ;;  %vm14328_vm6 = vmmov %vm14289_vm0  ;;  %vm14331_vm11 = vnez %v14330_v33  ;;  %v14338_v19 = vld [vmem:[#allocation60_spill] sm:$0xff] }
 0x315   : > { %vm14329_vm12 = vmmov %vm14289_vm0 }
 0x316   : > { %9443 = vmatmul.mubr.msk.f32.gmra.mrb[112].mxu0 %vm14320_vm2, %v6889_v12  ;;  %v6901_v12 = vpop.permute.xlu1 %6900  ;;  %vm14335_vm2 = vmmov %vm14289_vm0 }
 0x317   : > { %9264 = vmatmul.mubr.msk.f32.gmra.mrb[16].mxu1 %vm14321_vm8, %v4816_v59  ;;  %9445 = vmatprep.mubr.msk.f32.mxu0 %vm14325_vm10, %v6891_v37  ;;  %v14332_v59 = vld [vmem:[#allocation55_spill] sm:$0xff]  ;;  %v6903_v49 = vpop.permute.xlu0 %6902  ;;  %vm14337_vm8 = vmmov %vm14289_vm0 }
 0x318   : > { %9268 = vmatprep.mubr.msk.f32.mxu1 %vm14326_vm7, %v5268_v31  ;;  %v14333_v37 = vsel %vm14331_vm11, %v14332_v59, 0.0  ;;  %vm14334_vm7 = vmmov %vm14289_vm0  ;;  %v14339_v31 = vld [vmem:[#allocation31_spill] sm:$0xff] }
 0x319   : > { %vm14340_vm10 = vnez %v14339_v31  ;;  %vm14343_vm11 = vmmov %vm14289_vm0 }
 0x31a   : > { %9446 = vmatmul.mubr.msk.f32.gmra.mrb[114].mxu0 %vm14289_vm0, %v6893_v23  ;;  %v14336_v23 = vld [vmem:[#allocation66_spill] sm:$0xff] }
 0x31b   : > { %9269 = vmatmul.mubr.msk.f32.vlgmr.msra.gmra.mrb[18].mxu1 %vm14328_vm6, %v14327_v20  ;;  %9448 = vmatprep.mubr.msk.f32.mxu0 %vm14329_vm12, %v6895_v18  ;;  %vm14341_vm6 = vmmov %vm14289_vm0  ;;  %v6905_v18 = vpop.permute.xlu1 %6904  ;;  %v14344_v20 = vld [vmem:[#allocation38_spill] sm:$0xff]  ;;  %v6907_v33 = vpop.permute.xlu0 %6906 }
 0x31c   : > { %9317 = vmatpush3.msra.mxu1 %v12381_v50  ;;  %9271 = vmatprep.mubr.msk.f32.mxu1 %vm14334_vm7, %v14333_v37  ;;  %v5272_v50 = vsel %vm14340_vm10, %v14338_v19, 0.0  ;;  %vm14342_vm12 = vmmov %vm14289_vm0  ;;  %vm14345_vm7 = vnez %v14344_v20  ;;  %v14442_v20 = vld [vmem:[#allocation5_spill] sm:$0xff] }
 0x31d   : > { %9366 = vmatprep.subr.mxu1 %v12546_v45  ;;  %vm14348_vm10 = vmmov %vm14289_vm0 }
 0x31e   : > { %9449 = vmatmul.mubr.msk.f32.gmra.mrb[116].mxu0 %vm14335_vm2, %v6897_v40  ;;  %v5274_v40 = vsel %vm14345_vm7, %v14126_v39, 0.0  ;;  %vm14346_vm2 = vmmov %vm14289_vm0 }
 0x31f   : > { %9272 = vmatmul.mubr.msk.f32.gmra.mrb[20].mxu1 %vm14337_vm8, %v14336_v23  ;;  %9451 = vmatprep.mubr.msk.f32.mxu0 %vm14289_vm0, %v6899_v52  ;;  %vm14347_vm8 = vmmov %vm14289_vm0  ;;  %v6909_v52 = vpop.permute.xlu1 %6908  ;;  %v6911_v39 = vpop.permute.xlu0 %6910 }
 0x320   : > { %9274 = vmatprep.mubr.msk.f32.mxu1 %vm14341_vm6, %v5272_v50  ;;  %vm14349_vm6 = vmmov %vm14289_vm0  ;;  %v14441_v50 = vld [vmem:[#allocation59_spill] sm:$0xff] }
 0x321   : > { %vm14354_vm7 = vmmov %vm14289_vm0 }
 0x322   : > { %9452 = vmatmul.mubr.msk.f32.gmra.mrb[118].mxu0 %vm14342_vm12, %v6901_v12  ;;  %v14350_v12 = vld [vmem:[#allocation42_spill] sm:$0xff] }
 0x323   : > { %9275 = vmatmul.mubr.msk.f32.gmra.mrb[22].mxu1 %vm14343_vm11, %v14124_v26  ;;  %9454 = vmatprep.mubr.msk.f32.mxu0 %vm14346_vm2, %v6903_v49  ;;  %vm14351_vm12 = vnez %v14350_v12  ;;  %vm14353_vm11 = vmmov %vm14289_vm0  ;;  %v6913_v59 = vpop.permute.xlu1 %6912  ;;  %v6915_v37 = vpop.permute.xlu0 %6914  ;;  %v14449_v12 = vld [vmem:[#allocation62_spill] sm:$0xff] }
 0x324   : > { %9277 = vmatprep.mubr.msk.f32.mxu1 %vm14347_vm8, %v5274_v40  ;;  %v14352_v26 = vsel %vm14351_vm12, %v14134_v8, 0.0  ;;  %vm14355_vm2 = vmmov %vm14289_vm0  ;;  %v14444_v40 = vld [vmem:[#allocation8_spill] sm:$0xff] }
 0x325   : > { %vm14356_vm8 = vmmov %vm14289_vm0 }
 0x326   : > { %9455 = vmatmul.mubr.msk.f32.gmra.mrb[120].mxu0 %vm14348_vm10, %v6905_v18  ;;  %vm14357_vm10 = vnez %v14135_v54  ;;  %vm14360_vm12 = vmmov %vm14289_vm0 }
 0x327   : > { %9278 = vmatmul.mubr.msk.f32.gmra.mrb[24].mxu1 %vm14289_vm0, %v11805_v42  ;;  %9457 = vmatprep.mubr.msk.f32.mxu0 %vm14349_vm6, %v6907_v33  ;;  %v14358_v42 = vsel %vm14357_vm10, %v11378_v35, 0.0  ;;  %vm14359_vm6 = vmmov %vm14289_vm0  ;;  %v6917_v54 = vpop.permute.xlu1 %6916  ;;  %v14366_v35 = vsel %vm13945_vm4, %v11453_v51, 0.0  ;;  %v14374_v51 = vsel %vm14015_vm14, %v11592_v62, 0.0  ;;  %v14400_v62 = vld [vmem:[#allocation58_spill] sm:$0xff] }
 0x328   : > { %9280 = vmatprep.mubr.msk.f32.mxu1 %vm14353_vm11, %v14352_v26  ;;  %vm14361_vm11 = vmmov %vm14289_vm0  ;;  %v14450_v26 = vld [vmem:[#allocation34_spill] sm:$0xff] }
 0x329   : > { %vm14367_vm10 = vmmov %vm14289_vm0 }
 0x32a   : > { %9458 = vmatmul.mubr.msk.f32.gmra.mrb[122].mxu0 %vm14354_vm7, %v6909_v52  ;;  %vm14363_vm7 = vmmov %vm14289_vm0 }
 0x32b   : > { %9281 = vmatmul.mubr.msk.f32.gmra.mrb[26].mxu1 %vm14355_vm2, %v11911_v7  ;;  %9460 = vmatprep.mubr.msk.f32.mxu0 %vm14356_vm8, %v6911_v39  ;;  %v14362_v7 = vsel %vm14142_vm15, %v13944_v63, 0.0  ;;  %vm14364_vm2 = vmmov %vm14289_vm0  ;;  %v14368_v63 = vsel %vm11613_vm3, %v11503_v27, 0.0  ;;  %v14377_v27 = vsel %vm11656_vm5, %v11635_v11, 0.0  ;;  %v14404_v11 = vld [vmem:[#allocation15_spill] sm:$0xff] }
 0x32c   : > { %9283 = vmatprep.mubr.msk.f32.mxu1 %vm14289_vm0, %v14358_v42  ;;  %vm14365_vm8 = vmmov %vm14289_vm0 }
 0x32d   : > { %vm14369_vm15 = vmmov %vm14289_vm0 }
 0x32e   : > { %9461 = vmatmul.mubr.msk.f32.gmra.mrb[124].mxu0 %vm14359_vm6, %v6913_v59  ;;  %vm14370_vm6 = vmmov %vm14289_vm0  ;;  %v14453_v59 = vld [vmem:[#allocation70_spill] sm:$0xff] }
 0x32f   : > { %9284 = vmatmul.mubr.msk.f32.gmra.mrb[28].mxu1 %vm14360_vm12, %v11939_v17  ;;  %9463 = vmatprep.mubr.msk.f32.mxu0 %vm14361_vm11, %v6915_v37  ;;  %vm14372_vm12 = vmmov %vm14289_vm0  ;;  %v14413_v17 = vld [vmem:[#allocation24_spill] sm:$0xff] }
 0x330   : > { %9286 = vmatprep.mubr.msk.f32.mxu1 %vm14363_vm7, %v14362_v7  ;;  %vm14373_vm4 = vmmov %vm14289_vm0  ;;  %v14455_v7 = vld [vmem:[#allocation68_spill] sm:$0xff] }
 0x331   : > { %vm14375_vm11 = vmmov %vm14289_vm0 }
 0x332   : > { %9464 = vmatmul.mubr.msk.f32.gmra.mrb[126].mxu0 %vm14364_vm2, %v6917_v54  ;;  %vm14376_vm3 = vmmov %vm14289_vm0  ;;  %v14456_v54 = vld [vmem:[#allocation40_spill] sm:$0xff] }
 0x333   : > { %9287 = vmatmul.mubr.msk.f32.gmra.mrb[30].mxu1 %vm14365_vm8, %v11967_v55  ;;  %vm14378_vm7 = vmmov %vm14289_vm0  ;;  %v14417_v55 = vld [vmem:[#allocation33_spill] sm:$0xff] }
 0x334   : > { %9289 = vmatprep.mubr.msk.f32.mxu1 %vm14367_vm10, %v14366_v35  ;;  %vm14381_vm2 = vmmov %vm14289_vm0  ;;  %vm14386_vm10 = vnez %v13902_v13  ;;  %v14408_v13 = vld [vmem:[#allocation20_spill] sm:$0xff] }
 0x335   : > { %vm14382_vm14 = vmmov %vm14289_vm0  ;;  %v14387_v14 = vsel %vm14386_vm10, %v14173_v29, 0.0  ;;  %v14433_v29 = vld [vmem:[#allocation64_spill] sm:$0xff] }
 0x336   : > { %vm14384_vm8 = vmmov %vm14289_vm0 }
 0x337   : > { %9290 = vmatmul.mubr.msk.f32.gmra.mrb[0].mxu1 %vm14289_vm0, %v11995_v41  ;;  %vm14385_vm5 = vmmov %vm14289_vm0  ;;  %v14419_v41 = vld [vmem:[#allocation36_spill] sm:$0xff] }
 0x338   : > { %9292 = vmatprep.mubr.msk.f32.mxu1 %vm14369_vm15, %v14368_v63  ;;  %vm14390_vm15 = vmmov %vm14289_vm0 }
 0x339   : > { %vm14411_vm10 = vmmov %vm14289_vm0 }
 0x33b   : > { %9293 = vmatmul.mubr.msk.f32.gmra.mrb[2].mxu1 %vm14370_vm6, %v12023_v34  ;;  %vm14391_vm6 = vmmov %vm14289_vm0  ;;  %v14423_v34 = vld [vmem:[#allocation44_spill] sm:$0xff] }
 0x33c   : > { %9295 = vmatprep.mubr.msk.f32.mxu1 %vm14372_vm12, %v14371_v5  ;;  %vm14392_vm12 = vmmov %vm14289_vm0  ;;  %v14459_v5 = vld [vmem:[#allocation73_spill] sm:$0xff] }
 0x33f   : > { %9296 = vmatmul.mubr.msk.f32.gmra.mrb[4].mxu1 %vm14373_vm4, %v12051_v16  ;;  %vm14394_vm4 = vmmov %vm14289_vm0  ;;  %v14425_v16 = vld [vmem:[#allocation46_spill] sm:$0xff] }
 0x340   : > { %9298 = vmatprep.mubr.msk.f32.mxu1 %vm14375_vm11, %v14374_v51  ;;  %vm14396_vm11 = vmmov %vm14289_vm0 }
 0x343   : > { %9299 = vmatmul.mubr.msk.f32.gmra.mrb[6].mxu1 %vm14376_vm3, %v12080_v36  ;;  %vm14397_vm3 = vmmov %vm14289_vm0  ;;  %v14427_v36 = vld [vmem:[#allocation49_spill] sm:$0xff] }
 0x344   : > { %9301 = vmatprep.mubr.msk.f32.mxu1 %vm14378_vm7, %v14377_v27  ;;  %vm14399_vm7 = vmmov %vm14289_vm0 }
 0x347   : > { %9302 = vmatmul.mubr.msk.f32.gmra.mrb[8].mxu1 %vm14379_vm9, %v12109_v6  ;;  %vm14401_vm9 = vmmov %vm14289_vm0  ;;  %v14412_v6 = vld [vmem:[#allocation23_spill] sm:$0xff] }
 0x348   : > { %9304 = vmatprep.mubr.msk.f32.mxu1 %vm14381_vm2, %v14380_v38  ;;  %vm14403_vm2 = vmmov %vm14289_vm0  ;;  %v14461_v38 = vld [vmem:[#allocation43_spill] sm:$0xff] }
 0x34b   : > { %9305 = vmatmul.mubr.msk.f32.gmra.mrb[10].mxu1 %vm14382_vm14, %v12141_v22  ;;  %vm14405_vm14 = vmmov %vm14289_vm0  ;;  %v14429_v22 = vld [vmem:[#allocation56_spill] sm:$0xff] }
 0x34c   : > { %9307 = vmatprep.mubr.msk.f32.mxu1 %vm14384_vm8, %v14383_v48  ;;  %vm14407_vm8 = vmmov %vm14289_vm0  ;;  %v14463_v48 = vld [vmem:[#allocation76_spill] sm:$0xff] }
 0x34f   : > { %9308 = vmatmul.mubr.msk.f32.gmra.mrb[12].mxu1 %vm14385_vm5, %v12174_v4  ;;  %vm14409_vm5 = vmmov %vm14289_vm0  ;;  %v14410_v4 = vld [vmem:[#allocation21_spill] sm:$0xff] }
 0x350   : > { %9310 = vmatprep.mubr.msk.f32.mxu1 %vm14289_vm0, %v14387_v14 }
 0x353   : > { %9311 = vmatmul.mubr.msk.f32.gmra.mrb[14].mxu1 %vm14388_vm13, %v12364_v0  ;;  %vm14414_vm13 = vmmov %vm14289_vm0  ;;  %v14435_v0 = vld [vmem:[#allocation69_spill] sm:$0xff] }
 0x354   : > { %9313 = vmatprep.mubr.f32.mxu1 %v14185_v53 }
 0x357   : > { %9314 = vmatmul.mubr.f32.gmra.mrb[16].mxu1 %v14185_v53 }
 0x358   : > { %9318 = vmatprep.mubr.msk.f32.mxu1 %vm14389_vm1, %v14197_v10  ;;  %vm14416_vm1 = vmmov %vm14289_vm0  ;;  %v14421_v10 = vld [vmem:[#allocation37_spill] sm:$0xff] }
 0x35b   : > { %9319 = vmatmul.mubr.msk.f32.vlgmr.msra.gmra.mrb[18].mxu1 %vm14390_vm15, %v14204_v56  ;;  %vm14418_vm15 = vmmov %vm14289_vm0 }
 0x35c   : > { %9367 = vmatpush3.msra.mxu1 %v12546_v45  ;;  %9321 = vmatprep.mubr.msk.f32.mxu1 %vm14391_vm6, %v14207_v30  ;;  %vm14420_vm6 = vmmov %vm14289_vm0  ;;  %v14437_v45 = vld [vmem:[#allocation72_spill] sm:$0xff] }
 0x35f   : > { %9322 = vmatmul.mubr.msk.f32.gmra.mrb[20].mxu1 %vm14392_vm12, %v14210_v43  ;;  %v14415_v43 = vld [vmem:[#allocation30_spill] sm:$0xff]  ;;  %vm14422_vm12 = vmmov %vm14289_vm0 }
 0x360   : > { %9324 = vmatprep.mubr.msk.f32.mxu1 %vm14394_vm4, %v14393_v46  ;;  %vm14424_vm4 = vmmov %vm14289_vm0 }
 0x363   : > { %9325 = vmatmul.mubr.msk.f32.gmra.mrb[22].mxu1 %vm14396_vm11, %v14395_v2  ;;  %vm14426_vm11 = vmmov %vm14289_vm0 }
 0x364   : > { %9327 = vmatprep.mubr.msk.f32.mxu1 %vm14397_vm3, %v14129_v21  ;;  %vm14428_vm3 = vmmov %vm14289_vm0  ;;  %v14431_v21 = vld [vmem:[#allocation61_spill] sm:$0xff] }
 0x367   : > { %9328 = vmatmul.mubr.msk.f32.gmra.mrb[24].mxu1 %vm14399_vm7, %v14398_v58  ;;  %vm14430_vm7 = vmmov %vm14289_vm0  ;;  %v14468_v58 = vld [vmem:[#allocation53_spill] sm:$0xff] }
 0x368   : > { %9330 = vmatprep.mubr.msk.f32.mxu1 %vm14401_vm9, %v14400_v62  ;;  %vm14432_vm9 = vmmov %vm14289_vm0  ;;  %v14470_v62 = vld [vmem:[#allocation77_spill] sm:$0xff] }
 0x36b   : > { %9331 = vmatmul.mubr.msk.f32.gmra.mrb[26].mxu1 %vm14403_vm2, %v14402_v57  ;;  %vm14434_vm2 = vmmov %vm14289_vm0 }
 0x36c   : > { %9333 = vmatprep.mubr.msk.f32.mxu1 %vm14405_vm14, %v14404_v11  ;;  %vm14436_vm14 = vmmov %vm14289_vm0  ;;  %v14473_v11 = vld [vmem:[#allocation78_spill] sm:$0xff] }
 0x36f   : > { %9334 = vmatmul.mubr.msk.f32.gmra.mrb[28].mxu1 %vm14407_vm8, %v14406_v24  ;;  %vm14438_vm8 = vmmov %vm14289_vm0 }
 0x370   : > { %9336 = vmatprep.mubr.msk.f32.mxu1 %vm14409_vm5, %v14408_v13  ;;  %vm14439_vm5 = vmmov %vm14289_vm0 }
 0x373   : > { %9337 = vmatmul.mubr.msk.f32.gmra.mrb[30].mxu1 %vm14411_vm10, %v14410_v4  ;;  %vm14440_vm10 = vmmov %vm14289_vm0  ;;  %v14475_v4 = vld [vmem:[#allocation9_spill] sm:$0xff] }
 0x374   : > { %9339 = vmatprep.mubr.msk.f32.mxu1 %vm14289_vm0, %v14412_v6  ;;  %v14477_v6 = vld [vmem:[#allocation79_spill] sm:$0xff] }
 0x377   : > { %9340 = vmatmul.mubr.msk.f32.gmra.mrb[0].mxu1 %vm14414_vm13, %v14413_v17  ;;  %vm14443_vm13 = vnez %v14442_v20  ;;  %v14493_v20 = vld [vmem:[#allocation18_spill] sm:$0xff] }
 0x378   : > { %9342 = vmatprep.mubr.msk.f32.mxu1 %vm14416_vm1, %v14415_v43  ;;  %v14445_v33 = vsel %vm14443_vm13, %v14444_v40, 0.0  ;;  %vm14446_vm1 = vmmov %vm14289_vm0  ;;  %v14480_v43 = vld [vmem:[#allocation32_spill] sm:$0xff] }
 0x379   : > { %vm14479_vm13 = vmmov %vm14446_vm1 }
 0x37b   : > { %9343 = vmatmul.mubr.msk.f32.gmra.mrb[2].mxu1 %vm14418_vm15, %v14417_v55  ;;  %vm14448_vm15 = vmmov %vm14289_vm0 }
 0x37c   : > { %9345 = vmatprep.mubr.msk.f32.mxu1 %vm14420_vm6, %v14419_v41  ;;  %vm14451_vm6 = vnez %v14450_v26 }
 0x37d   : > { %v6205_v39 = vsel %vm14451_vm6, %v14449_v12, 0.0  ;;  %vm14484_vm6 = vmmov %vm14446_vm1 }
 0x37f   : > { %9346 = vmatmul.mubr.msk.f32.gmra.mrb[4].mxu1 %vm14422_vm12, %v14421_v10  ;;  %vm14452_vm12 = vmmov %vm14289_vm0  ;;  %v14481_v10 = vld [vmem:[#allocation11_spill] sm:$0xff] }
 0x380   : > { %9348 = vmatprep.mubr.msk.f32.mxu1 %vm14424_vm4, %v14423_v34  ;;  %vm14454_vm4 = vmmov %vm14289_vm0 }
 0x383   : > { %9349 = vmatmul.mubr.msk.f32.gmra.mrb[6].mxu1 %vm14426_vm11, %v14425_v16  ;;  %vm14457_vm11 = vnez %v14456_v54  ;;  %v14485_v16 = vld [vmem:[#allocation90_spill] sm:$0xff]  ;;  %v14506_v54 = vld [vmem:[#allocation84_spill] sm:$0xff] }
 0x384   : > { %9351 = vmatprep.mubr.msk.f32.mxu1 %vm14428_vm3, %v14427_v36  ;;  %v6207_v35 = vsel %vm14457_vm11, %v14455_v7, 0.0  ;;  %vm14458_vm3 = vmmov %vm14289_vm0 }
 0x385   : > { %vm14490_vm11 = vmmov %vm14446_vm1 }
 0x387   : > { %9352 = vmatmul.mubr.msk.f32.gmra.mrb[8].mxu1 %vm14430_vm7, %v14429_v22  ;;  %vm14460_vm7 = vmmov %vm14289_vm0 }
 0x388   : > { %9354 = vmatprep.mubr.msk.f32.mxu1 %vm14432_vm9, %v14431_v21  ;;  %vm14462_vm9 = vnez %v14461_v38  ;;  %v14487_v21 = vld [vmem:[#allocation13_spill] sm:$0xff] }
 0x389   : > { %v12717_v8 = vpop.f32.mrb[78].mxu0  ;;  %v14464_v14 = vsel %vm14462_vm9, %v14463_v48, 0.0  ;;  %vm14497_vm9 = vmmov %vm14446_vm1  ;;  %v14512_v48 = vld [vmem:[#allocation85_spill] sm:$0xff] }
 0x38a   : > { %v12719_v47 = vpop.f32.mrb[79].mxu0 }
 0x38b   : > { %9355 = vmatmul.mubr.msk.f32.gmra.mrb[10].mxu1 %vm14434_vm2, %v14433_v29  ;;  %vm14465_vm2 = vmmov %vm14289_vm0 }
 0x38c   : > { %9357 = vmatprep.mubr.msk.f32.mxu1 %vm14436_vm14, %v14435_v0  ;;  %vm14467_vm14 = vmmov %vm14289_vm0  ;;  %v14491_v0 = vld [vmem:[#allocation91_spill] sm:$0xff] }
 0x38d   : > { %v12725_v56 = vpop.f32.mrb[80].mxu0 }
 0x38e   : > { %v12727_v30 = vpop.f32.mrb[81].mxu0 }
 0x38f   : > { %9358 = vmatmul.mubr.msk.f32.gmra.mrb[12].mxu1 %vm14438_vm8, %v14437_v45  ;;  %vm14469_vm8 = vnez %v14468_v58  ;;  %v14517_v58 = vld [vmem:[#allocation95_spill] sm:$0xff] }
 0x390   : > { %9360 = vmatprep.mubr.msk.f32.mxu1 %vm14439_vm5, %v14175_v28  ;;  %v14471_v57 = vsel %vm14469_vm8, %v14470_v62, 0.0  ;;  %vm14472_vm5 = vmmov %vm14289_vm0  ;;  %v14519_v62 = vld [vmem:[#allocation86_spill] sm:$0xff] }
 0x391   : > { %v12733_v49 = vpop.f32.mrb[82].mxu0  ;;  %vm14503_vm8 = vmmov %vm14446_vm1 }
 0x392   : > { %v12735_v23 = vpop.f32.mrb[83].mxu0 }
 0x393   : > { %9361 = vmatmul.mubr.msk.f32.gmra.mrb[14].mxu1 %vm14440_vm10, %v14178_v9  ;;  %v14447_v9 = vld [vmem:[#allocation65_spill] sm:$0xff]  ;;  %vm14474_vm10 = vmmov %vm14289_vm0 }
 0x394   : > { %9363 = vmatprep.mubr.f32.mxu1 %v14185_v53 }
 0x395   : > { %v12740_v19 = vpop.f32.mrb[84].mxu0 }
 0x396   : > { %v12742_v31 = vpop.f32.mrb[85].mxu0 }
 0x397   : > { %9364 = vmatmul.mubr.f32.gmra.mrb[16].mxu1 %v14185_v53 }
 0x398   : > { %9368 = vmatprep.mubr.msk.f32.mxu1 %vm14289_vm0, %v14441_v50  ;;  %vm14476_vm0 = vnez %v14475_v4  ;;  %v14527_v4 = vld [vmem:[#allocation22_spill] sm:$0xff] }
 0x399   : > { %v12747_v18 = vpop.f32.mrb[86].mxu0  ;;  %v14478_v17 = vsel %vm14476_vm0, %v14477_v6, 0.0  ;;  %vm14509_vm0 = vmmov %vm14446_vm1 }
 0x39a   : > { %v12749_v28 = vpop.f32.mrb[87].mxu0 }
 0x39b   : > { %9369 = vmatmul.mubr.msk.f32.vlgmr.msra.gmra.mrb[18].mxu1 %vm14446_vm1, %v14445_v33  ;;  %v14498_v33 = vld [vmem:[#allocation92_spill] sm:$0xff] }
 0x39c   : > { %9371 = vmatprep.mubr.msk.f32.mxu1 %vm14448_vm15, %v14447_v9  ;;  %vm14482_vm15 = vnez %v14481_v10  ;;  %v12883_v10 = vld [vmem:[%s13345_s6] ss:$0 sm:$0xff] }
 0x39d   : > { %v12758_v52 = vpop.f32.mrb[88].mxu0  ;;  %v14483_v34 = vsel %vm14482_vm15, %v14250_v3, 0.0  ;;  %v14495_v3 = vld [vmem:[#allocation89_spill] sm:$0xff]  ;;  %vm14516_vm15 = vmmov %vm14509_vm0 }
 0x39e   : > { %v12763_v42 = vpop.f32.mrb[89].mxu0 }
 0x39f   : > { %9372 = vmatmul.mubr.msk.f32.gmra.mrb[20].mxu1 %vm14452_vm12, %v6205_v39  ;;  %vm14486_vm12 = vmmov %vm14446_vm1  ;;  %v14504_v39 = vld [vmem:[#allocation93_spill] sm:$0xff] }
 0x3a0   : > { %9374 = vmatprep.mubr.msk.f32.mxu1 %vm14454_vm4, %v14453_v59  ;;  %vm14488_vm4 = vnez %v14487_v21 }
 0x3a1   : > { %v12768_v37 = vpop.f32.mrb[90].mxu0  ;;  %v14489_v29 = vsel %vm14488_vm4, %v14259_v32, 0.0  ;;  %v14500_v32 = vld [vmem:[#allocation83_spill] sm:$0xff]  ;;  %vm14522_vm4 = vmmov %vm14509_vm0 }
 0x3a2   : > { %v12773_v63 = vpop.f32.mrb[91].mxu0 }
 0x3a3   : > { %9375 = vmatmul.mubr.msk.f32.gmra.mrb[22].mxu1 %vm14458_vm3, %v6207_v35  ;;  %vm14492_vm3 = vmmov %vm14446_vm1 }
 0x3a4   : > { %9377 = vmatprep.mubr.msk.f32.mxu1 %vm14460_vm7, %v14459_v5  ;;  %vm14494_vm7 = vnez %v14493_v20  ;;  %v14510_v5 = vld [vmem:[#allocation94_spill] sm:$0xff] }
 0x3a5   : > { %v12778_v51 = vpop.f32.mrb[92].mxu0  ;;  %v14496_v40 = vsel %vm14494_vm7, %v14495_v3, 0.0  ;;  %vm14529_vm7 = vmmov %vm14509_vm0 }
 0x3a6   : > { %v12780_v27 = vpop.f32.mrb[93].mxu0 }
 0x3a7   : > { %9378 = vmatmul.mubr.msk.f32.gmra.mrb[24].mxu1 %vm14465_vm2, %v14464_v14  ;;  %vm14499_vm2 = vmmov %vm14446_vm1  ;;  %v14514_v14 = vld [vmem:[#allocation14_spill] sm:$0xff] }
 0x3a8   : > { %9380 = vmatprep.mubr.msk.f32.mxu1 %vm14467_vm14, %v14466_v25  ;;  %vm14501_vm14 = vnez %v14500_v32 }
 0x3a9   : > { %v12789_v46 = vpop.f32.mrb[94].mxu0  ;;  %v14502_v26 = vsel %vm14501_vm14, %v14276_v61, 0.0  ;;  %vm14534_vm14 = vmmov %vm14509_vm0 }
 0x3aa   : > { %v12791_v2 = vpop.f32.mrb[95].mxu0 }
 0x3ab   : > { %9381 = vmatmul.mubr.msk.f32.gmra.mrb[26].mxu1 %vm14472_vm5, %v14471_v57  ;;  %vm14505_vm5 = vmmov %vm14446_vm1  ;;  %v14523_v57 = vld [vmem:[#allocation96_spill] sm:$0xff] }
 0x3ac   : > { %9383 = vmatprep.mubr.msk.f32.mxu1 %vm14474_vm10, %v14473_v11  ;;  %vm14507_vm10 = vnez %v14506_v54  ;;  %v14525_v11 = vld [vmem:[#allocation87_spill] sm:$0xff] }
 0x3ad   : > { %v9070_v24 = vpop.f32.mrb[64].mxu0  ;;  %v14508_v35 = vsel %vm14507_vm10, %v14284_v60, 0.0  ;;  %vm14537_vm10 = vmmov %vm14509_vm0 }
 0x3ae   : > { %v3531_v13 = vpop.f32.mrb[65].mxu0 }
 0x3af   : > { %9384 = vmatmul.mubr.msk.f32.gmra.mrb[28].mxu1 %vm14479_vm13, %v14478_v17  ;;  %vm14511_vm13 = vmmov %vm14509_vm0  ;;  %v14531_v17 = vld [vmem:[#allocation35_spill] sm:$0xff] }
 0x3b0   : > { %9386 = vmatprep.mubr.msk.f32.mxu1 %vm14446_vm1, %v14480_v43  ;;  %vm14513_vm1 = vnez %v14512_v48 }
 0x3b1   : > { %v9073_v55 = vpop.f32.mrb[66].mxu0  ;;  %v14515_v25 = vsel %vm14513_vm1, %v14514_v14, 0.0  ;;  %vm14539_vm1 = vmmov %vm14509_vm0 }
 0x3b2   : > { %v3541_v41 = vpop.f32.mrb[67].mxu0 }
 0x3b3   : > { %9387 = vmatmul.mubr.msk.f32.gmra.mrb[30].mxu1 %vm14484_vm6, %v14483_v34  ;;  %vm14518_vm6 = vmmov %vm14509_vm0 }
 0x3b4   : > { %9389 = vmatprep.mubr.msk.f32.mxu1 %vm14486_vm12, %v14485_v16  ;;  %vm14520_vm12 = vnez %v14519_v62 }
 0x3b5   : > { %v9076_v36 = vpop.f32.mrb[68].mxu0  ;;  %v14521_v60 = vsel %vm14520_vm12, %v14302_v44, 0.0  ;;  %vm14542_vm12 = vmmov %vm14509_vm0 }
 0x3b6   : > { %v3551_v22 = vpop.f32.mrb[69].mxu0 }
 0x3b7   : > { %9390 = vmatmul.mubr.msk.f32.gmra.mrb[0].mxu1 %vm14490_vm11, %v14489_v29  ;;  %vm14524_vm11 = vmmov %vm14509_vm0 }
 0x3b8   : > { %9392 = vmatprep.mubr.msk.f32.mxu1 %vm14492_vm3, %v14491_v0  ;;  %vm14526_vm3 = vnez %v14525_v11 }
 0x3b9   : > { %v9079_v45 = vpop.f32.mrb[70].mxu0  ;;  %v14528_v6 = vsel %vm14526_vm3, %v14527_v4, 0.0  ;;  %vm14545_vm3 = vmmov %vm14509_vm0 }
 0x3ba   : > { %v3561_v50 = vpop.f32.mrb[71].mxu0 }
 0x3bb   : > { %9393 = vmatmul.mubr.msk.f32.gmra.mrb[2].mxu1 %vm14497_vm9, %v14496_v40  ;;  %vm14530_vm9 = vmmov %vm14509_vm0 }
 0x3bc   : > { %9395 = vmatprep.mubr.msk.f32.mxu1 %vm14499_vm2, %v14498_v33  ;;  %vm14532_vm2 = vnez %v14531_v17 }
 0x3bd   : > { %v9082_v9 = vpop.f32.mrb[72].mxu0  ;;  %v14533_v43 = vsel %vm14532_vm2, %v14317_v1, 0.0  ;;  %vm14548_vm2 = vmmov %vm14509_vm0 }
 0x3be   : > { %v12828_v12 = vpop.f32.mrb[73].mxu0 }
 0x3bf   : > { %9396 = vmatmul.mubr.msk.f32.gmra.mrb[4].mxu1 %vm14503_vm8, %v14502_v26  ;;  %vm14535_vm8 = vmmov %vm14509_vm0 }
 0x3c0   : > { %9398 = vmatprep.mubr.msk.f32.mxu1 %vm14505_vm5, %v14504_v39  ;;  %vm14536_vm5 = vmmov %vm14509_vm0 }
 0x3c1   : > { %v12837_v59 = vpop.f32.mrb[74].mxu0 }
 0x3c2   : > { %v12839_v7 = vpop.f32.mrb[75].mxu0 }
 0x3c3   : > { %9399 = vmatmul.mubr.msk.f32.gmra.mrb[6].mxu1 %vm14509_vm0, %v14508_v35 }
 0x3c4   : > { %9401 = vmatprep.mubr.msk.f32.mxu1 %vm14511_vm13, %v14510_v5  ;;  %vm14538_vm13 = vmmov %vm14509_vm0 }
 0x3c5   : > { %v12848_v38 = vpop.f32.mrb[76].mxu0 }
 0x3c6   : > { %v12850_v61 = vpop.f32.mrb[77].mxu0 }
 0x3c7   : > { %9402 = vmatmul.mubr.msk.f32.gmra.mrb[8].mxu1 %vm14516_vm15, %v14515_v25  ;;  %vm14540_vm15 = vmmov %vm14509_vm0 }
 0x3c8   : > { %9404 = vmatprep.mubr.msk.f32.mxu1 %vm14518_vm6, %v14517_v58  ;;  %vm14541_vm6 = vmmov %vm14509_vm0 }
 0x3cb   : > { %9405 = vmatmul.mubr.msk.f32.gmra.mrb[10].mxu1 %vm14522_vm4, %v14521_v60  ;;  %vm14543_vm4 = vmmov %vm14509_vm0 }
 0x3cc   : > { %9407 = vmatprep.mubr.msk.f32.mxu1 %vm14524_vm11, %v14523_v57  ;;  %vm14544_vm11 = vmmov %vm14509_vm0 }
 0x3cf   : > { %9408 = vmatmul.mubr.msk.f32.gmra.mrb[12].mxu1 %vm14529_vm7, %v14528_v6  ;;  %vm14546_vm7 = vmmov %vm14509_vm0 }
 0x3d0   : > { %9410 = vmatprep.mubr.msk.f32.mxu1 %vm14530_vm9, %v12528_v15  ;;  %vm14547_vm9 = vmmov %vm14509_vm0 }
 0x3d3   : > { %9411 = vmatmul.mubr.msk.f32.gmra.mrb[14].mxu1 %vm14534_vm14, %v14533_v43  ;;  %vm14549_vm14 = vmmov %vm14509_vm0 }
 0x3d4   : > { %9413 = vmatprep.mubr.f32.mxu1 %v14185_v53 }
 0x3d7   : > { %9414 = vmatmul.mubr.f32.gmra.mrb[16].mxu1 %v14185_v53 }
 0x46e   : > { %v9370_v44 = vpop.f32.mrb[18].mxu1 }
 0x46f   : > { %v9522_v34 = vadd.f32 %v9370_v44, %v9070_v24  ;;  %v6398_v16 = vpop.f32.mrb[19].mxu1 }
 0x470   : > { %v9523_v21 = vadd.f32 %v6398_v16, %v3531_v13 }
 0x471   : > { %v12886_v15 = vadd.f32 %v9522_v34, %v12883_v10 }
 0x472   : > { %v12889_v1 = vadd.f32 %v9523_v21, %v12883_v10  ;;  %v9373_v29 = vpop.f32.mrb[20].mxu1 }
 0x473   : > { %v8304_v0 = vmul.f32 -1.442695, %v12886_v15  ;;  %v9524_v20 = vadd.f32 %v9373_v29, %v9073_v55  ;;  %v6408_v53 = vpop.f32.mrb[21].mxu1 }
 0x474   : > { %v8303_v3 = vmul.f32 -1.442695, %v12889_v1  ;;  %v9525_v40 = vadd.f32 %v6408_v53, %v3541_v41 }
 0x475   : > { %10076 = vpow2.f32 %v8304_v0  ;;  %v12894_v33 = vadd.f32 %v9524_v20, %v12883_v10 }
 0x476   : > { %10078 = vpow2.f32 %v8303_v3  ;;  %v12897_v24 = vadd.f32 %v9525_v40, %v12883_v10  ;;  %v9376_v13 = vpop.f32.mrb[22].mxu1 }
 0x477   : > { %v8306_v32 = vmul.f32 -1.442695, %v12894_v33  ;;  %v9526_v26 = vadd.f32 %v9376_v13, %v9076_v36  ;;  %v6418_v39 = vpop.f32.mrb[23].mxu1 }
 0x478   : > { %v8305_v54 = vmul.f32 -1.442695, %v12897_v24  ;;  %v9527_v55 = vadd.f32 %v6418_v39, %v3551_v22 }
 0x479   : > { %10080 = vpow2.f32 %v8306_v32  ;;  %v12902_v35 = vadd.f32 %v9526_v26, %v12883_v10 }
 0x47a   : > { %10082 = vpow2.f32 %v8305_v54  ;;  %v12905_v41 = vadd.f32 %v9527_v55, %v12883_v10  ;;  %v9379_v5 = vpop.f32.mrb[24].mxu1 }
 0x47b   : > { %v8308_v48 = vmul.f32 -1.442695, %v12902_v35  ;;  %v9528_v14 = vadd.f32 %v9379_v5, %v9079_v45  ;;  %v6428_v25 = vpop.f32.mrb[25].mxu1 }
 0x47c   : > { %v8307_v58 = vmul.f32 -1.442695, %v12905_v41  ;;  %v9529_v36 = vadd.f32 %v6428_v25, %v3561_v50 }
 0x47d   : > { %10084 = vpow2.f32 %v8308_v48  ;;  %v12910_v62 = vadd.f32 %v9528_v14, %v12883_v10 }
 0x47e   : > { %10086 = vpow2.f32 %v8307_v58  ;;  %v12913_v22 = vadd.f32 %v9529_v36, %v12883_v10  ;;  %v9382_v60 = vpop.f32.mrb[26].mxu1 }
 0x47f   : > { %v10077_v57 = vpop.eup %10076  ;;  %v8310_v11 = vmul.f32 -1.442695, %v12910_v62  ;;  %v9530_v4 = vadd.f32 %v9382_v60, %v9082_v9  ;;  %v6438_v6 = vpop.f32.mrb[27].mxu1 }
 0x480   : > { %v10079_v17 = vpop.eup %10078  ;;  %v6725_v45 = vadd.f32 1.0, %v10077_v57  ;;  %v8309_v43 = vmul.f32 -1.442695, %v12913_v22  ;;  %v9531_v50 = vadd.f32 %v6438_v6, %v12828_v12 }
 0x481   : > { %v6724_v44 = vadd.f32 1.0, %v10079_v17  ;;  %10088 = vpow2.f32 %v8310_v11  ;;  %v12919_v34 = vadd.f32 %v9530_v4, %v12883_v10 }
 0x482   : > { %10090 = vrcp.f32 %v6725_v45  ;;  %v12922_v16 = vadd.f32 %v9531_v50, %v12883_v10  ;;  %v9385_v21 = vpop.f32.mrb[28].mxu1 }
 0x483   : > { %v10081_v29 = vpop.eup %10080  ;;  %10092 = vrcp.f32 %v6724_v44  ;;  %v8312_v9 = vmul.f32 -1.442695, %v12919_v34  ;;  %v9532_v0 = vadd.f32 %v9385_v21, %v12837_v59  ;;  %v6448_v20 = vpop.f32.mrb[29].mxu1 }
 0x484   : > { %v10083_v53 = vpop.eup %10082  ;;  %v6727_v3 = vadd.f32 1.0, %v10081_v29  ;;  %10094 = vpow2.f32 %v8309_v43  ;;  %v8311_v12 = vmul.f32 -1.442695, %v12922_v16  ;;  %v9533_v40 = vadd.f32 %v6448_v20, %v12839_v7 }
 0x485   : > { %v6726_v13 = vadd.f32 1.0, %v10083_v53  ;;  %10096 = vpow2.f32 %v8312_v9  ;;  %v12929_v32 = vadd.f32 %v9532_v0, %v12883_v10 }
 0x486   : > { %10098 = vrcp.f32 %v6727_v3  ;;  %v12932_v26 = vadd.f32 %v9533_v40, %v12883_v10  ;;  %v9388_v39 = vpop.f32.mrb[30].mxu1 }
 0x487   : > { %v10085_v54 = vpop.eup %10084  ;;  %10100 = vrcp.f32 %v6726_v13  ;;  %v8314_v59 = vmul.f32 -1.442695, %v12929_v32  ;;  %v9534_v55 = vadd.f32 %v9388_v39, %v12848_v38  ;;  %v6458_v5 = vpop.f32.mrb[31].mxu1 }
 0x488   : > { %v10087_v48 = vpop.eup %10086  ;;  %v6729_v14 = vadd.f32 1.0, %v10085_v54  ;;  %10102 = vpow2.f32 %v8311_v12  ;;  %v8313_v7 = vmul.f32 -1.442695, %v12932_v26  ;;  %v9535_v25 = vadd.f32 %v6458_v5, %v12850_v61 }
 0x489   : > { %v6728_v58 = vadd.f32 1.0, %v10087_v48  ;;  %10104 = vpow2.f32 %v8314_v59  ;;  %v12939_v36 = vadd.f32 %v9534_v55, %v12883_v10 }
 0x48a   : > { %10106 = vrcp.f32 %v6729_v14  ;;  %v12942_v60 = vadd.f32 %v9535_v25, %v12883_v10  ;;  %v9391_v57 = vpop.f32.mrb[0].mxu1 }
 0x48b   : > { %v10089_v11 = vpop.eup %10088  ;;  %10108 = vrcp.f32 %v6728_v58  ;;  %v8316_v38 = vmul.f32 -1.442695, %v12939_v36  ;;  %v9536_v4 = vadd.f32 %v9391_v57, %v12717_v8  ;;  %v6468_v6 = vpop.f32.mrb[1].mxu1 }
 0x48c   : > { %v10091_v17 = vpop.eup %10090  ;;  %v6731_v45 = vadd.f32 1.0, %v10089_v11  ;;  %10110 = vpow2.f32 %v8313_v7  ;;  %v8315_v61 = vmul.f32 -1.442695, %v12942_v60  ;;  %v9537_v43 = vadd.f32 %v6468_v6, %v12719_v47 }
 0x48d   : > { %v10093_v50 = vpop.eup %10092  ;;  %10112 = vpow2.f32 %v8316_v38  ;;  %v12949_v44 = vadd.f32 %v9536_v4, %v12883_v10  ;;  %v6821_v29 = vmul.f32 %v10091_v17, %v12886_v15 }
 0x48e   : > { %v10095_v21 = vpop.eup %10094  ;;  %v6820_v9 = vmul.f32 %v10093_v50, %v12889_v1  ;;  %v12954_v8 = vadd.f32 %v9537_v43, %v12883_v10  ;;  %v9394_v0 = vpop.f32.mrb[2].mxu1  ;;  %10114 = vpow2.f32 %v8315_v61 }
 0x48f   : > { %v10097_v20 = vpop.eup %10096  ;;  %v6730_v53 = vadd.f32 1.0, %v10095_v21  ;;  %v8318_v3 = vmul.f32 -1.442695, %v12949_v44  ;;  %v9538_v47 = vadd.f32 %v9394_v0, %v12725_v56  ;;  %v6478_v12 = vpop.f32.mrb[3].mxu1  ;;  %10116 = vrcp.f32 %v6731_v45 }
 0x490   : > { %v10099_v40 = vpop.eup %10098  ;;  %v6733_v13 = vadd.f32 1.0, %v10097_v20  ;;  %v8317_v39 = vmul.f32 -1.442695, %v12954_v8  ;;  %v9539_v15 = vadd.f32 %v6478_v12, %v12727_v30  ;;  %9468 = vmatprep.mubr.msk.f32.mxu0 %vm14535_vm8, %v6820_v9  ;;  %vm14550_vm8 = vmmov %vm14509_vm0 }
 0x491   : > { %v10101_v1 = vpop.eup %10100  ;;  %10118 = vrcp.f32 %v6730_v53  ;;  %v12962_v54 = vadd.f32 %v9538_v47, %v12883_v10  ;;  %9469 = vmatmul.mubr.msk.f32.vlgmr.msra.gmra.mrb[96].mxu0 %vm14536_vm5, %v6821_v29  ;;  %v6823_v56 = vmul.f32 %v10099_v40, %v12894_v33  ;;  %vm14551_vm5 = vmmov %vm14509_vm0 }
 0x492   : > { %v10103_v59 = vpop.eup %10102  ;;  %v6822_v55 = vmul.f32 %v10101_v1, %v12897_v24  ;;  %10120 = vrcp.f32 %v6733_v13  ;;  %v12968_v5 = vadd.f32 %v9539_v15, %v12883_v10  ;;  %v9397_v48 = vpop.f32.mrb[4].mxu1 }
 0x493   : > { %v10105_v30 = vpop.eup %10104  ;;  %v6732_v14 = vadd.f32 1.0, %v10103_v59  ;;  %10122 = vpow2.f32 %v8318_v3  ;;  %v8320_v7 = vmul.f32 -1.442695, %v12962_v54  ;;  %v9540_v25 = vadd.f32 %v9397_v48, %v12733_v49  ;;  %v6488_v58 = vpop.f32.mrb[5].mxu1 }
 0x494   : > { %v10107_v57 = vpop.eup %10106  ;;  %v6735_v11 = vadd.f32 1.0, %v10105_v30  ;;  %10124 = vpow2.f32 %v8317_v39  ;;  %v8319_v33 = vmul.f32 -1.442695, %v12968_v5  ;;  %v9541_v24 = vadd.f32 %v6488_v58, %v12735_v23  ;;  %9471 = vmatprep.mubr.msk.f32.mxu0 %vm14537_vm10, %v6822_v55  ;;  %vm14552_vm10 = vmmov %vm14509_vm0 }
 0x495   : > { %v10109_v38 = vpop.eup %10108  ;;  %10126 = vrcp.f32 %v6732_v14  ;;  %v12976_v4 = vadd.f32 %v9540_v25, %v12883_v10  ;;  %9472 = vmatmul.mubr.msk.f32.gmra.mrb[98].mxu0 %vm14509_vm0, %v6823_v56  ;;  %v6825_v49 = vmul.f32 %v10107_v57, %v12902_v35 }
 0x496   : > { %v10111_v6 = vpop.eup %10110  ;;  %v6824_v17 = vmul.f32 %v10109_v38, %v12905_v41  ;;  %10128 = vrcp.f32 %v6735_v11  ;;  %v12982_v45 = vadd.f32 %v9541_v24, %v12883_v10  ;;  %v9400_v61 = vpop.f32.mrb[6].mxu1 }
 0x497   : > { %v10113_v23 = vpop.eup %10112  ;;  %v6734_v43 = vadd.f32 1.0, %v10111_v6  ;;  %10130 = vpow2.f32 %v8320_v7  ;;  %v8322_v50 = vmul.f32 -1.442695, %v12976_v4  ;;  %v9542_v21 = vadd.f32 %v9400_v61, %v12740_v19  ;;  %v6498_v29 = vpop.f32.mrb[7].mxu1 }
 0x498   : > { %v6737_v9 = vadd.f32 1.0, %v10113_v23  ;;  %10132 = vpow2.f32 %v8319_v33  ;;  %v9543_v0 = vadd.f32 %v6498_v29, %v12742_v31  ;;  %9474 = vmatprep.mubr.msk.f32.mxu0 %vm14538_vm13, %v6824_v17  ;;  %v10115_v35 = vpop.eup %10114  ;;  %v8321_v41 = vmul.f32 -1.442695, %v12982_v45  ;;  %vm14553_vm13 = vmmov %vm14509_vm0 }
 0x499   : > { %10134 = vrcp.f32 %v6734_v43  ;;  %v12990_v20 = vadd.f32 %v9542_v21, %v12883_v10  ;;  %9475 = vmatmul.mubr.msk.f32.gmra.mrb[100].mxu0 %vm14539_vm1, %v6825_v49  ;;  %v10117_v53 = vpop.eup %10116  ;;  %v6736_v3 = vadd.f32 1.0, %v10115_v35  ;;  %vm14554_vm1 = vmmov %vm14509_vm0 }
 0x49a   : > { %10136 = vrcp.f32 %v6737_v9  ;;  %v12994_v19 = vadd.f32 %v9543_v0, %v12883_v10  ;;  %v9403_v47 = vpop.f32.mrb[8].mxu1  ;;  %v6827_v55 = vmul.f32 %v10117_v53, %v12910_v62 }
 0x49b   : > { %v10119_v12 = vpop.eup %10118  ;;  %10138 = vpow2.f32 %v8322_v50  ;;  %v8324_v31 = vmul.f32 -1.442695, %v12990_v20  ;;  %v9544_v40 = vadd.f32 %v9403_v47, %v12747_v18  ;;  %v6508_v13 = vpop.f32.mrb[9].mxu1 }
 0x49c   : > { %v10121_v39 = vpop.eup %10120  ;;  %v6826_v15 = vmul.f32 %v10119_v12, %v12913_v22  ;;  %10140 = vrcp.f32 %v6736_v3  ;;  %v8323_v1 = vmul.f32 -1.442695, %v12994_v19  ;;  %v9545_v59 = vadd.f32 %v6508_v13, %v12749_v28 }
 0x49d   : > { %v10123_v56 = vpop.eup %10122  ;;  %10142 = vpow2.f32 %v8321_v41  ;;  %v13003_v48 = vadd.f32 %v9544_v40, %v12883_v10  ;;  %v6829_v6 = vmul.f32 %v10121_v39, %v12919_v34 }
 0x49e   : > { %v10125_v30 = vpop.eup %10124  ;;  %v6739_v14 = vadd.f32 1.0, %v10123_v56  ;;  %10144 = vpow2.f32 %v8324_v31  ;;  %v13006_v18 = vadd.f32 %v9545_v59, %v12883_v10  ;;  %9477 = vmatprep.mubr.msk.f32.mxu0 %vm14540_vm15, %v6826_v15  ;;  %v9406_v22 = vpop.f32.mrb[10].mxu1  ;;  %vm14555_vm15 = vmmov %vm14509_vm0 }
 0x49f   : > { %v10127_v7 = vpop.eup %10126  ;;  %v6738_v25 = vadd.f32 1.0, %v10125_v30  ;;  %10146 = vpow2.f32 %v8323_v1  ;;  %v8326_v28 = vmul.f32 -1.442695, %v13003_v48  ;;  %9478 = vmatmul.mubr.msk.f32.gmra.mrb[102].mxu0 %vm14541_vm6, %v6827_v55  ;;  %v9546_v62 = vadd.f32 %v9406_v22, %v12758_v52  ;;  %v6518_v58 = vpop.f32.mrb[11].mxu1  ;;  %vm14556_vm6 = vmmov %vm14509_vm0 }
 0x4a0   : > { %v10129_v57 = vpop.eup %10128  ;;  %v6828_v11 = vmul.f32 %v10127_v7, %v12922_v16  ;;  %10148 = vrcp.f32 %v6739_v14  ;;  %v8325_v33 = vmul.f32 -1.442695, %v13006_v18  ;;  %v9547_v24 = vadd.f32 %v6518_v58, %v12763_v42 }
 0x4a1   : > { %v10131_v38 = vpop.eup %10130  ;;  %10150 = vrcp.f32 %v6738_v25  ;;  %v13017_v49 = vadd.f32 %v9546_v62, %v12883_v10  ;;  %v6831_v41 = vmul.f32 %v10129_v57, %v12929_v32 }
 0x4a2   : > { %v10133_v17 = vpop.eup %10132  ;;  %v6741_v61 = vadd.f32 1.0, %v10131_v38  ;;  %10152 = vpow2.f32 %v8326_v28  ;;  %v13020_v52 = vadd.f32 %v9547_v24, %v12883_v10  ;;  %9480 = vmatprep.mubr.msk.f32.mxu0 %vm14542_vm12, %v6828_v11  ;;  %v9409_v16 = vpop.f32.mrb[12].mxu1  ;;  %vm14557_vm12 = vmmov %vm14509_vm0 }
 0x4a3   : > { %v10135_v23 = vpop.eup %10134  ;;  %v6740_v43 = vadd.f32 1.0, %v10133_v17  ;;  %10154 = vpow2.f32 %v8325_v33  ;;  %v8328_v42 = vmul.f32 -1.442695, %v13017_v49  ;;  %9481 = vmatmul.mubr.msk.f32.gmra.mrb[104].mxu0 %vm14543_vm4, %v6829_v6  ;;  %v9548_v34 = vadd.f32 %v9409_v16, %v12768_v37  ;;  %v6528_v50 = vpop.f32.mrb[13].mxu1  ;;  %vm14558_vm4 = vmmov %vm14509_vm0 }
 0x4a4   : > { %v10137_v21 = vpop.eup %10136  ;;  %v6830_v29 = vmul.f32 %v10135_v23, %v12932_v26  ;;  %10156 = vrcp.f32 %v6741_v61  ;;  %v8327_v9 = vmul.f32 -1.442695, %v13020_v52  ;;  %v9549_v0 = vadd.f32 %v6528_v50, %v12773_v63 }
 0x4a5   : > { %v10139_v35 = vpop.eup %10138  ;;  %10158 = vrcp.f32 %v6740_v43  ;;  %v13031_v53 = vadd.f32 %v9548_v34, %v12883_v10  ;;  %v6833_v39 = vmul.f32 %v10137_v21, %v12939_v36 }
 0x4a6   : > { %v10141_v3 = vpop.eup %10140  ;;  %v6743_v47 = vadd.f32 1.0, %v10139_v35  ;;  %10160 = vpow2.f32 %v8328_v42  ;;  %v13034_v37 = vadd.f32 %v9549_v0, %v12883_v10  ;;  %9483 = vmatprep.mubr.msk.f32.mxu0 %vm14544_vm11, %v6830_v29  ;;  %v9412_v26 = vpop.f32.mrb[14].mxu1  ;;  %vm14559_vm11 = vmmov %vm14509_vm0 }
 0x4a7   : > { %v10143_v12 = vpop.eup %10142  ;;  %v6832_v31 = vmul.f32 %v10141_v3, %v12942_v60  ;;  %10162 = vpow2.f32 %v8327_v9  ;;  %v8330_v63 = vmul.f32 -1.442695, %v13031_v53  ;;  %9484 = vmatmul.mubr.msk.f32.gmra.mrb[106].mxu0 %vm14545_vm3, %v6831_v41  ;;  %v9550_v32 = vadd.f32 %v9412_v26, %v12778_v51  ;;  %v6538_v40 = vpop.f32.mrb[15].mxu1  ;;  %vm14560_vm3 = vmmov %vm14509_vm0 }
 0x4a8   : > { %v10145_v13 = vpop.eup %10144  ;;  %10164 = vrcp.f32 %v6743_v47  ;;  %v6742_v15 = vadd.f32 1.0, %v10143_v12  ;;  %v9551_v1 = vadd.f32 %v6538_v40, %v12780_v27  ;;  %v8329_v60 = vmul.f32 -1.442695, %v13034_v37 }
 0x4a9   : > { %v10147_v59 = vpop.eup %10146  ;;  %v6745_v56 = vadd.f32 1.0, %v10145_v13  ;;  %10166 = vpow2.f32 %v8330_v63  ;;  %v13045_v55 = vadd.f32 %v9550_v32, %v12883_v10  ;;  %9486 = vmatprep.mubr.msk.f32.mxu0 %vm14546_vm7, %v6832_v31  ;;  %vm14561_vm7 = vmmov %vm14509_vm0 }
 0x4aa   : > { %v10149_v30 = vpop.eup %10148  ;;  %10168 = vrcp.f32 %v6742_v15  ;;  %v6744_v51 = vadd.f32 1.0, %v10147_v59  ;;  %v13049_v14 = vadd.f32 %v9551_v1, %v12883_v10  ;;  %v9415_v36 = vpop.f32.mrb[16].mxu1 }
 0x4ab   : > { %v10151_v22 = vpop.eup %10150  ;;  %10170 = vrcp.f32 %v6745_v56  ;;  %v8332_v27 = vmul.f32 -1.442695, %v13045_v55  ;;  %9487 = vmatmul.mubr.msk.f32.gmra.mrb[108].mxu0 %vm14547_vm9, %v6833_v39  ;;  %v9552_v7 = vadd.f32 %v9415_v36, %v12789_v46  ;;  %v6548_v25 = vpop.f32.mrb[17].mxu1  ;;  %v6835_v62 = vmul.f32 %v10149_v30, %v12949_v44  ;;  %vm14562_vm9 = vmmov %vm14509_vm0 }
 0x4ac   : > { %v10153_v28 = vpop.eup %10152  ;;  %v6834_v58 = vmul.f32 %v10151_v22, %v12954_v8  ;;  %10172 = vrcp.f32 %v6744_v51  ;;  %v9553_v57 = vadd.f32 %v6548_v25, %v12791_v2  ;;  %v8331_v24 = vmul.f32 -1.442695, %v13049_v14 }
 0x4ad   : > { %v10155_v11 = vpop.eup %10154  ;;  %v6747_v33 = vadd.f32 1.0, %v10153_v28  ;;  %10174 = vpow2.f32 %v8329_v60  ;;  %v13059_v38 = vadd.f32 %v9552_v7, %v12883_v10 }
 0x4ae   : > { %v10157_v6 = vpop.eup %10156  ;;  %v6746_v17 = vadd.f32 1.0, %v10155_v11  ;;  %10176 = vpow2.f32 %v8332_v27  ;;  %v13062_v46 = vadd.f32 %v9553_v57, %v12883_v10  ;;  %9489 = vmatprep.mubr.msk.f32.mxu0 %vm14548_vm2, %v6834_v58  ;;  %vm14563_vm2 = vmmov %vm14509_vm0 }
 0x4af   : > { %v10159_v44 = vpop.eup %10158  ;;  %10178 = vrcp.f32 %v6747_v33  ;;  %v8334_v2 = vmul.f32 -1.442695, %v13059_v38  ;;  %9490 = vmatmul.mubr.msk.f32.gmra.mrb[110].mxu0 %vm14549_vm14, %v6835_v62  ;;  %v6837_v23 = vmul.f32 %v10157_v6, %v12962_v54  ;;  %vm14564_vm14 = vmmov %vm14509_vm0 }
 0x4b0   : > { %v10161_v8 = vpop.eup %10160  ;;  %v6836_v61 = vmul.f32 %v10159_v44, %v12968_v5  ;;  %10180 = vrcp.f32 %v6746_v17  ;;  %v8333_v10 = vmul.f32 -1.442695, %v13062_v46 }
 0x4b1   : > { %v10163_v16 = vpop.eup %10162  ;;  %v6749_v43 = vadd.f32 1.0, %v10161_v8  ;;  %10182 = vpow2.f32 %v8331_v24 }
 0x4b2   : > { %v10165_v42 = vpop.eup %10164  ;;  %v6748_v34 = vadd.f32 1.0, %v10163_v16  ;;  %10184 = vpow2.f32 %v8334_v2  ;;  %9492 = vmatprep.mubr.msk.f32.mxu0 %vm14550_vm8, %v6836_v61  ;;  %vm14565_vm8 = vcmask 130048  }
 0x4b3   : > { %v10167_v50 = vpop.eup %10166  ;;  %10186 = vrcp.f32 %v6749_v43  ;;  %9493 = vmatmul.mubr.msk.f32.gmra.mrb[112].mxu0 %vm14551_vm5, %v6837_v23  ;;  %v6839_v0 = vmul.f32 %v10165_v42, %v12976_v4  ;;  %vm14566_vm5 = vmmov %vm14565_vm8 }
 0x4b4   : > { %v10169_v21 = vpop.eup %10168  ;;  %10188 = vrcp.f32 %v6748_v34  ;;  %v6751_v9 = vadd.f32 1.0, %v10167_v50 }
 0x4b5   : > { %v10171_v5 = vpop.eup %10170  ;;  %v6838_v29 = vmul.f32 %v10169_v21, %v12982_v45  ;;  %10190 = vpow2.f32 %v8333_v10 }
 0x4b6   : > { %v10173_v54 = vpop.eup %10172  ;;  %10192 = vrcp.f32 %v6751_v9  ;;  %v6841_v31 = vmul.f32 %v10171_v5, %v12990_v20 }
 0x4b7   : > { %v10175_v35 = vpop.eup %10174  ;;  %v6840_v41 = vmul.f32 %v10173_v54, %v12994_v19  ;;  %9495 = vmatprep.mubr.msk.f32.mxu0 %vm14552_vm10, %v6838_v29  ;;  %vm14567_vm10 = vmmov %vm14566_vm5 }
 0x4b8   : > { %v10177_v3 = vpop.eup %10176  ;;  %v6750_v47 = vadd.f32 1.0, %v10175_v35  ;;  %9496 = vmatmul.mubr.msk.f32.gmra.mrb[114].mxu0 %vm14509_vm0, %v6839_v0  ;;  %vm14568_vm0 = vmmov %vm14566_vm5 }
 0x4b9   : > { %v10179_v26 = vpop.eup %10178  ;;  %v6753_v12 = vadd.f32 1.0, %v10177_v3  ;;  %9498 = vmatprep.mubr.msk.f32.mxu0 %vm14553_vm13, %v6840_v41  ;;  %vm14569_vm13 = vmmov %vm14568_vm0 }
 0x4ba   : > { %v10181_v45 = vpop.eup %10180  ;;  %10194 = vrcp.f32 %v6750_v47  ;;  %v6843_v15 = vmul.f32 %v10179_v26, %v13003_v48 }
 0x4bb   : > { %v10183_v63 = vpop.eup %10182  ;;  %v6842_v4 = vmul.f32 %v10181_v45, %v13006_v18  ;;  %10196 = vrcp.f32 %v6753_v12 }
 0x4bc   : > { %v10185_v32 = vpop.eup %10184  ;;  %v6752_v19 = vadd.f32 1.0, %v10183_v63  ;;  %9499 = vmatmul.mubr.msk.f32.gmra.mrb[116].mxu0 %vm14554_vm1, %v6841_v31  ;;  %vm14570_vm1 = vmmov %vm14568_vm0 }
 0x4bd   : > { %v10187_v40 = vpop.eup %10186  ;;  %v6755_v13 = vadd.f32 1.0, %v10185_v32  ;;  %9501 = vmatprep.mubr.msk.f32.mxu0 %vm14555_vm15, %v6842_v4  ;;  %vm14571_vm15 = vmmov %vm14568_vm0 }
 0x4be   : > { %v10189_v39 = vpop.eup %10188  ;;  %10198 = vrcp.f32 %v6752_v19  ;;  %v6845_v18 = vmul.f32 %v10187_v40, %v13017_v49 }
 0x4bf   : > { %v10191_v1 = vpop.eup %10190  ;;  %v6844_v20 = vmul.f32 %v10189_v39, %v13020_v52  ;;  %10200 = vrcp.f32 %v6755_v13 }
 0x4c0   : > { %v6754_v59 = vadd.f32 1.0, %v10191_v1  ;;  %9502 = vmatmul.mubr.msk.f32.gmra.mrb[118].mxu0 %vm14556_vm6, %v6843_v15  ;;  %v10193_v56 = vpop.eup %10192  ;;  %vm14572_vm6 = vmmov %vm14568_vm0 }
 0x4c1   : > { %9504 = vmatprep.mubr.msk.f32.mxu0 %vm14557_vm12, %v6844_v20  ;;  %v6847_v48 = vmul.f32 %v10193_v56, %v13031_v53  ;;  %vm14573_vm12 = vmmov %vm14568_vm0 }
 0x4c2   : > { %10202 = vrcp.f32 %v6754_v59 }
 0x4c4   : > { %v10195_v60 = vpop.eup %10194  ;;  %9505 = vmatmul.mubr.msk.f32.gmra.mrb[120].mxu0 %vm14558_vm4, %v6845_v18  ;;  %vm14574_vm4 = vmmov %vm14568_vm0 }
 0x4c5   : > { %v6846_v30 = vmul.f32 %v10195_v60, %v13034_v37  ;;  %v10197_v51 = vpop.eup %10196 }
 0x4c6   : > { %v6849_v22 = vmul.f32 %v10197_v51, %v13045_v55 }
 0x4c7   : > { %9507 = vmatprep.mubr.msk.f32.mxu0 %vm14559_vm11, %v6846_v30  ;;  %vm14575_vm11 = vmmov %vm14568_vm0 }
 0x4c8   : > { %v10199_v52 = vpop.eup %10198  ;;  %9508 = vmatmul.mubr.msk.f32.gmra.mrb[122].mxu0 %vm14560_vm3, %v6847_v48  ;;  %vm14576_vm3 = vmmov %vm14568_vm0 }
 0x4c9   : > { %v6848_v36 = vmul.f32 %v10199_v52, %v13049_v14  ;;  %v10201_v49 = vpop.eup %10200  ;;  %v13103_v14 = vld [vmem:[%s13348_s9] ss:$0 sm:$0xff] }
 0x4ca   : > { %v6851_v53 = vmul.f32 %v10201_v49, %v13059_v38 }
 0x4cb   : > { %9510 = vmatprep.mubr.msk.f32.mxu0 %vm14561_vm7, %v6848_v36  ;;  %vm14577_vm7 = vmmov %vm14568_vm0 }
 0x4cc   : > { %v10203_v27 = vpop.eup %10202  ;;  %9511 = vmatmul.mubr.msk.f32.gmra.mrb[124].mxu0 %vm14562_vm9, %v6849_v22  ;;  %vm14578_vm9 = vmmov %vm14568_vm0 }
 0x4cd   : > { %v6850_v37 = vmul.f32 %v10203_v27, %v13062_v46 }
 0x4cf   : > { %9513 = vmatprep.mubr.msk.f32.mxu0 %vm14563_vm2, %v6850_v37  ;;  %vm14579_vm2 = vmmov %vm14568_vm0 }
 0x4d0   : > { %9514 = vmatmul.mubr.msk.f32.gmra.mrb[126].mxu0 %vm14564_vm14, %v6851_v53  ;;  %vm14580_vm14 = vmmov %vm14568_vm0 }
 0x564   : > { %v9470_v55 = vpop.f32.mrb[96].mxu0 }
 0x565   : > { %v13106_v7 = vadd.f32 %v9470_v55, %v13103_v14  ;;  %v7369_v25 = vpop.f32.mrb[97].mxu0 }
 0x566   : > { %v13109_v28 = vadd.f32 %v13103_v14, %v7369_v25 }
 0x567   : > { %v8401_v62 = vmul.f32 -1.442695, %v13106_v7 }
 0x568   : > { %v8400_v58 = vmul.f32 -1.442695, %v13109_v28  ;;  %v9473_v57 = vpop.f32.mrb[98].mxu0 }
 0x569   : > { %10204 = vpow2.f32 %v8401_v62  ;;  %v13114_v11 = vadd.f32 %v9473_v57, %v13103_v14  ;;  %v7379_v33 = vpop.f32.mrb[99].mxu0 }
 0x56a   : > { %10206 = vpow2.f32 %v8400_v58  ;;  %v13117_v24 = vadd.f32 %v13103_v14, %v7379_v33 }
 0x56b   : > { %v8403_v38 = vmul.f32 -1.442695, %v13114_v11 }
 0x56c   : > { %v8402_v6 = vmul.f32 -1.442695, %v13117_v24  ;;  %v9476_v17 = vpop.f32.mrb[100].mxu0 }
 0x56d   : > { %10208 = vpow2.f32 %v8403_v38  ;;  %v13122_v46 = vadd.f32 %v9476_v17, %v13103_v14  ;;  %v7389_v44 = vpop.f32.mrb[101].mxu0 }
 0x56e   : > { %10210 = vpow2.f32 %v8402_v6  ;;  %v13125_v2 = vadd.f32 %v13103_v14, %v7389_v44 }
 0x56f   : > { %v8405_v8 = vmul.f32 -1.442695, %v13122_v46 }
 0x570   : > { %v8404_v61 = vmul.f32 -1.442695, %v13125_v2 }
 0x571   : > { %10212 = vpow2.f32 %v8405_v8 }
 0x572   : > { %10214 = vpow2.f32 %v8404_v61  ;;  %v9479_v16 = vpop.f32.mrb[102].mxu0 }
 0x573   : > { %v10205_v23 = vpop.eup %10204  ;;  %v13130_v43 = vadd.f32 %v9479_v16, %v13103_v14  ;;  %v7399_v10 = vpop.f32.mrb[103].mxu0 }
 0x574   : > { %v10207_v42 = vpop.eup %10206  ;;  %v7664_v34 = vadd.f32 1.0, %v10205_v23  ;;  %v13133_v50 = vadd.f32 %v13103_v14, %v7399_v10 }
 0x575   : > { %v7663_v21 = vadd.f32 1.0, %v10207_v42  ;;  %v8407_v5 = vmul.f32 -1.442695, %v13130_v43 }
 0x576   : > { %10216 = vrcp.f32 %v7664_v34  ;;  %v8406_v29 = vmul.f32 -1.442695, %v13133_v50  ;;  %v9482_v9 = vpop.f32.mrb[104].mxu0 }
 0x577   : > { %v10209_v54 = vpop.eup %10208  ;;  %10218 = vrcp.f32 %v7663_v21  ;;  %v13138_v0 = vadd.f32 %v9482_v9, %v13103_v14  ;;  %v7409_v35 = vpop.f32.mrb[105].mxu0 }
 0x578   : > { %v10211_v41 = vpop.eup %10210  ;;  %v7666_v3 = vadd.f32 1.0, %v10209_v54  ;;  %10220 = vpow2.f32 %v8407_v5  ;;  %v13141_v47 = vadd.f32 %v13103_v14, %v7409_v35 }
 0x579   : > { %v7665_v26 = vadd.f32 1.0, %v10211_v41  ;;  %10222 = vpow2.f32 %v8406_v29  ;;  %v8409_v12 = vmul.f32 -1.442695, %v13138_v0 }
 0x57a   : > { %10224 = vrcp.f32 %v7666_v3  ;;  %v8408_v45 = vmul.f32 -1.442695, %v13141_v47  ;;  %v9485_v31 = vpop.f32.mrb[106].mxu0 }
 0x57b   : > { %v10213_v63 = vpop.eup %10212  ;;  %10226 = vrcp.f32 %v7665_v26  ;;  %v13146_v4 = vadd.f32 %v9485_v31, %v13103_v14  ;;  %v7419_v32 = vpop.f32.mrb[107].mxu0 }
 0x57c   : > { %v10215_v19 = vpop.eup %10214  ;;  %v7668_v40 = vadd.f32 1.0, %v10213_v63  ;;  %10228 = vpow2.f32 %v8409_v12  ;;  %v13149_v13 = vadd.f32 %v13103_v14, %v7419_v32 }
 0x57d   : > { %v7667_v39 = vadd.f32 1.0, %v10215_v19  ;;  %10230 = vpow2.f32 %v8408_v45  ;;  %v8411_v15 = vmul.f32 -1.442695, %v13146_v4 }
 0x57e   : > { %10232 = vrcp.f32 %v7668_v40  ;;  %v8410_v1 = vmul.f32 -1.442695, %v13149_v13  ;;  %v9488_v20 = vpop.f32.mrb[108].mxu0 }
 0x57f   : > { %10234 = vrcp.f32 %v7667_v39  ;;  %v13154_v59 = vadd.f32 %v9488_v20, %v13103_v14  ;;  %v7429_v18 = vpop.f32.mrb[109].mxu0 }
 0x580   : > { %v10217_v56 = vpop.eup %10216  ;;  %10236 = vpow2.f32 %v8411_v15  ;;  %v13164_v60 = vadd.f32 %v13103_v14, %v7429_v18 }
 0x581   : > { %v10219_v30 = vpop.eup %10218  ;;  %v7760_v48 = vmul.f32 %v10217_v56, %v13106_v7  ;;  %10238 = vpow2.f32 %v8410_v1  ;;  %v8413_v51 = vmul.f32 -1.442695, %v13154_v59 }
 0x582   : > { %v10221_v52 = vpop.eup %10220  ;;  %v7759_v36 = vmul.f32 %v10219_v30, %v13109_v28  ;;  %v8412_v22 = vmul.f32 -1.442695, %v13164_v60  ;;  %v9491_v49 = vpop.f32.mrb[110].mxu0 }
 0x583   : > { %v10223_v27 = vpop.eup %10222  ;;  %7792 = vst.msk [vmem:[%s13161_s27 + $0x8] sm:$0xff] %vm14565_vm8, %v7760_v48  ;;  %v7670_v37 = vadd.f32 1.0, %v10221_v52  ;;  %10240 = vpow2.f32 %v8413_v51  ;;  %v13173_v53 = vadd.f32 %v9491_v49, %v13103_v14  ;;  %v7439_v55 = vpop.f32.mrb[111].mxu0  ;;  %vm14581_vm8 = vmmov %vm14568_vm0 }
 0x584   : > { %v10225_v7 = vpop.eup %10224  ;;  %7791 = vst.msk [vmem:[%s13161_s27] sm:$0xff] %vm14566_vm5, %v7759_v36  ;;  %v7669_v25 = vadd.f32 1.0, %v10223_v27  ;;  %10242 = vpow2.f32 %v8412_v22  ;;  %v13178_v28 = vadd.f32 %v13103_v14, %v7439_v55  ;;  %vm14582_vm5 = vmmov %vm14568_vm0 }
 0x585   : > { %v10227_v62 = vpop.eup %10226  ;;  %v7762_v58 = vmul.f32 %v10225_v7, %v13114_v11  ;;  %10244 = vrcp.f32 %v7670_v37  ;;  %v8415_v57 = vmul.f32 -1.442695, %v13173_v53 }
 0x586   : > { %v10229_v33 = vpop.eup %10228  ;;  %v7761_v38 = vmul.f32 %v10227_v62, %v13117_v24  ;;  %10246 = vrcp.f32 %v7669_v25  ;;  %v8414_v6 = vmul.f32 -1.442695, %v13178_v28  ;;  %v9494_v17 = vpop.f32.mrb[112].mxu0 }
 0x587   : > { %v10231_v44 = vpop.eup %10230  ;;  %7794 = vst.msk [vmem:[%s13161_s27 + $0x18] sm:$0xff] %vm14567_vm10, %v7762_v58  ;;  %v7672_v8 = vadd.f32 1.0, %v10229_v33  ;;  %10248 = vpow2.f32 %v8415_v57  ;;  %v13187_v61 = vadd.f32 %v9494_v17, %v13103_v14  ;;  %v7449_v11 = vpop.f32.mrb[113].mxu0  ;;  %vm14583_vm10 = vmmov %vm14568_vm0 }
 0x588   : > { %v10233_v16 = vpop.eup %10232  ;;  %7793 = vst.msk [vmem:[%s13161_s27 + $0x10] sm:$0xff] %vm14568_vm0, %v7761_v38  ;;  %v7671_v23 = vadd.f32 1.0, %v10231_v44  ;;  %10250 = vpow2.f32 %v8414_v6  ;;  %v13192_v24 = vadd.f32 %v13103_v14, %v7449_v11 }
 0x589   : > { %v10235_v10 = vpop.eup %10234  ;;  %v7764_v42 = vmul.f32 %v10233_v16, %v13122_v46  ;;  %10252 = vrcp.f32 %v7672_v8  ;;  %v8417_v34 = vmul.f32 -1.442695, %v13187_v61 }
 0x58a   : > { %v10237_v21 = vpop.eup %10236  ;;  %v7763_v5 = vmul.f32 %v10235_v10, %v13125_v2  ;;  %10254 = vrcp.f32 %v7671_v23  ;;  %v8416_v29 = vmul.f32 -1.442695, %v13192_v24 }
 0x58b   : > { %v10239_v9 = vpop.eup %10238  ;;  %7796 = vst.msk [vmem:[%s13161_s27 + $0x28] sm:$0xff] %vm14569_vm13, %v7764_v42  ;;  %v7674_v54 = vadd.f32 1.0, %v10237_v21  ;;  %10256 = vpow2.f32 %v8417_v34  ;;  %v9497_v35 = vpop.f32.mrb[114].mxu0  ;;  %vm14584_vm13 = vmmov %vm14568_vm0 }
 0x58c   : > { %7795 = vst.msk [vmem:[%s13161_s27 + $0x20] sm:$0xff] %vm14570_vm1, %v7763_v5  ;;  %v7673_v41 = vadd.f32 1.0, %v10239_v9  ;;  %10258 = vpow2.f32 %v8416_v29  ;;  %v13203_v46 = vadd.f32 %v9497_v35, %v13103_v14  ;;  %v7459_v3 = vpop.f32.mrb[115].mxu0  ;;  %vm14585_vm1 = vmmov %vm14568_vm0 }
 0x58d   : > { %v10241_v26 = vpop.eup %10240  ;;  %10260 = vrcp.f32 %v7674_v54  ;;  %v13206_v2 = vadd.f32 %v13103_v14, %v7459_v3 }
 0x58e   : > { %v10243_v12 = vpop.eup %10242  ;;  %10262 = vrcp.f32 %v7673_v41  ;;  %v7676_v45 = vadd.f32 1.0, %v10241_v26  ;;  %v8419_v31 = vmul.f32 -1.442695, %v13203_v46 }
 0x58f   : > { %v10245_v63 = vpop.eup %10244  ;;  %v7675_v32 = vadd.f32 1.0, %v10243_v12  ;;  %v8418_v19 = vmul.f32 -1.442695, %v13206_v2  ;;  %v9500_v40 = vpop.f32.mrb[116].mxu0 }
 0x590   : > { %v10247_v39 = vpop.eup %10246  ;;  %v7766_v15 = vmul.f32 %v10245_v63, %v13130_v43  ;;  %10264 = vrcp.f32 %v7676_v45  ;;  %v13212_v1 = vadd.f32 %v9500_v40, %v13103_v14  ;;  %v7469_v20 = vpop.f32.mrb[117].mxu0 }
 0x591   : > { %v10249_v18 = vpop.eup %10248  ;;  %v7765_v56 = vmul.f32 %v10247_v39, %v13133_v50  ;;  %10266 = vrcp.f32 %v7675_v32  ;;  %v13216_v30 = vadd.f32 %v13103_v14, %v7469_v20 }
 0x592   : > { %v10251_v48 = vpop.eup %10250  ;;  %7798 = vst.msk [vmem:[%s13161_s27 + $0x38] sm:$0xff] %vm14571_vm15, %v7766_v15  ;;  %v7678_v51 = vadd.f32 1.0, %v10249_v18  ;;  %10268 = vpow2.f32 %v8419_v31  ;;  %v8421_v52 = vmul.f32 -1.442695, %v13212_v1  ;;  %vm14586_vm15 = vmmov %vm14568_vm0 }
 0x593   : > { %v10253_v43 = vpop.eup %10252  ;;  %7797 = vst.msk [vmem:[%s13161_s27 + $0x30] sm:$0xff] %vm14572_vm6, %v7765_v56  ;;  %v7677_v36 = vadd.f32 1.0, %v10251_v48  ;;  %10270 = vpow2.f32 %v8418_v19  ;;  %v8420_v22 = vmul.f32 -1.442695, %v13216_v30  ;;  %v9503_v50 = vpop.f32.mrb[118].mxu0  ;;  %vm14587_vm6 = vmmov %vm14568_vm0 }
 0x594   : > { %v10255_v49 = vpop.eup %10254  ;;  %v7768_v27 = vmul.f32 %v10253_v43, %v13138_v0  ;;  %10272 = vrcp.f32 %v7678_v51  ;;  %v13226_v37 = vadd.f32 %v9503_v50, %v13103_v14  ;;  %v7479_v55 = vpop.f32.mrb[119].mxu0 }
 0x595   : > { %v10257_v7 = vpop.eup %10256  ;;  %v7767_v25 = vmul.f32 %v10255_v49, %v13141_v47  ;;  %10274 = vrcp.f32 %v7677_v36  ;;  %v13230_v62 = vadd.f32 %v13103_v14, %v7479_v55 }
 0x596   : > { %v10259_v58 = vpop.eup %10258  ;;  %7800 = vst.msk [vmem:[%s13161_s27 + $0x48] sm:$0xff] %vm14573_vm12, %v7768_v27  ;;  %v7680_v57 = vadd.f32 1.0, %v10257_v7  ;;  %10276 = vpow2.f32 %v8421_v52  ;;  %v8423_v33 = vmul.f32 -1.442695, %v13226_v37  ;;  %vm14588_vm12 = vmmov %vm14568_vm0 }
 0x597   : > { %v10261_v0 = vpop.eup %10260  ;;  %7799 = vst.msk [vmem:[%s13161_s27 + $0x40] sm:$0xff] %vm14574_vm4, %v7767_v25  ;;  %v7679_v38 = vadd.f32 1.0, %v10259_v58  ;;  %10278 = vpow2.f32 %v8420_v22  ;;  %v8422_v47 = vmul.f32 -1.442695, %v13230_v62  ;;  %v9506_v6 = vpop.f32.mrb[120].mxu0  ;;  %vm14589_vm4 = vmmov %vm14568_vm0 }
 0x598   : > { %v10263_v17 = vpop.eup %10262  ;;  %v7770_v44 = vmul.f32 %v10261_v0, %v13146_v4  ;;  %10280 = vrcp.f32 %v7680_v57  ;;  %v13240_v8 = vadd.f32 %v9506_v6, %v13103_v14  ;;  %v7489_v11 = vpop.f32.mrb[121].mxu0 }
 0x599   : > { %v7769_v16 = vmul.f32 %v10263_v17, %v13149_v13  ;;  %10282 = vrcp.f32 %v7679_v38  ;;  %v13244_v23 = vadd.f32 %v13103_v14, %v7489_v11 }
 0x59a   : > { %v10265_v10 = vpop.eup %10264  ;;  %7802 = vst.msk [vmem:[%s13161_s27 + $0x58] sm:$0xff] %vm14575_vm11, %v7770_v44  ;;  %10284 = vpow2.f32 %v8423_v33  ;;  %v8425_v42 = vmul.f32 -1.442695, %v13240_v8  ;;  %vm14590_vm11 = vmmov %vm14568_vm0 }
 0x59b   : > { %v10267_v34 = vpop.eup %10266  ;;  %7801 = vst.msk [vmem:[%s13161_s27 + $0x50] sm:$0xff] %vm14576_vm3, %v7769_v16  ;;  %v7772_v4 = vmul.f32 %v10265_v10, %v13154_v59  ;;  %10286 = vpow2.f32 %v8422_v47  ;;  %v8424_v13 = vmul.f32 -1.442695, %v13244_v23  ;;  %v9509_v21 = vpop.f32.mrb[122].mxu0  ;;  %vm14591_vm3 = vmmov %vm14568_vm0 }
 0x59c   : > { %v10269_v5 = vpop.eup %10268  ;;  %v7771_v29 = vmul.f32 %v10267_v34, %v13164_v60  ;;  %10288 = vpow2.f32 %v8425_v42  ;;  %v13255_v9 = vadd.f32 %v9509_v21, %v13103_v14  ;;  %v7499_v54 = vpop.f32.mrb[123].mxu0 }
 0x59d   : > { %v10271_v35 = vpop.eup %10270  ;;  %7804 = vst.msk [vmem:[%s13161_s27 + $0x68] sm:$0xff] %vm14577_vm7, %v7772_v4  ;;  %v7682_v41 = vadd.f32 1.0, %v10269_v5  ;;  %10290 = vpow2.f32 %v8424_v13  ;;  %v13260_v3 = vadd.f32 %v13103_v14, %v7499_v54  ;;  %vm14592_vm7 = vmmov %vm14568_vm0 }
 0x59e   : > { %v10273_v59 = vpop.eup %10272  ;;  %7803 = vst.msk [vmem:[%s13161_s27 + $0x60] sm:$0xff] %vm14578_vm9, %v7771_v29  ;;  %v7681_v26 = vadd.f32 1.0, %v10271_v35  ;;  %v8427_v60 = vmul.f32 -1.442695, %v13255_v9  ;;  %vm14593_vm9 = vmmov %vm14568_vm0 }
 0x59f   : > { %v10275_v12 = vpop.eup %10274  ;;  %v7774_v45 = vmul.f32 %v10273_v59, %v13173_v53  ;;  %10292 = vrcp.f32 %v7682_v41  ;;  %v8426_v31 = vmul.f32 -1.442695, %v13260_v3  ;;  %v9512_v63 = vpop.f32.mrb[124].mxu0 }
 0x5a0   : > { %v10277_v32 = vpop.eup %10276  ;;  %v7773_v19 = vmul.f32 %v10275_v12, %v13178_v28  ;;  %10294 = vrcp.f32 %v7681_v26  ;;  %v13269_v40 = vadd.f32 %v9512_v63, %v13103_v14  ;;  %v7509_v39 = vpop.f32.mrb[125].mxu0 }
 0x5a1   : > { %v10279_v15 = vpop.eup %10278  ;;  %7806 = vst.msk [vmem:[%s13161_s27 + $0x78] sm:$0xff] %vm14579_vm2, %v7774_v45  ;;  %v7684_v20 = vadd.f32 1.0, %v10277_v32  ;;  %10296 = vpow2.f32 %v8427_v60  ;;  %v13274_v18 = vadd.f32 %v13103_v14, %v7509_v39  ;;  %vm14594_vm2 = vmmov %vm14568_vm0 }
 0x5a2   : > { %v10281_v53 = vpop.eup %10280  ;;  %7805 = vst.msk [vmem:[%s13161_s27 + $0x70] sm:$0xff] %vm14580_vm14, %v7773_v19  ;;  %v7683_v56 = vadd.f32 1.0, %v10279_v15  ;;  %10298 = vpow2.f32 %v8426_v31  ;;  %v8429_v28 = vmul.f32 -1.442695, %v13269_v40  ;;  %vm14595_vm14 = vmmov %vm14568_vm0 }
 0x5a3   : > { %v10283_v48 = vpop.eup %10282  ;;  %v7776_v51 = vmul.f32 %v10281_v53, %v13187_v61  ;;  %10300 = vrcp.f32 %v7684_v20  ;;  %v8428_v52 = vmul.f32 -1.442695, %v13274_v18  ;;  %v9515_v43 = vpop.f32.mrb[126].mxu0 }
 0x5a4   : > { %v10285_v36 = vpop.eup %10284  ;;  %v7775_v22 = vmul.f32 %v10283_v48, %v13192_v24  ;;  %10302 = vrcp.f32 %v7683_v56  ;;  %v13283_v50 = vadd.f32 %v9515_v43, %v13103_v14  ;;  %v7519_v49 = vpop.f32.mrb[127].mxu0 }
 0x5a5   : > { %v10287_v27 = vpop.eup %10286  ;;  %7808 = vst.msk [vmem:[%s13161_s27 + $0x88] sm:$0xff] %vm14581_vm8, %v7776_v51  ;;  %v7686_v55 = vadd.f32 1.0, %v10285_v36  ;;  %10304 = vpow2.f32 %v8429_v28  ;;  %v13288_v7 = vadd.f32 %v13103_v14, %v7519_v49 }
 0x5a6   : > { %v10289_v61 = vpop.eup %10288  ;;  %7807 = vst.msk [vmem:[%s13161_s27 + $0x80] sm:$0xff] %vm14582_vm5, %v7775_v22  ;;  %v7685_v25 = vadd.f32 1.0, %v10287_v27  ;;  %10306 = vpow2.f32 %v8428_v52  ;;  %v8431_v57 = vmul.f32 -1.442695, %v13283_v50 }
 0x5a7   : > { %v10291_v58 = vpop.eup %10290  ;;  %10308 = vrcp.f32 %v7686_v55  ;;  %v7688_v24 = vadd.f32 1.0, %v10289_v61  ;;  %v8430_v0 = vmul.f32 -1.442695, %v13288_v7 }
 0x5a8   : > { %10310 = vrcp.f32 %v7685_v25  ;;  %v7687_v33 = vadd.f32 1.0, %v10291_v58 }
 0x5a9   : > { %v10293_v38 = vpop.eup %10292  ;;  %10312 = vrcp.f32 %v7688_v24 }
 0x5aa   : > { %v10295_v14 = vpop.eup %10294  ;;  %v7778_v47 = vmul.f32 %v10293_v38, %v13203_v46  ;;  %10314 = vrcp.f32 %v7687_v33 }
 0x5ab   : > { %v10297_v6 = vpop.eup %10296  ;;  %v7777_v17 = vmul.f32 %v10295_v14, %v13206_v2  ;;  %10316 = vpow2.f32 %v8431_v57 }
 0x5ac   : > { %v10299_v44 = vpop.eup %10298  ;;  %7810 = vst.msk [vmem:[%s13161_s27 + $0x98] sm:$0xff] %vm14583_vm10, %v7778_v47  ;;  %v7690_v11 = vadd.f32 1.0, %v10297_v6  ;;  %10318 = vpow2.f32 %v8430_v0 }
 0x5ad   : > { %v10301_v16 = vpop.eup %10300  ;;  %7809 = vst.msk [vmem:[%s13161_s27 + $0x90] sm:$0xff] %vm14568_vm0, %v7777_v17  ;;  %v7689_v10 = vadd.f32 1.0, %v10299_v44 }
 0x5ae   : > { %v10303_v42 = vpop.eup %10302  ;;  %v7780_v34 = vmul.f32 %v10301_v16, %v13212_v1  ;;  %10320 = vrcp.f32 %v7690_v11 }
 0x5af   : > { %v10305_v46 = vpop.eup %10304  ;;  %v7779_v2 = vmul.f32 %v10303_v42, %v13216_v30  ;;  %10322 = vrcp.f32 %v7689_v10 }
 0x5b0   : > { %v10307_v4 = vpop.eup %10306  ;;  %7812 = vst.msk [vmem:[%s13161_s27 + $0xa8] sm:$0xff] %vm14584_vm13, %v7780_v34  ;;  %v7692_v13 = vadd.f32 1.0, %v10305_v46 }
 0x5b1   : > { %v10309_v21 = vpop.eup %10308  ;;  %7811 = vst.msk [vmem:[%s13161_s27 + $0xa0] sm:$0xff] %vm14585_vm1, %v7779_v2  ;;  %v7691_v5 = vadd.f32 1.0, %v10307_v4 }
 0x5b2   : > { %v10311_v29 = vpop.eup %10310  ;;  %v7782_v1 = vmul.f32 %v10309_v21, %v13226_v37  ;;  %10324 = vrcp.f32 %v7692_v13 }
 0x5b3   : > { %v10313_v54 = vpop.eup %10312  ;;  %v7781_v35 = vmul.f32 %v10311_v29, %v13230_v62  ;;  %10326 = vrcp.f32 %v7691_v5 }
 0x5b4   : > { %v10315_v30 = vpop.eup %10314  ;;  %7814 = vst.msk [vmem:[%s13161_s27 + $0xb8] sm:$0xff] %vm14586_vm15, %v7782_v1  ;;  %v7784_v41 = vmul.f32 %v10313_v54, %v13240_v8 }
 0x5b5   : > { %v10317_v59 = vpop.eup %10316  ;;  %7813 = vst.msk [vmem:[%s13161_s27 + $0xb0] sm:$0xff] %vm14587_vm6, %v7781_v35  ;;  %v7783_v26 = vmul.f32 %v10315_v30, %v13244_v23 }
 0x5b6   : > { %v10319_v60 = vpop.eup %10318  ;;  %7816 = vst.msk [vmem:[%s13161_s27 + $0xc8] sm:$0xff] %vm14588_vm12, %v7784_v41  ;;  %v7694_v37 = vadd.f32 1.0, %v10317_v59 }
 0x5b7   : > { %7815 = vst.msk [vmem:[%s13161_s27 + $0xc0] sm:$0xff] %vm14589_vm4, %v7783_v26  ;;  %v7693_v62 = vadd.f32 1.0, %v10319_v60 }
 0x5b8   : > { %v10321_v12 = vpop.eup %10320  ;;  %10328 = vrcp.f32 %v7694_v37 }
 0x5b9   : > { %v10323_v45 = vpop.eup %10322  ;;  %v7786_v8 = vmul.f32 %v10321_v12, %v13255_v9  ;;  %10330 = vrcp.f32 %v7693_v62 }
 0x5ba   : > { %v7785_v31 = vmul.f32 %v10323_v45, %v13260_v3 }
 0x5bb   : > { %7818 = vst.msk [vmem:[%s13161_s27 + $0xd8] sm:$0xff] %vm14590_vm11, %v7786_v8 }
 0x5bc   : > { %v10325_v23 = vpop.eup %10324  ;;  %7817 = vst.msk [vmem:[%s13161_s27 + $0xd0] sm:$0xff] %vm14591_vm3, %v7785_v31 }
 0x5bd   : > { %v10327_v63 = vpop.eup %10326  ;;  %v7788_v32 = vmul.f32 %v10325_v23, %v13269_v40 }
 0x5be   : > { %v7787_v19 = vmul.f32 %v10327_v63, %v13274_v18 }
 0x5bf   : > { %7820 = vst.msk [vmem:[%s13161_s27 + $0xe8] sm:$0xff] %vm14592_vm7, %v7788_v32 }
 0x5c0   : > { %7819 = vst.msk [vmem:[%s13161_s27 + $0xe0] sm:$0xff] %vm14593_vm9, %v7787_v19 }
 0x5c2   : > { %v10329_v39 = vpop.eup %10328 }
 0x5c3   : > { %v10331_v9 = vpop.eup %10330  ;;  %v7790_v15 = vmul.f32 %v10329_v39, %v13283_v50 }
 0x5c4   : > { %v7789_v3 = vmul.f32 %v10331_v9, %v13288_v7 }
 0x5c5   : > { %7822 = vst.msk [vmem:[%s13161_s27 + $0xf8] sm:$0xff] %vm14594_vm2, %v7790_v15 }
 0x5c6   : > { %7821 = vst.msk [vmem:[%s13161_s27 + $0xf0] sm:$0xff] %vm14595_vm14, %v7789_v3 }
 0x5c7 PF: > { %s20_s13 = sadd.s32 1, %s10339_s13  }
 0x5c8   : > { %p17_p4 = scmp.ge.s32.totalorder %s20_s13, 4  }
 0x5ca   :  { %19 = sbr.rel (!%p17_p4) target bundleno = 1 (0x1), region = 98 }

</bundles_post_ra>
